<compile_context>
chip_gen: v7x
topology: tpu7x:2x2x1
jax: 0.10.0
libtpu: 0.0.40
codegen_flags: <defaults>
</compile_context>

<pallas_src>
import jax
import jax.numpy as jnp
from jax.experimental import pallas as pl
from jax.experimental.pallas import tpu as pltpu

# ---------------- configuration constants ----------------
EV = 4                   # even kernel size (layer0 kernel is Ev x Ev for band 0)
CH_BASE = 8
GRPS = 3                 # groups for clrchs < 3
CG = CH_BASE             # per-group channels (Ch // grps) = 8
CH = GRPS * CH_BASE      # 24
M = 3                    # num_mixtures
CO = M * GRPS            # 9  (Co = num_mixtures * 3 for clrchs < 3)
GROUP_ROW = 8            # sublane-aligned row pitch for each group's outputs
CO_PAD = GRPS * GROUP_ROW  # 24 padded param rows -> aligned sublane slices in-kernel
LEAKY_SLOPE = 0.01       # PyTorch LeakyReLU default
HALF = 0.5 / 255.0       # pmf bin half-width (pixel values normalized by 255)
SCALE_MIN = 1e-2
PMF_MIN = 1e-9
INV_SQRT2 = 0.7071067811865476

CHUNK = 512              # lanes processed per inner-loop iteration (bounds live vregs)


def _leaky(x):
    return jnp.where(x > 0, x, LEAKY_SLOPE * x)


def _phi(x):
    # standard normal CDF (reference path only)
    return 0.5 * (1.0 + jax.lax.erf(x * INV_SQRT2))


# ---------------- Pallas kernel: whole hot path ----------------
def entropy_kernel(patch_ref, y_ref, w0_ref, b0_ref, w1_ref, b1_ref,
                   wf_ref, bf_ref, o_ref):
    # Weights are tiny and grid-invariant: load once per grid step.
    w0 = w0_ref[...]          # (CH, 16)     bf16
    b0 = b0_ref[...]          # (CH, 1)      f32
    w1 = w1_ref[...]          # (CH, CH)     f32 (block-diagonal grouped 1x1)
    b1 = b1_ref[...]          # (CH, 1)
    wf = wf_ref[...]          # (CO_PAD, CH) f32 (rows g*8..g*8+M-1 hold group g)
    bf = bf_ref[...]          # (CO_PAD, 1)

    n_chunks = o_ref.shape[-1] // CHUNK   # static

    def body(c, carry):
        off = pl.multiple_of(c * CHUNK, 128)
        patch = patch_ref[:, pl.ds(off, CHUNK)]        # (16, CHUNK) bf16, pixels on lanes
        y = y_ref[:, pl.ds(off, CHUNK)]                # (1, CHUNK)  f32

        # layer0 conv as im2col matmul (MXU, f32 accumulation) + LeakyReLU
        h = jnp.dot(w0, patch, preferred_element_type=jnp.float32) + b0
        h = _leaky(h)                                  # (CH, CHUNK)
        # hidden grouped 1x1 conv (block-diagonal matmul) + LeakyReLU
        h = jnp.dot(w1, h, preferred_element_type=jnp.float32) + b1
        h = _leaky(h)
        # final grouped 1x1 conv -> GMM params, rows padded for aligned slices
        params = jnp.dot(wf, h, preferred_element_type=jnp.float32) + bf   # (CO_PAD, CHUNK)

        scales = jnp.maximum(jnp.abs(params[0:M, :]), SCALE_MIN)           # (M, CHUNK)
        means = params[GROUP_ROW:GROUP_ROW + M, :]                         # (M, CHUNK)
        wlog = params[2 * GROUP_ROW:2 * GROUP_ROW + M, :]                  # (M, CHUNK)

        # stable softmax over the (tiny, static) mixture axis; reciprocal on the EUP
        wmax = jnp.maximum(jnp.maximum(wlog[0:1, :], wlog[1:2, :]), wlog[2:3, :])
        wexp = jnp.exp(wlog - wmax)
        wsum = wexp[0:1, :] + wexp[1:2, :] + wexp[2:3, :]
        mixw = wexp * pl.reciprocal(wsum, approx=True)                     # (M, CHUNK)

        # Phi((+-HALF - (y-mu))/sigma): share one scaled reciprocal per mixture and
        # fold the 1/sqrt(2) of the erf argument into it.
        inv = INV_SQRT2 * pl.reciprocal(scales, approx=True)               # 1/(sigma*sqrt2)
        t = (y - means) * inv
        hw = HALF * inv
        cdf_diff = jax.lax.erf(hw - t) - jax.lax.erf(-hw - t)              # = 2*(Phi_u-Phi_l)
        q = mixw * cdf_diff
        pmf = 0.5 * (q[0:1, :] + q[1:2, :] + q[2:3, :])
        pmf = jnp.maximum(pmf, PMF_MIN)
        o_ref[:, pl.ds(off, CHUNK)] = -jnp.log2(pmf)                       # self-information
        return carry

    jax.lax.fori_loop(0, n_chunks, body, 0, unroll=True)


# ---------------- JAX glue (im2col, layout plumbing) ----------------
def llicti_entropy_forward(y_condition, y_topredict, weights, tile_p=4096):
    # NCHW in / NCHW out; internally (features, pixels) with pixels on the lane axis.
    assert tile_p % CHUNK == 0
    N, C, H, W = y_condition.shape
    assert C == 1, "this configuration uses clrchs=1 (single channel)"
    w0, b0, w1, b1, wf, bf = weights

    # replicate pad: (left, right, top, bottom) = (Ev//2-1, Ev//2, Ev//2-1, Ev//2)
    pL, pR, pT, pB = EV // 2 - 1, EV // 2, EV // 2 - 1, EV // 2
    xpad = jnp.pad(y_condition[:, 0], ((0, 0), (pT, pB), (pL, pR)), mode="edge")

    # im2col transposed to (taps=16, pixels); k = i*Ev + j matches w0[:, i*Ev+j].
    # bf16 halves the materialized-patch HBM traffic; the matmul accumulates in f32.
    P = N * H * W
    patches = jnp.stack([xpad[:, i:i + H, j:j + W].reshape(P)
                         for i in range(EV) for j in range(EV)], axis=0)
    patches = patches.astype(jnp.bfloat16)
    y_flat = y_topredict.astype(jnp.float32).reshape(1, P)

    # pad pixel count to a multiple of the tile (lanes are independent; padded lanes
    # compute harmless values that are sliced away below)
    n_tiles = -(-P // tile_p)
    p_pad = n_tiles * tile_p
    if p_pad != P:
        patches = jnp.pad(patches, ((0, 0), (0, p_pad - P)))
        y_flat = jnp.pad(y_flat, ((0, 0), (0, p_pad - P)))

    out = pl.pallas_call(
        entropy_kernel,
        out_shape=jax.ShapeDtypeStruct((1, p_pad), jnp.float32),
        grid_spec=pltpu.PrefetchScalarGridSpec(
            num_scalar_prefetch=0,
            grid=(n_tiles,),
            in_specs=[
                pl.BlockSpec((EV * EV, tile_p), lambda i: (0, i)),   # patches (lane-dense)
                pl.BlockSpec((1, tile_p), lambda i: (0, i)),         # y        (lane-dense)
                pl.BlockSpec((CH, EV * EV), lambda i: (0, 0)),       # w0 (grid-invariant)
                pl.BlockSpec((CH, 1), lambda i: (0, 0)),             # b0
                pl.BlockSpec((CH, CH), lambda i: (0, 0)),            # w1
                pl.BlockSpec((CH, 1), lambda i: (0, 0)),             # b1
                pl.BlockSpec((CO_PAD, CH), lambda i: (0, 0)),        # wf
                pl.BlockSpec((CO_PAD, 1), lambda i: (0, 0)),         # bf
            ],
            out_specs=pl.BlockSpec((1, tile_p), lambda i: (0, i)),   # lane-dense stores
        ),
        compiler_params=pltpu.CompilerParams(
            dimension_semantics=("parallel",)),                      # megacore on v7x
    )(patches, y_flat, w0, b0, w1, b1, wf, bf)

    return out[:, :P].reshape(N, H, W)[:, None, :, :]                # (N, 1, H, W)


# ---------------- deterministic parameter init (PyTorch-like uniform) ----------------
def init_params(key):
    keys = jax.random.split(key, 6)

    def uni(k, shape, fan_in):
        bound = 1.0 / (fan_in ** 0.5)
        return jax.random.uniform(k, shape, jnp.float32, -bound, bound)

    # layer0: Conv2d(1, Ch, (Ev,Ev)) -> matrix (Ch, Ev*Ev), col k = i*Ev + j. bf16 for MXU.
    w0 = uni(keys[0], (CH, EV * EV), EV * EV).astype(jnp.bfloat16)
    b0 = uni(keys[1], (CH, 1), EV * EV)

    # hidden grouped 1x1: Conv2d(Ch, Ch, 1, groups=3) weight (Ch, Ch//3) -> block diag
    w1_raw = uni(keys[2], (CH, CG), CG)
    b1 = uni(keys[3], (CH, 1), CG)
    w1 = jnp.zeros((CH, CH), jnp.float32)
    for g in range(GRPS):
        w1 = w1.at[g * CG:(g + 1) * CG, g * CG:(g + 1) * CG].set(
            w1_raw[g * CG:(g + 1) * CG])

    # final grouped 1x1: Conv2d(Ch, Co=9, 1, groups=3). Output channel g*M+m is stored
    # at padded row g*8+m so the scales/means/logits slices are sublane-tile aligned.
    wf_raw = uni(keys[4], (CO, CG), CG)
    bf_raw = uni(keys[5], (CO,), CG)
    wf = jnp.zeros((CO_PAD, CH), jnp.float32)
    bf = jnp.zeros((CO_PAD, 1), jnp.float32)
    for g in range(GRPS):
        for m in range(M):
            o = g * M + m
            wf = wf.at[GROUP_ROW * g + m, g * CG:(g + 1) * CG].set(wf_raw[o])
            bf = bf.at[GROUP_ROW * g + m, 0].set(bf_raw[o])

    return w0, b0, w1, b1, wf, bf


# ---------------- pure-JAX reference for correctness ----------------
def reference_forward(y_condition, y_topredict, weights):
    w0, b0, w1, b1, wf, bf = weights
    N, _, H, W = y_condition.shape
    pL, pR, pT, pB = EV // 2 - 1, EV // 2, EV // 2 - 1, EV // 2
    xpad = jnp.pad(y_condition[:, 0], ((0, 0), (pT, pB), (pL, pR)), mode="edge")
    P = N * H * W
    patches = jnp.stack([xpad[:, i:i + H, j:j + W].reshape(P)
                         for i in range(EV) for j in range(EV)], axis=0)
    # same bf16 rounding of layer0 inputs as the kernel (f32 accumulation either way)
    patches = patches.astype(jnp.bfloat16).astype(jnp.float32)
    y = y_topredict.astype(jnp.float32).reshape(1, P)

    h = _leaky(w0.astype(jnp.float32) @ patches + b0)
    h = _leaky(w1 @ h + b1)
    params = wf @ h + bf
    scales = jnp.maximum(jnp.abs(params[0:M]), SCALE_MIN)
    means = params[GROUP_ROW:GROUP_ROW + M]
    mixw = jax.nn.softmax(params[2 * GROUP_ROW:2 * GROUP_ROW + M], axis=0)
    centered = y - means
    pmf = jnp.sum(mixw * (_phi((HALF - centered) / scales)
                          - _phi((-HALF - centered) / scales)),
                  axis=0, keepdims=True)
    pmf = jnp.maximum(pmf, PMF_MIN)
    out = -jnp.log2(pmf)
    return out.reshape(N, H, W)[:, None, :, :]


if __name__ == "__main__":
    key = jax.random.PRNGKey(0)
    k_cond, k_pred, k_par = jax.random.split(key, 3)

    N, H, W = 2, 24, 40          # small test image, P = 1920 pixels
    # pixel values normalized to [0, 1] (i.e. v / 255), like the torch pipeline
    y_condition = jax.random.uniform(k_cond, (N, 1, H, W), jnp.float32)
    y_topredict = jax.random.uniform(k_pred, (N, 1, H, W), jnp.float32)

    params = init_params(k_par)
    ref = reference_forward(y_condition, y_topredict, params)

    # default (large) tile: single grid step, exercises the pixel-padding path
    out = jax.block_until_ready(
        llicti_entropy_forward(y_condition, y_topredict, params))
    assert out.shape == (N, 1, H, W)
    # tolerance covers the approx-EUP reciprocals (1/sigma, softmax denom) vs exact
    # divisions in the reference; real layout/indexing bugs are far outside this.
    assert jnp.allclose(out, ref, atol=5e-2, rtol=5e-2), "mismatch vs JAX reference"

    # small tile: exercises a multi-step grid with padding
    out2 = jax.block_until_ready(
        llicti_entropy_forward(y_condition, y_topredict, params, tile_p=512))
    assert jnp.allclose(out2, ref, atol=5e-2, rtol=5e-2), "mismatch vs JAX reference"

    print("KERNEL_OK")
</pallas_src>

<mosaic_0001>
module attributes {stable_mosaic.version = 11 : i64} {
  func.func @entropy_kernel(%arg0: i32, %arg1: memref<16x4096xbf16, #tpu.memory_space<vmem>>, %arg2: memref<1x4096xf32, #tpu.memory_space<vmem>>, %arg3: memref<24x16xbf16, #tpu.memory_space<vmem>>, %arg4: memref<24x1xf32, #tpu.memory_space<vmem>>, %arg5: memref<24x24xf32, #tpu.memory_space<vmem>>, %arg6: memref<24x1xf32, #tpu.memory_space<vmem>>, %arg7: memref<24x24xf32, #tpu.memory_space<vmem>>, %arg8: memref<24x1xf32, #tpu.memory_space<vmem>>, %arg9: memref<1x4096xf32, #tpu.memory_space<vmem>>) attributes {dimension_semantics = [#tpu.dimension_semantics<parallel>], iteration_bounds = array<i64: 1>, scalar_prefetch = 0 : i64, scratch_operands = 0 : i64, tpu.core_type = #tpu.core_type<tc>, window_params = [{transform_indices = @transform_0, window_bounds = array<i64: 16, 4096>}, {transform_indices = @transform_1, window_bounds = array<i64: 1, 4096>}, {pipeline_mode = #tpu.pipeline_mode<synchronous>, transform_indices = @transform_2, window_bounds = array<i64: 24, 16>}, {pipeline_mode = #tpu.pipeline_mode<synchronous>, transform_indices = @transform_3, window_bounds = array<i64: 24, 1>}, {pipeline_mode = #tpu.pipeline_mode<synchronous>, transform_indices = @transform_4, window_bounds = array<i64: 24, 24>}, {pipeline_mode = #tpu.pipeline_mode<synchronous>, transform_indices = @transform_5, window_bounds = array<i64: 24, 1>}, {pipeline_mode = #tpu.pipeline_mode<synchronous>, transform_indices = @transform_6, window_bounds = array<i64: 24, 24>}, {pipeline_mode = #tpu.pipeline_mode<synchronous>, transform_indices = @transform_7, window_bounds = array<i64: 24, 1>}, {transform_indices = @transform_8, window_bounds = array<i64: 1, 4096>}]} {
    %c0 = arith.constant 0 : index
    %c0_0 = arith.constant 0 : index
    %0 = vector.load %arg3[%c0, %c0_0] : memref<24x16xbf16, #tpu.memory_space<vmem>>, vector<24x16xbf16>
    %c0_1 = arith.constant 0 : index
    %c0_2 = arith.constant 0 : index
    %1 = vector.load %arg4[%c0_1, %c0_2] : memref<24x1xf32, #tpu.memory_space<vmem>>, vector<24x1xf32>
    %c0_3 = arith.constant 0 : index
    %c0_4 = arith.constant 0 : index
    %2 = vector.load %arg5[%c0_3, %c0_4] : memref<24x24xf32, #tpu.memory_space<vmem>>, vector<24x24xf32>
    %c0_5 = arith.constant 0 : index
    %c0_6 = arith.constant 0 : index
    %3 = vector.load %arg6[%c0_5, %c0_6] : memref<24x1xf32, #tpu.memory_space<vmem>>, vector<24x1xf32>
    %c0_7 = arith.constant 0 : index
    %c0_8 = arith.constant 0 : index
    %4 = vector.load %arg7[%c0_7, %c0_8] : memref<24x24xf32, #tpu.memory_space<vmem>>, vector<24x24xf32>
    %c0_9 = arith.constant 0 : index
    %c0_10 = arith.constant 0 : index
    %5 = vector.load %arg8[%c0_9, %c0_10] : memref<24x1xf32, #tpu.memory_space<vmem>>, vector<24x1xf32>
    %c0_i32 = arith.constant 0 : i32
    %c512_i32 = arith.constant 512 : i32
    %6 = arith.muli %c0_i32, %c512_i32 : i32
    %7 = tpu.assume_multiple %6, 128 : i32
    %c0_11 = arith.constant 0 : index
    %8 = arith.index_cast %7 : i32 to index
    %9 = vector.load %arg1[%c0_11, %8] : memref<16x4096xbf16, #tpu.memory_space<vmem>>, vector<16x512xbf16>
    %c0_12 = arith.constant 0 : index
    %10 = arith.index_cast %7 : i32 to index
    %11 = vector.load %arg2[%c0_12, %10] : memref<1x4096xf32, #tpu.memory_space<vmem>>, vector<1x512xf32>
    %cst = arith.constant dense<0.000000e+00> : vector<24x512xf32>
    %12 = tpu.matmul %0, %9, %cst {dimension_numbers = #tpu.dot_dimension_numbers<[1], [0], [0], [1], [0, 0, 1, 1], [], []>} : vector<24x16xbf16>, vector<16x512xbf16>, vector<24x512xf32> -> vector<24x512xf32>
    %13 = vector.broadcast %1 : vector<24x1xf32> to vector<24x512xf32>
    %14 = arith.addf %12, %13 : vector<24x512xf32>
    %cst_13 = arith.constant 0.000000e+00 : f32
    %15 = vector.broadcast %cst_13 : f32 to vector<24x512xf32>
    %16 = arith.cmpf ogt, %14, %15 : vector<24x512xf32>
    %cst_14 = arith.constant 0.00999999977 : f32
    %17 = vector.broadcast %cst_14 : f32 to vector<24x512xf32>
    %18 = arith.mulf %17, %14 : vector<24x512xf32>
    %19 = arith.select %16, %14, %18 : vector<24x512xi1>, vector<24x512xf32>
    %cst_15 = arith.constant dense<0.000000e+00> : vector<24x512xf32>
    %20 = tpu.matmul %2, %19, %cst_15 {dimension_numbers = #tpu.dot_dimension_numbers<[1], [0], [0], [1], [0, 0, 1, 1], [], []>} : vector<24x24xf32>, vector<24x512xf32>, vector<24x512xf32> -> vector<24x512xf32>
    %21 = vector.broadcast %3 : vector<24x1xf32> to vector<24x512xf32>
    %22 = arith.addf %20, %21 : vector<24x512xf32>
    %cst_16 = arith.constant 0.000000e+00 : f32
    %23 = vector.broadcast %cst_16 : f32 to vector<24x512xf32>
    %24 = arith.cmpf ogt, %22, %23 : vector<24x512xf32>
    %cst_17 = arith.constant 0.00999999977 : f32
    %25 = vector.broadcast %cst_17 : f32 to vector<24x512xf32>
    %26 = arith.mulf %25, %22 : vector<24x512xf32>
    %27 = arith.select %24, %22, %26 : vector<24x512xi1>, vector<24x512xf32>
    %cst_18 = arith.constant dense<0.000000e+00> : vector<24x512xf32>
    %28 = tpu.matmul %4, %27, %cst_18 {dimension_numbers = #tpu.dot_dimension_numbers<[1], [0], [0], [1], [0, 0, 1, 1], [], []>} : vector<24x24xf32>, vector<24x512xf32>, vector<24x512xf32> -> vector<24x512xf32>
    %29 = vector.broadcast %5 : vector<24x1xf32> to vector<24x512xf32>
    %30 = arith.addf %28, %29 : vector<24x512xf32>
    %31 = vector.extract_strided_slice %30 {offsets = [0, 0], sizes = [3, 512], strides = [1, 1]} : vector<24x512xf32> to vector<3x512xf32>
    %32 = math.absf %31 : vector<3x512xf32>
    %cst_19 = arith.constant 0.00999999977 : f32
    %33 = vector.broadcast %cst_19 : f32 to vector<3x512xf32>
    %34 = arith.maximumf %32, %33 : vector<3x512xf32>
    %35 = vector.extract_strided_slice %30 {offsets = [8, 0], sizes = [3, 512], strides = [1, 1]} : vector<24x512xf32> to vector<3x512xf32>
    %36 = vector.extract_strided_slice %30 {offsets = [16, 0], sizes = [3, 512], strides = [1, 1]} : vector<24x512xf32> to vector<3x512xf32>
    %37 = vector.extract_strided_slice %36 {offsets = [0, 0], sizes = [1, 512], strides = [1, 1]} : vector<3x512xf32> to vector<1x512xf32>
    %38 = vector.extract_strided_slice %36 {offsets = [1, 0], sizes = [1, 512], strides = [1, 1]} : vector<3x512xf32> to vector<1x512xf32>
    %39 = arith.maximumf %37, %38 : vector<1x512xf32>
    %40 = vector.extract_strided_slice %36 {offsets = [2, 0], sizes = [1, 512], strides = [1, 1]} : vector<3x512xf32> to vector<1x512xf32>
    %41 = arith.maximumf %39, %40 : vector<1x512xf32>
    %42 = vector.broadcast %41 : vector<1x512xf32> to vector<3x512xf32>
    %43 = arith.subf %36, %42 : vector<3x512xf32>
    %44 = math.exp %43 : vector<3x512xf32>
    %45 = vector.extract_strided_slice %44 {offsets = [0, 0], sizes = [1, 512], strides = [1, 1]} : vector<3x512xf32> to vector<1x512xf32>
    %46 = vector.extract_strided_slice %44 {offsets = [1, 0], sizes = [1, 512], strides = [1, 1]} : vector<3x512xf32> to vector<1x512xf32>
    %47 = arith.addf %45, %46 : vector<1x512xf32>
    %48 = vector.extract_strided_slice %44 {offsets = [2, 0], sizes = [1, 512], strides = [1, 1]} : vector<3x512xf32> to vector<1x512xf32>
    %49 = arith.addf %47, %48 : vector<1x512xf32>
    %50 = tpu.reciprocal %49 {approx = true} : vector<1x512xf32> -> vector<1x512xf32>
    %51 = vector.broadcast %50 : vector<1x512xf32> to vector<3x512xf32>
    %52 = arith.mulf %44, %51 : vector<3x512xf32>
    %53 = tpu.reciprocal %34 {approx = true} : vector<3x512xf32> -> vector<3x512xf32>
    %cst_20 = arith.constant 0.707106769 : f32
    %54 = vector.broadcast %cst_20 : f32 to vector<3x512xf32>
    %55 = arith.mulf %54, %53 : vector<3x512xf32>
    %56 = vector.broadcast %11 : vector<1x512xf32> to vector<3x512xf32>
    %57 = arith.subf %56, %35 : vector<3x512xf32>
    %58 = arith.mulf %57, %55 : vector<3x512xf32>
    %cst_21 = arith.constant 0.00196078443 : f32
    %59 = vector.broadcast %cst_21 : f32 to vector<3x512xf32>
    %60 = arith.mulf %59, %55 : vector<3x512xf32>
    %61 = arith.subf %60, %58 : vector<3x512xf32>
    %62 = math.erf %61 : vector<3x512xf32>
    %cst_22 = arith.constant 0.000000e+00 : f32
    %63 = vector.broadcast %cst_22 : f32 to vector<3x512xf32>
    %64 = arith.subf %63, %60 : vector<3x512xf32>
    %65 = arith.subf %64, %58 : vector<3x512xf32>
    %66 = math.erf %65 : vector<3x512xf32>
    %67 = arith.subf %62, %66 : vector<3x512xf32>
    %68 = arith.mulf %52, %67 : vector<3x512xf32>
    %69 = vector.extract_strided_slice %68 {offsets = [0, 0], sizes = [1, 512], strides = [1, 1]} : vector<3x512xf32> to vector<1x512xf32>
    %70 = vector.extract_strided_slice %68 {offsets = [1, 0], sizes = [1, 512], strides = [1, 1]} : vector<3x512xf32> to vector<1x512xf32>
    %71 = arith.addf %69, %70 : vector<1x512xf32>
    %72 = vector.extract_strided_slice %68 {offsets = [2, 0], sizes = [1, 512], strides = [1, 1]} : vector<3x512xf32> to vector<1x512xf32>
    %73 = arith.addf %71, %72 : vector<1x512xf32>
    %cst_23 = arith.constant 5.000000e-01 : f32
    %74 = vector.broadcast %cst_23 : f32 to vector<1x512xf32>
    %75 = arith.mulf %74, %73 : vector<1x512xf32>
    %cst_24 = arith.constant 9.99999971E-10 : f32
    %76 = vector.broadcast %cst_24 : f32 to vector<1x512xf32>
    %77 = arith.maximumf %75, %76 : vector<1x512xf32>
    %78 = math.log %77 : vector<1x512xf32>
    %cst_25 = arith.constant 2.000000e+00 : f32
    %79 = math.log %cst_25 : f32
    %80 = vector.broadcast %79 : f32 to vector<1x512xf32>
    %81 = arith.divf %78, %80 : vector<1x512xf32>
    %cst_26 = arith.constant 0.000000e+00 : f32
    %82 = vector.broadcast %cst_26 : f32 to vector<1x512xf32>
    %83 = arith.subf %82, %81 : vector<1x512xf32>
    %c0_27 = arith.constant 0 : index
    %84 = arith.index_cast %7 : i32 to index
    %85 = vector.load %arg9[%c0_27, %84] : memref<1x4096xf32, #tpu.memory_space<vmem>>, vector<1x512xf32>
    tpu.vector_store %arg9[%c0_27, %84], %83 {strides = array<i32>} : memref<1x4096xf32, #tpu.memory_space<vmem>>, vector<1x512xf32>,
    %c1_i32 = arith.constant 1 : i32
    %c512_i32_28 = arith.constant 512 : i32
    %86 = arith.muli %c1_i32, %c512_i32_28 : i32
    %87 = tpu.assume_multiple %86, 128 : i32
    %c0_29 = arith.constant 0 : index
    %88 = arith.index_cast %87 : i32 to index
    %89 = vector.load %arg1[%c0_29, %88] : memref<16x4096xbf16, #tpu.memory_space<vmem>>, vector<16x512xbf16>
    %c0_30 = arith.constant 0 : index
    %90 = arith.index_cast %87 : i32 to index
    %91 = vector.load %arg2[%c0_30, %90] : memref<1x4096xf32, #tpu.memory_space<vmem>>, vector<1x512xf32>
    %cst_31 = arith.constant dense<0.000000e+00> : vector<24x512xf32>
    %92 = tpu.matmul %0, %89, %cst_31 {dimension_numbers = #tpu.dot_dimension_numbers<[1], [0], [0], [1], [0, 0, 1, 1], [], []>} : vector<24x16xbf16>, vector<16x512xbf16>, vector<24x512xf32> -> vector<24x512xf32>
    %93 = vector.broadcast %1 : vector<24x1xf32> to vector<24x512xf32>
    %94 = arith.addf %92, %93 : vector<24x512xf32>
    %cst_32 = arith.constant 0.000000e+00 : f32
    %95 = vector.broadcast %cst_32 : f32 to vector<24x512xf32>
    %96 = arith.cmpf ogt, %94, %95 : vector<24x512xf32>
    %cst_33 = arith.constant 0.00999999977 : f32
    %97 = vector.broadcast %cst_33 : f32 to vector<24x512xf32>
    %98 = arith.mulf %97, %94 : vector<24x512xf32>
    %99 = arith.select %96, %94, %98 : vector<24x512xi1>, vector<24x512xf32>
    %cst_34 = arith.constant dense<0.000000e+00> : vector<24x512xf32>
    %100 = tpu.matmul %2, %99, %cst_34 {dimension_numbers = #tpu.dot_dimension_numbers<[1], [0], [0], [1], [0, 0, 1, 1], [], []>} : vector<24x24xf32>, vector<24x512xf32>, vector<24x512xf32> -> vector<24x512xf32>
    %101 = vector.broadcast %3 : vector<24x1xf32> to vector<24x512xf32>
    %102 = arith.addf %100, %101 : vector<24x512xf32>
    %cst_35 = arith.constant 0.000000e+00 : f32
    %103 = vector.broadcast %cst_35 : f32 to vector<24x512xf32>
    %104 = arith.cmpf ogt, %102, %103 : vector<24x512xf32>
    %cst_36 = arith.constant 0.00999999977 : f32
    %105 = vector.broadcast %cst_36 : f32 to vector<24x512xf32>
    %106 = arith.mulf %105, %102 : vector<24x512xf32>
    %107 = arith.select %104, %102, %106 : vector<24x512xi1>, vector<24x512xf32>
    %cst_37 = arith.constant dense<0.000000e+00> : vector<24x512xf32>
    %108 = tpu.matmul %4, %107, %cst_37 {dimension_numbers = #tpu.dot_dimension_numbers<[1], [0], [0], [1], [0, 0, 1, 1], [], []>} : vector<24x24xf32>, vector<24x512xf32>, vector<24x512xf32> -> vector<24x512xf32>
    %109 = vector.broadcast %5 : vector<24x1xf32> to vector<24x512xf32>
    %110 = arith.addf %108, %109 : vector<24x512xf32>
    %111 = vector.extract_strided_slice %110 {offsets = [0, 0], sizes = [3, 512], strides = [1, 1]} : vector<24x512xf32> to vector<3x512xf32>
    %112 = math.absf %111 : vector<3x512xf32>
    %cst_38 = arith.constant 0.00999999977 : f32
    %113 = vector.broadcast %cst_38 : f32 to vector<3x512xf32>
    %114 = arith.maximumf %112, %113 : vector<3x512xf32>
    %115 = vector.extract_strided_slice %110 {offsets = [8, 0], sizes = [3, 512], strides = [1, 1]} : vector<24x512xf32> to vector<3x512xf32>
    %116 = vector.extract_strided_slice %110 {offsets = [16, 0], sizes = [3, 512], strides = [1, 1]} : vector<24x512xf32> to vector<3x512xf32>
    %117 = vector.extract_strided_slice %116 {offsets = [0, 0], sizes = [1, 512], strides = [1, 1]} : vector<3x512xf32> to vector<1x512xf32>
    %118 = vector.extract_strided_slice %116 {offsets = [1, 0], sizes = [1, 512], strides = [1, 1]} : vector<3x512xf32> to vector<1x512xf32>
    %119 = arith.maximumf %117, %118 : vector<1x512xf32>
    %120 = vector.extract_strided_slice %116 {offsets = [2, 0], sizes = [1, 512], strides = [1, 1]} : vector<3x512xf32> to vector<1x512xf32>
    %121 = arith.maximumf %119, %120 : vector<1x512xf32>
    %122 = vector.broadcast %121 : vector<1x512xf32> to vector<3x512xf32>
    %123 = arith.subf %116, %122 : vector<3x512xf32>
    %124 = math.exp %123 : vector<3x512xf32>
    %125 = vector.extract_strided_slice %124 {offsets = [0, 0], sizes = [1, 512], strides = [1, 1]} : vector<3x512xf32> to vector<1x512xf32>
    %126 = vector.extract_strided_slice %124 {offsets = [1, 0], sizes = [1, 512], strides = [1, 1]} : vector<3x512xf32> to vector<1x512xf32>
    %127 = arith.addf %125, %126 : vector<1x512xf32>
    %128 = vector.extract_strided_slice %124 {offsets = [2, 0], sizes = [1, 512], strides = [1, 1]} : vector<3x512xf32> to vector<1x512xf32>
    %129 = arith.addf %127, %128 : vector<1x512xf32>
    %130 = tpu.reciprocal %129 {approx = true} : vector<1x512xf32> -> vector<1x512xf32>
    %131 = vector.broadcast %130 : vector<1x512xf32> to vector<3x512xf32>
    %132 = arith.mulf %124, %131 : vector<3x512xf32>
    %133 = tpu.reciprocal %114 {approx = true} : vector<3x512xf32> -> vector<3x512xf32>
    %cst_39 = arith.constant 0.707106769 : f32
    %134 = vector.broadcast %cst_39 : f32 to vector<3x512xf32>
    %135 = arith.mulf %134, %133 : vector<3x512xf32>
    %136 = vector.broadcast %91 : vector<1x512xf32> to vector<3x512xf32>
    %137 = arith.subf %136, %115 : vector<3x512xf32>
    %138 = arith.mulf %137, %135 : vector<3x512xf32>
    %cst_40 = arith.constant 0.00196078443 : f32
    %139 = vector.broadcast %cst_40 : f32 to vector<3x512xf32>
    %140 = arith.mulf %139, %135 : vector<3x512xf32>
    %141 = arith.subf %140, %138 : vector<3x512xf32>
    %142 = math.erf %141 : vector<3x512xf32>
    %cst_41 = arith.constant 0.000000e+00 : f32
    %143 = vector.broadcast %cst_41 : f32 to vector<3x512xf32>
    %144 = arith.subf %143, %140 : vector<3x512xf32>
    %145 = arith.subf %144, %138 : vector<3x512xf32>
    %146 = math.erf %145 : vector<3x512xf32>
    %147 = arith.subf %142, %146 : vector<3x512xf32>
    %148 = arith.mulf %132, %147 : vector<3x512xf32>
    %149 = vector.extract_strided_slice %148 {offsets = [0, 0], sizes = [1, 512], strides = [1, 1]} : vector<3x512xf32> to vector<1x512xf32>
    %150 = vector.extract_strided_slice %148 {offsets = [1, 0], sizes = [1, 512], strides = [1, 1]} : vector<3x512xf32> to vector<1x512xf32>
    %151 = arith.addf %149, %150 : vector<1x512xf32>
    %152 = vector.extract_strided_slice %148 {offsets = [2, 0], sizes = [1, 512], strides = [1, 1]} : vector<3x512xf32> to vector<1x512xf32>
    %153 = arith.addf %151, %152 : vector<1x512xf32>
    %cst_42 = arith.constant 5.000000e-01 : f32
    %154 = vector.broadcast %cst_42 : f32 to vector<1x512xf32>
    %155 = arith.mulf %154, %153 : vector<1x512xf32>
    %cst_43 = arith.constant 9.99999971E-10 : f32
    %156 = vector.broadcast %cst_43 : f32 to vector<1x512xf32>
    %157 = arith.maximumf %155, %156 : vector<1x512xf32>
    %158 = math.log %157 : vector<1x512xf32>
    %cst_44 = arith.constant 2.000000e+00 : f32
    %159 = math.log %cst_44 : f32
    %160 = vector.broadcast %159 : f32 to vector<1x512xf32>
    %161 = arith.divf %158, %160 : vector<1x512xf32>
    %cst_45 = arith.constant 0.000000e+00 : f32
    %162 = vector.broadcast %cst_45 : f32 to vector<1x512xf32>
    %163 = arith.subf %162, %161 : vector<1x512xf32>
    %c0_46 = arith.constant 0 : index
    %164 = arith.index_cast %87 : i32 to index
    %165 = vector.load %arg9[%c0_46, %164] : memref<1x4096xf32, #tpu.memory_space<vmem>>, vector<1x512xf32>
    tpu.vector_store %arg9[%c0_46, %164], %163 {strides = array<i32>} : memref<1x4096xf32, #tpu.memory_space<vmem>>, vector<1x512xf32>,
    %c2_i32 = arith.constant 2 : i32
    %c512_i32_47 = arith.constant 512 : i32
    %166 = arith.muli %c2_i32, %c512_i32_47 : i32
    %167 = tpu.assume_multiple %166, 128 : i32
    %c0_48 = arith.constant 0 : index
    %168 = arith.index_cast %167 : i32 to index
    %169 = vector.load %arg1[%c0_48, %168] : memref<16x4096xbf16, #tpu.memory_space<vmem>>, vector<16x512xbf16>
    %c0_49 = arith.constant 0 : index
    %170 = arith.index_cast %167 : i32 to index
    %171 = vector.load %arg2[%c0_49, %170] : memref<1x4096xf32, #tpu.memory_space<vmem>>, vector<1x512xf32>
    %cst_50 = arith.constant dense<0.000000e+00> : vector<24x512xf32>
    %172 = tpu.matmul %0, %169, %cst_50 {dimension_numbers = #tpu.dot_dimension_numbers<[1], [0], [0], [1], [0, 0, 1, 1], [], []>} : vector<24x16xbf16>, vector<16x512xbf16>, vector<24x512xf32> -> vector<24x512xf32>
    %173 = vector.broadcast %1 : vector<24x1xf32> to vector<24x512xf32>
    %174 = arith.addf %172, %173 : vector<24x512xf32>
    %cst_51 = arith.constant 0.000000e+00 : f32
    %175 = vector.broadcast %cst_51 : f32 to vector<24x512xf32>
    %176 = arith.cmpf ogt, %174, %175 : vector<24x512xf32>
    %cst_52 = arith.constant 0.00999999977 : f32
    %177 = vector.broadcast %cst_52 : f32 to vector<24x512xf32>
    %178 = arith.mulf %177, %174 : vector<24x512xf32>
    %179 = arith.select %176, %174, %178 : vector<24x512xi1>, vector<24x512xf32>
    %cst_53 = arith.constant dense<0.000000e+00> : vector<24x512xf32>
    %180 = tpu.matmul %2, %179, %cst_53 {dimension_numbers = #tpu.dot_dimension_numbers<[1], [0], [0], [1], [0, 0, 1, 1], [], []>} : vector<24x24xf32>, vector<24x512xf32>, vector<24x512xf32> -> vector<24x512xf32>
    %181 = vector.broadcast %3 : vector<24x1xf32> to vector<24x512xf32>
    %182 = arith.addf %180, %181 : vector<24x512xf32>
    %cst_54 = arith.constant 0.000000e+00 : f32
    %183 = vector.broadcast %cst_54 : f32 to vector<24x512xf32>
    %184 = arith.cmpf ogt, %182, %183 : vector<24x512xf32>
    %cst_55 = arith.constant 0.00999999977 : f32
    %185 = vector.broadcast %cst_55 : f32 to vector<24x512xf32>
    %186 = arith.mulf %185, %182 : vector<24x512xf32>
    %187 = arith.select %184, %182, %186 : vector<24x512xi1>, vector<24x512xf32>
    %cst_56 = arith.constant dense<0.000000e+00> : vector<24x512xf32>
    %188 = tpu.matmul %4, %187, %cst_56 {dimension_numbers = #tpu.dot_dimension_numbers<[1], [0], [0], [1], [0, 0, 1, 1], [], []>} : vector<24x24xf32>, vector<24x512xf32>, vector<24x512xf32> -> vector<24x512xf32>
    %189 = vector.broadcast %5 : vector<24x1xf32> to vector<24x512xf32>
    %190 = arith.addf %188, %189 : vector<24x512xf32>
    %191 = vector.extract_strided_slice %190 {offsets = [0, 0], sizes = [3, 512], strides = [1, 1]} : vector<24x512xf32> to vector<3x512xf32>
    %192 = math.absf %191 : vector<3x512xf32>
    %cst_57 = arith.constant 0.00999999977 : f32
    %193 = vector.broadcast %cst_57 : f32 to vector<3x512xf32>
    %194 = arith.maximumf %192, %193 : vector<3x512xf32>
    %195 = vector.extract_strided_slice %190 {offsets = [8, 0], sizes = [3, 512], strides = [1, 1]} : vector<24x512xf32> to vector<3x512xf32>
    %196 = vector.extract_strided_slice %190 {offsets = [16, 0], sizes = [3, 512], strides = [1, 1]} : vector<24x512xf32> to vector<3x512xf32>
    %197 = vector.extract_strided_slice %196 {offsets = [0, 0], sizes = [1, 512], strides = [1, 1]} : vector<3x512xf32> to vector<1x512xf32>
    %198 = vector.extract_strided_slice %196 {offsets = [1, 0], sizes = [1, 512], strides = [1, 1]} : vector<3x512xf32> to vector<1x512xf32>
    %199 = arith.maximumf %197, %198 : vector<1x512xf32>
    %200 = vector.extract_strided_slice %196 {offsets = [2, 0], sizes = [1, 512], strides = [1, 1]} : vector<3x512xf32> to vector<1x512xf32>
    %201 = arith.maximumf %199, %200 : vector<1x512xf32>
    %202 = vector.broadcast %201 : vector<1x512xf32> to vector<3x512xf32>
    %203 = arith.subf %196, %202 : vector<3x512xf32>
    %204 = math.exp %203 : vector<3x512xf32>
    %205 = vector.extract_strided_slice %204 {offsets = [0, 0], sizes = [1, 512], strides = [1, 1]} : vector<3x512xf32> to vector<1x512xf32>
    %206 = vector.extract_strided_slice %204 {offsets = [1, 0], sizes = [1, 512], strides = [1, 1]} : vector<3x512xf32> to vector<1x512xf32>
    %207 = arith.addf %205, %206 : vector<1x512xf32>
    %208 = vector.extract_strided_slice %204 {offsets = [2, 0], sizes = [1, 512], strides = [1, 1]} : vector<3x512xf32> to vector<1x512xf32>
    %209 = arith.addf %207, %208 : vector<1x512xf32>
    %210 = tpu.reciprocal %209 {approx = true} : vector<1x512xf32> -> vector<1x512xf32>
    %211 = vector.broadcast %210 : vector<1x512xf32> to vector<3x512xf32>
    %212 = arith.mulf %204, %211 : vector<3x512xf32>
    %213 = tpu.reciprocal %194 {approx = true} : vector<3x512xf32> -> vector<3x512xf32>
    %cst_58 = arith.constant 0.707106769 : f32
    %214 = vector.broadcast %cst_58 : f32 to vector<3x512xf32>
    %215 = arith.mulf %214, %213 : vector<3x512xf32>
    %216 = vector.broadcast %171 : vector<1x512xf32> to vector<3x512xf32>
    %217 = arith.subf %216, %195 : vector<3x512xf32>
    %218 = arith.mulf %217, %215 : vector<3x512xf32>
    %cst_59 = arith.constant 0.00196078443 : f32
    %219 = vector.broadcast %cst_59 : f32 to vector<3x512xf32>
    %220 = arith.mulf %219, %215 : vector<3x512xf32>
    %221 = arith.subf %220, %218 : vector<3x512xf32>
    %222 = math.erf %221 : vector<3x512xf32>
    %cst_60 = arith.constant 0.000000e+00 : f32
    %223 = vector.broadcast %cst_60 : f32 to vector<3x512xf32>
    %224 = arith.subf %223, %220 : vector<3x512xf32>
    %225 = arith.subf %224, %218 : vector<3x512xf32>
    %226 = math.erf %225 : vector<3x512xf32>
    %227 = arith.subf %222, %226 : vector<3x512xf32>
    %228 = arith.mulf %212, %227 : vector<3x512xf32>
    %229 = vector.extract_strided_slice %228 {offsets = [0, 0], sizes = [1, 512], strides = [1, 1]} : vector<3x512xf32> to vector<1x512xf32>
    %230 = vector.extract_strided_slice %228 {offsets = [1, 0], sizes = [1, 512], strides = [1, 1]} : vector<3x512xf32> to vector<1x512xf32>
    %231 = arith.addf %229, %230 : vector<1x512xf32>
    %232 = vector.extract_strided_slice %228 {offsets = [2, 0], sizes = [1, 512], strides = [1, 1]} : vector<3x512xf32> to vector<1x512xf32>
    %233 = arith.addf %231, %232 : vector<1x512xf32>
    %cst_61 = arith.constant 5.000000e-01 : f32
    %234 = vector.broadcast %cst_61 : f32 to vector<1x512xf32>
    %235 = arith.mulf %234, %233 : vector<1x512xf32>
    %cst_62 = arith.constant 9.99999971E-10 : f32
    %236 = vector.broadcast %cst_62 : f32 to vector<1x512xf32>
    %237 = arith.maximumf %235, %236 : vector<1x512xf32>
    %238 = math.log %237 : vector<1x512xf32>
    %cst_63 = arith.constant 2.000000e+00 : f32
    %239 = math.log %cst_63 : f32
    %240 = vector.broadcast %239 : f32 to vector<1x512xf32>
    %241 = arith.divf %238, %240 : vector<1x512xf32>
    %cst_64 = arith.constant 0.000000e+00 : f32
    %242 = vector.broadcast %cst_64 : f32 to vector<1x512xf32>
    %243 = arith.subf %242, %241 : vector<1x512xf32>
    %c0_65 = arith.constant 0 : index
    %244 = arith.index_cast %167 : i32 to index
    %245 = vector.load %arg9[%c0_65, %244] : memref<1x4096xf32, #tpu.memory_space<vmem>>, vector<1x512xf32>
    tpu.vector_store %arg9[%c0_65, %244], %243 {strides = array<i32>} : memref<1x4096xf32, #tpu.memory_space<vmem>>, vector<1x512xf32>,
    %c3_i32 = arith.constant 3 : i32
    %c512_i32_66 = arith.constant 512 : i32
    %246 = arith.muli %c3_i32, %c512_i32_66 : i32
    %247 = tpu.assume_multiple %246, 128 : i32
    %c0_67 = arith.constant 0 : index
    %248 = arith.index_cast %247 : i32 to index
    %249 = vector.load %arg1[%c0_67, %248] : memref<16x4096xbf16, #tpu.memory_space<vmem>>, vector<16x512xbf16>
    %c0_68 = arith.constant 0 : index
    %250 = arith.index_cast %247 : i32 to index
    %251 = vector.load %arg2[%c0_68, %250] : memref<1x4096xf32, #tpu.memory_space<vmem>>, vector<1x512xf32>
    %cst_69 = arith.constant dense<0.000000e+00> : vector<24x512xf32>
    %252 = tpu.matmul %0, %249, %cst_69 {dimension_numbers = #tpu.dot_dimension_numbers<[1], [0], [0], [1], [0, 0, 1, 1], [], []>} : vector<24x16xbf16>, vector<16x512xbf16>, vector<24x512xf32> -> vector<24x512xf32>
    %253 = vector.broadcast %1 : vector<24x1xf32> to vector<24x512xf32>
    %254 = arith.addf %252, %253 : vector<24x512xf32>
    %cst_70 = arith.constant 0.000000e+00 : f32
    %255 = vector.broadcast %cst_70 : f32 to vector<24x512xf32>
    %256 = arith.cmpf ogt, %254, %255 : vector<24x512xf32>
    %cst_71 = arith.constant 0.00999999977 : f32
    %257 = vector.broadcast %cst_71 : f32 to vector<24x512xf32>
    %258 = arith.mulf %257, %254 : vector<24x512xf32>
    %259 = arith.select %256, %254, %258 : vector<24x512xi1>, vector<24x512xf32>
    %cst_72 = arith.constant dense<0.000000e+00> : vector<24x512xf32>
    %260 = tpu.matmul %2, %259, %cst_72 {dimension_numbers = #tpu.dot_dimension_numbers<[1], [0], [0], [1], [0, 0, 1, 1], [], []>} : vector<24x24xf32>, vector<24x512xf32>, vector<24x512xf32> -> vector<24x512xf32>
    %261 = vector.broadcast %3 : vector<24x1xf32> to vector<24x512xf32>
    %262 = arith.addf %260, %261 : vector<24x512xf32>
    %cst_73 = arith.constant 0.000000e+00 : f32
    %263 = vector.broadcast %cst_73 : f32 to vector<24x512xf32>
    %264 = arith.cmpf ogt, %262, %263 : vector<24x512xf32>
    %cst_74 = arith.constant 0.00999999977 : f32
    %265 = vector.broadcast %cst_74 : f32 to vector<24x512xf32>
    %266 = arith.mulf %265, %262 : vector<24x512xf32>
    %267 = arith.select %264, %262, %266 : vector<24x512xi1>, vector<24x512xf32>
    %cst_75 = arith.constant dense<0.000000e+00> : vector<24x512xf32>
    %268 = tpu.matmul %4, %267, %cst_75 {dimension_numbers = #tpu.dot_dimension_numbers<[1], [0], [0], [1], [0, 0, 1, 1], [], []>} : vector<24x24xf32>, vector<24x512xf32>, vector<24x512xf32> -> vector<24x512xf32>
    %269 = vector.broadcast %5 : vector<24x1xf32> to vector<24x512xf32>
    %270 = arith.addf %268, %269 : vector<24x512xf32>
    %271 = vector.extract_strided_slice %270 {offsets = [0, 0], sizes = [3, 512], strides = [1, 1]} : vector<24x512xf32> to vector<3x512xf32>
    %272 = math.absf %271 : vector<3x512xf32>
    %cst_76 = arith.constant 0.00999999977 : f32
    %273 = vector.broadcast %cst_76 : f32 to vector<3x512xf32>
    %274 = arith.maximumf %272, %273 : vector<3x512xf32>
    %275 = vector.extract_strided_slice %270 {offsets = [8, 0], sizes = [3, 512], strides = [1, 1]} : vector<24x512xf32> to vector<3x512xf32>
    %276 = vector.extract_strided_slice %270 {offsets = [16, 0], sizes = [3, 512], strides = [1, 1]} : vector<24x512xf32> to vector<3x512xf32>
    %277 = vector.extract_strided_slice %276 {offsets = [0, 0], sizes = [1, 512], strides = [1, 1]} : vector<3x512xf32> to vector<1x512xf32>
    %278 = vector.extract_strided_slice %276 {offsets = [1, 0], sizes = [1, 512], strides = [1, 1]} : vector<3x512xf32> to vector<1x512xf32>
    %279 = arith.maximumf %277, %278 : vector<1x512xf32>
    %280 = vector.extract_strided_slice %276 {offsets = [2, 0], sizes = [1, 512], strides = [1, 1]} : vector<3x512xf32> to vector<1x512xf32>
    %281 = arith.maximumf %279, %280 : vector<1x512xf32>
    %282 = vector.broadcast %281 : vector<1x512xf32> to vector<3x512xf32>
    %283 = arith.subf %276, %282 : vector<3x512xf32>
    %284 = math.exp %283 : vector<3x512xf32>
    %285 = vector.extract_strided_slice %284 {offsets = [0, 0], sizes = [1, 512], strides = [1, 1]} : vector<3x512xf32> to vector<1x512xf32>
    %286 = vector.extract_strided_slice %284 {offsets = [1, 0], sizes = [1, 512], strides = [1, 1]} : vector<3x512xf32> to vector<1x512xf32>
    %287 = arith.addf %285, %286 : vector<1x512xf32>
    %288 = vector.extract_strided_slice %284 {offsets = [2, 0], sizes = [1, 512], strides = [1, 1]} : vector<3x512xf32> to vector<1x512xf32>
    %289 = arith.addf %287, %288 : vector<1x512xf32>
    %290 = tpu.reciprocal %289 {approx = true} : vector<1x512xf32> -> vector<1x512xf32>
    %291 = vector.broadcast %290 : vector<1x512xf32> to vector<3x512xf32>
    %292 = arith.mulf %284, %291 : vector<3x512xf32>
    %293 = tpu.reciprocal %274 {approx = true} : vector<3x512xf32> -> vector<3x512xf32>
    %cst_77 = arith.constant 0.707106769 : f32
    %294 = vector.broadcast %cst_77 : f32 to vector<3x512xf32>
    %295 = arith.mulf %294, %293 : vector<3x512xf32>
    %296 = vector.broadcast %251 : vector<1x512xf32> to vector<3x512xf32>
    %297 = arith.subf %296, %275 : vector<3x512xf32>
    %298 = arith.mulf %297, %295 : vector<3x512xf32>
    %cst_78 = arith.constant 0.00196078443 : f32
    %299 = vector.broadcast %cst_78 : f32 to vector<3x512xf32>
    %300 = arith.mulf %299, %295 : vector<3x512xf32>
    %301 = arith.subf %300, %298 : vector<3x512xf32>
    %302 = math.erf %301 : vector<3x512xf32>
    %cst_79 = arith.constant 0.000000e+00 : f32
    %303 = vector.broadcast %cst_79 : f32 to vector<3x512xf32>
    %304 = arith.subf %303, %300 : vector<3x512xf32>
    %305 = arith.subf %304, %298 : vector<3x512xf32>
    %306 = math.erf %305 : vector<3x512xf32>
    %307 = arith.subf %302, %306 : vector<3x512xf32>
    %308 = arith.mulf %292, %307 : vector<3x512xf32>
    %309 = vector.extract_strided_slice %308 {offsets = [0, 0], sizes = [1, 512], strides = [1, 1]} : vector<3x512xf32> to vector<1x512xf32>
    %310 = vector.extract_strided_slice %308 {offsets = [1, 0], sizes = [1, 512], strides = [1, 1]} : vector<3x512xf32> to vector<1x512xf32>
    %311 = arith.addf %309, %310 : vector<1x512xf32>
    %312 = vector.extract_strided_slice %308 {offsets = [2, 0], sizes = [1, 512], strides = [1, 1]} : vector<3x512xf32> to vector<1x512xf32>
    %313 = arith.addf %311, %312 : vector<1x512xf32>
    %cst_80 = arith.constant 5.000000e-01 : f32
    %314 = vector.broadcast %cst_80 : f32 to vector<1x512xf32>
    %315 = arith.mulf %314, %313 : vector<1x512xf32>
    %cst_81 = arith.constant 9.99999971E-10 : f32
    %316 = vector.broadcast %cst_81 : f32 to vector<1x512xf32>
    %317 = arith.maximumf %315, %316 : vector<1x512xf32>
    %318 = math.log %317 : vector<1x512xf32>
    %cst_82 = arith.constant 2.000000e+00 : f32
    %319 = math.log %cst_82 : f32
    %320 = vector.broadcast %319 : f32 to vector<1x512xf32>
    %321 = arith.divf %318, %320 : vector<1x512xf32>
    %cst_83 = arith.constant 0.000000e+00 : f32
    %322 = vector.broadcast %cst_83 : f32 to vector<1x512xf32>
    %323 = arith.subf %322, %321 : vector<1x512xf32>
    %c0_84 = arith.constant 0 : index
    %324 = arith.index_cast %247 : i32 to index
    %325 = vector.load %arg9[%c0_84, %324] : memref<1x4096xf32, #tpu.memory_space<vmem>>, vector<1x512xf32>
    tpu.vector_store %arg9[%c0_84, %324], %323 {strides = array<i32>} : memref<1x4096xf32, #tpu.memory_space<vmem>>, vector<1x512xf32>,
    %c4_i32 = arith.constant 4 : i32
    %c512_i32_85 = arith.constant 512 : i32
    %326 = arith.muli %c4_i32, %c512_i32_85 : i32
    %327 = tpu.assume_multiple %326, 128 : i32
    %c0_86 = arith.constant 0 : index
    %328 = arith.index_cast %327 : i32 to index
    %329 = vector.load %arg1[%c0_86, %328] : memref<16x4096xbf16, #tpu.memory_space<vmem>>, vector<16x512xbf16>
    %c0_87 = arith.constant 0 : index
    %330 = arith.index_cast %327 : i32 to index
    %331 = vector.load %arg2[%c0_87, %330] : memref<1x4096xf32, #tpu.memory_space<vmem>>, vector<1x512xf32>
    %cst_88 = arith.constant dense<0.000000e+00> : vector<24x512xf32>
    %332 = tpu.matmul %0, %329, %cst_88 {dimension_numbers = #tpu.dot_dimension_numbers<[1], [0], [0], [1], [0, 0, 1, 1], [], []>} : vector<24x16xbf16>, vector<16x512xbf16>, vector<24x512xf32> -> vector<24x512xf32>
    %333 = vector.broadcast %1 : vector<24x1xf32> to vector<24x512xf32>
    %334 = arith.addf %332, %333 : vector<24x512xf32>
    %cst_89 = arith.constant 0.000000e+00 : f32
    %335 = vector.broadcast %cst_89 : f32 to vector<24x512xf32>
    %336 = arith.cmpf ogt, %334, %335 : vector<24x512xf32>
    %cst_90 = arith.constant 0.00999999977 : f32
    %337 = vector.broadcast %cst_90 : f32 to vector<24x512xf32>
    %338 = arith.mulf %337, %334 : vector<24x512xf32>
    %339 = arith.select %336, %334, %338 : vector<24x512xi1>, vector<24x512xf32>
    %cst_91 = arith.constant dense<0.000000e+00> : vector<24x512xf32>
    %340 = tpu.matmul %2, %339, %cst_91 {dimension_numbers = #tpu.dot_dimension_numbers<[1], [0], [0], [1], [0, 0, 1, 1], [], []>} : vector<24x24xf32>, vector<24x512xf32>, vector<24x512xf32> -> vector<24x512xf32>
    %341 = vector.broadcast %3 : vector<24x1xf32> to vector<24x512xf32>
    %342 = arith.addf %340, %341 : vector<24x512xf32>
    %cst_92 = arith.constant 0.000000e+00 : f32
    %343 = vector.broadcast %cst_92 : f32 to vector<24x512xf32>
    %344 = arith.cmpf ogt, %342, %343 : vector<24x512xf32>
    %cst_93 = arith.constant 0.00999999977 : f32
    %345 = vector.broadcast %cst_93 : f32 to vector<24x512xf32>
    %346 = arith.mulf %345, %342 : vector<24x512xf32>
    %347 = arith.select %344, %342, %346 : vector<24x512xi1>, vector<24x512xf32>
    %cst_94 = arith.constant dense<0.000000e+00> : vector<24x512xf32>
    %348 = tpu.matmul %4, %347, %cst_94 {dimension_numbers = #tpu.dot_dimension_numbers<[1], [0], [0], [1], [0, 0, 1, 1], [], []>} : vector<24x24xf32>, vector<24x512xf32>, vector<24x512xf32> -> vector<24x512xf32>
    %349 = vector.broadcast %5 : vector<24x1xf32> to vector<24x512xf32>
    %350 = arith.addf %348, %349 : vector<24x512xf32>
    %351 = vector.extract_strided_slice %350 {offsets = [0, 0], sizes = [3, 512], strides = [1, 1]} : vector<24x512xf32> to vector<3x512xf32>
    %352 = math.absf %351 : vector<3x512xf32>
    %cst_95 = arith.constant 0.00999999977 : f32
    %353 = vector.broadcast %cst_95 : f32 to vector<3x512xf32>
    %354 = arith.maximumf %352, %353 : vector<3x512xf32>
    %355 = vector.extract_strided_slice %350 {offsets = [8, 0], sizes = [3, 512], strides = [1, 1]} : vector<24x512xf32> to vector<3x512xf32>
    %356 = vector.extract_strided_slice %350 {offsets = [16, 0], sizes = [3, 512], strides = [1, 1]} : vector<24x512xf32> to vector<3x512xf32>
    %357 = vector.extract_strided_slice %356 {offsets = [0, 0], sizes = [1, 512], strides = [1, 1]} : vector<3x512xf32> to vector<1x512xf32>
    %358 = vector.extract_strided_slice %356 {offsets = [1, 0], sizes = [1, 512], strides = [1, 1]} : vector<3x512xf32> to vector<1x512xf32>
    %359 = arith.maximumf %357, %358 : vector<1x512xf32>
    %360 = vector.extract_strided_slice %356 {offsets = [2, 0], sizes = [1, 512], strides = [1, 1]} : vector<3x512xf32> to vector<1x512xf32>
    %361 = arith.maximumf %359, %360 : vector<1x512xf32>
    %362 = vector.broadcast %361 : vector<1x512xf32> to vector<3x512xf32>
    %363 = arith.subf %356, %362 : vector<3x512xf32>
    %364 = math.exp %363 : vector<3x512xf32>
    %365 = vector.extract_strided_slice %364 {offsets = [0, 0], sizes = [1, 512], strides = [1, 1]} : vector<3x512xf32> to vector<1x512xf32>
    %366 = vector.extract_strided_slice %364 {offsets = [1, 0], sizes = [1, 512], strides = [1, 1]} : vector<3x512xf32> to vector<1x512xf32>
    %367 = arith.addf %365, %366 : vector<1x512xf32>
    %368 = vector.extract_strided_slice %364 {offsets = [2, 0], sizes = [1, 512], strides = [1, 1]} : vector<3x512xf32> to vector<1x512xf32>
    %369 = arith.addf %367, %368 : vector<1x512xf32>
    %370 = tpu.reciprocal %369 {approx = true} : vector<1x512xf32> -> vector<1x512xf32>
    %371 = vector.broadcast %370 : vector<1x512xf32> to vector<3x512xf32>
    %372 = arith.mulf %364, %371 : vector<3x512xf32>
    %373 = tpu.reciprocal %354 {approx = true} : vector<3x512xf32> -> vector<3x512xf32>
    %cst_96 = arith.constant 0.707106769 : f32
    %374 = vector.broadcast %cst_96 : f32 to vector<3x512xf32>
    %375 = arith.mulf %374, %373 : vector<3x512xf32>
    %376 = vector.broadcast %331 : vector<1x512xf32> to vector<3x512xf32>
    %377 = arith.subf %376, %355 : vector<3x512xf32>
    %378 = arith.mulf %377, %375 : vector<3x512xf32>
    %cst_97 = arith.constant 0.00196078443 : f32
    %379 = vector.broadcast %cst_97 : f32 to vector<3x512xf32>
    %380 = arith.mulf %379, %375 : vector<3x512xf32>
    %381 = arith.subf %380, %378 : vector<3x512xf32>
    %382 = math.erf %381 : vector<3x512xf32>
    %cst_98 = arith.constant 0.000000e+00 : f32
    %383 = vector.broadcast %cst_98 : f32 to vector<3x512xf32>
    %384 = arith.subf %383, %380 : vector<3x512xf32>
    %385 = arith.subf %384, %378 : vector<3x512xf32>
    %386 = math.erf %385 : vector<3x512xf32>
    %387 = arith.subf %382, %386 : vector<3x512xf32>
    %388 = arith.mulf %372, %387 : vector<3x512xf32>
    %389 = vector.extract_strided_slice %388 {offsets = [0, 0], sizes = [1, 512], strides = [1, 1]} : vector<3x512xf32> to vector<1x512xf32>
    %390 = vector.extract_strided_slice %388 {offsets = [1, 0], sizes = [1, 512], strides = [1, 1]} : vector<3x512xf32> to vector<1x512xf32>
    %391 = arith.addf %389, %390 : vector<1x512xf32>
    %392 = vector.extract_strided_slice %388 {offsets = [2, 0], sizes = [1, 512], strides = [1, 1]} : vector<3x512xf32> to vector<1x512xf32>
    %393 = arith.addf %391, %392 : vector<1x512xf32>
    %cst_99 = arith.constant 5.000000e-01 : f32
    %394 = vector.broadcast %cst_99 : f32 to vector<1x512xf32>
    %395 = arith.mulf %394, %393 : vector<1x512xf32>
    %cst_100 = arith.constant 9.99999971E-10 : f32
    %396 = vector.broadcast %cst_100 : f32 to vector<1x512xf32>
    %397 = arith.maximumf %395, %396 : vector<1x512xf32>
    %398 = math.log %397 : vector<1x512xf32>
    %cst_101 = arith.constant 2.000000e+00 : f32
    %399 = math.log %cst_101 : f32
    %400 = vector.broadcast %399 : f32 to vector<1x512xf32>
    %401 = arith.divf %398, %400 : vector<1x512xf32>
    %cst_102 = arith.constant 0.000000e+00 : f32
    %402 = vector.broadcast %cst_102 : f32 to vector<1x512xf32>
    %403 = arith.subf %402, %401 : vector<1x512xf32>
    %c0_103 = arith.constant 0 : index
    %404 = arith.index_cast %327 : i32 to index
    %405 = vector.load %arg9[%c0_103, %404] : memref<1x4096xf32, #tpu.memory_space<vmem>>, vector<1x512xf32>
    tpu.vector_store %arg9[%c0_103, %404], %403 {strides = array<i32>} : memref<1x4096xf32, #tpu.memory_space<vmem>>, vector<1x512xf32>,
    %c5_i32 = arith.constant 5 : i32
    %c512_i32_104 = arith.constant 512 : i32
    %406 = arith.muli %c5_i32, %c512_i32_104 : i32
    %407 = tpu.assume_multiple %406, 128 : i32
    %c0_105 = arith.constant 0 : index
    %408 = arith.index_cast %407 : i32 to index
    %409 = vector.load %arg1[%c0_105, %408] : memref<16x4096xbf16, #tpu.memory_space<vmem>>, vector<16x512xbf16>
    %c0_106 = arith.constant 0 : index
    %410 = arith.index_cast %407 : i32 to index
    %411 = vector.load %arg2[%c0_106, %410] : memref<1x4096xf32, #tpu.memory_space<vmem>>, vector<1x512xf32>
    %cst_107 = arith.constant dense<0.000000e+00> : vector<24x512xf32>
    %412 = tpu.matmul %0, %409, %cst_107 {dimension_numbers = #tpu.dot_dimension_numbers<[1], [0], [0], [1], [0, 0, 1, 1], [], []>} : vector<24x16xbf16>, vector<16x512xbf16>, vector<24x512xf32> -> vector<24x512xf32>
    %413 = vector.broadcast %1 : vector<24x1xf32> to vector<24x512xf32>
    %414 = arith.addf %412, %413 : vector<24x512xf32>
    %cst_108 = arith.constant 0.000000e+00 : f32
    %415 = vector.broadcast %cst_108 : f32 to vector<24x512xf32>
    %416 = arith.cmpf ogt, %414, %415 : vector<24x512xf32>
    %cst_109 = arith.constant 0.00999999977 : f32
    %417 = vector.broadcast %cst_109 : f32 to vector<24x512xf32>
    %418 = arith.mulf %417, %414 : vector<24x512xf32>
    %419 = arith.select %416, %414, %418 : vector<24x512xi1>, vector<24x512xf32>
    %cst_110 = arith.constant dense<0.000000e+00> : vector<24x512xf32>
    %420 = tpu.matmul %2, %419, %cst_110 {dimension_numbers = #tpu.dot_dimension_numbers<[1], [0], [0], [1], [0, 0, 1, 1], [], []>} : vector<24x24xf32>, vector<24x512xf32>, vector<24x512xf32> -> vector<24x512xf32>
    %421 = vector.broadcast %3 : vector<24x1xf32> to vector<24x512xf32>
    %422 = arith.addf %420, %421 : vector<24x512xf32>
    %cst_111 = arith.constant 0.000000e+00 : f32
    %423 = vector.broadcast %cst_111 : f32 to vector<24x512xf32>
    %424 = arith.cmpf ogt, %422, %423 : vector<24x512xf32>
    %cst_112 = arith.constant 0.00999999977 : f32
    %425 = vector.broadcast %cst_112 : f32 to vector<24x512xf32>
    %426 = arith.mulf %425, %422 : vector<24x512xf32>
    %427 = arith.select %424, %422, %426 : vector<24x512xi1>, vector<24x512xf32>
    %cst_113 = arith.constant dense<0.000000e+00> : vector<24x512xf32>
    %428 = tpu.matmul %4, %427, %cst_113 {dimension_numbers = #tpu.dot_dimension_numbers<[1], [0], [0], [1], [0, 0, 1, 1], [], []>} : vector<24x24xf32>, vector<24x512xf32>, vector<24x512xf32> -> vector<24x512xf32>
    %429 = vector.broadcast %5 : vector<24x1xf32> to vector<24x512xf32>
    %430 = arith.addf %428, %429 : vector<24x512xf32>
    %431 = vector.extract_strided_slice %430 {offsets = [0, 0], sizes = [3, 512], strides = [1, 1]} : vector<24x512xf32> to vector<3x512xf32>
    %432 = math.absf %431 : vector<3x512xf32>
    %cst_114 = arith.constant 0.00999999977 : f32
    %433 = vector.broadcast %cst_114 : f32 to vector<3x512xf32>
    %434 = arith.maximumf %432, %433 : vector<3x512xf32>
    %435 = vector.extract_strided_slice %430 {offsets = [8, 0], sizes = [3, 512], strides = [1, 1]} : vector<24x512xf32> to vector<3x512xf32>
    %436 = vector.extract_strided_slice %430 {offsets = [16, 0], sizes = [3, 512], strides = [1, 1]} : vector<24x512xf32> to vector<3x512xf32>
    %437 = vector.extract_strided_slice %436 {offsets = [0, 0], sizes = [1, 512], strides = [1, 1]} : vector<3x512xf32> to vector<1x512xf32>
    %438 = vector.extract_strided_slice %436 {offsets = [1, 0], sizes = [1, 512], strides = [1, 1]} : vector<3x512xf32> to vector<1x512xf32>
    %439 = arith.maximumf %437, %438 : vector<1x512xf32>
    %440 = vector.extract_strided_slice %436 {offsets = [2, 0], sizes = [1, 512], strides = [1, 1]} : vector<3x512xf32> to vector<1x512xf32>
    %441 = arith.maximumf %439, %440 : vector<1x512xf32>
    %442 = vector.broadcast %441 : vector<1x512xf32> to vector<3x512xf32>
    %443 = arith.subf %436, %442 : vector<3x512xf32>
    %444 = math.exp %443 : vector<3x512xf32>
    %445 = vector.extract_strided_slice %444 {offsets = [0, 0], sizes = [1, 512], strides = [1, 1]} : vector<3x512xf32> to vector<1x512xf32>
    %446 = vector.extract_strided_slice %444 {offsets = [1, 0], sizes = [1, 512], strides = [1, 1]} : vector<3x512xf32> to vector<1x512xf32>
    %447 = arith.addf %445, %446 : vector<1x512xf32>
    %448 = vector.extract_strided_slice %444 {offsets = [2, 0], sizes = [1, 512], strides = [1, 1]} : vector<3x512xf32> to vector<1x512xf32>
    %449 = arith.addf %447, %448 : vector<1x512xf32>
    %450 = tpu.reciprocal %449 {approx = true} : vector<1x512xf32> -> vector<1x512xf32>
    %451 = vector.broadcast %450 : vector<1x512xf32> to vector<3x512xf32>
    %452 = arith.mulf %444, %451 : vector<3x512xf32>
    %453 = tpu.reciprocal %434 {approx = true} : vector<3x512xf32> -> vector<3x512xf32>
    %cst_115 = arith.constant 0.707106769 : f32
    %454 = vector.broadcast %cst_115 : f32 to vector<3x512xf32>
    %455 = arith.mulf %454, %453 : vector<3x512xf32>
    %456 = vector.broadcast %411 : vector<1x512xf32> to vector<3x512xf32>
    %457 = arith.subf %456, %435 : vector<3x512xf32>
    %458 = arith.mulf %457, %455 : vector<3x512xf32>
    %cst_116 = arith.constant 0.00196078443 : f32
    %459 = vector.broadcast %cst_116 : f32 to vector<3x512xf32>
    %460 = arith.mulf %459, %455 : vector<3x512xf32>
    %461 = arith.subf %460, %458 : vector<3x512xf32>
    %462 = math.erf %461 : vector<3x512xf32>
    %cst_117 = arith.constant 0.000000e+00 : f32
    %463 = vector.broadcast %cst_117 : f32 to vector<3x512xf32>
    %464 = arith.subf %463, %460 : vector<3x512xf32>
    %465 = arith.subf %464, %458 : vector<3x512xf32>
    %466 = math.erf %465 : vector<3x512xf32>
    %467 = arith.subf %462, %466 : vector<3x512xf32>
    %468 = arith.mulf %452, %467 : vector<3x512xf32>
    %469 = vector.extract_strided_slice %468 {offsets = [0, 0], sizes = [1, 512], strides = [1, 1]} : vector<3x512xf32> to vector<1x512xf32>
    %470 = vector.extract_strided_slice %468 {offsets = [1, 0], sizes = [1, 512], strides = [1, 1]} : vector<3x512xf32> to vector<1x512xf32>
    %471 = arith.addf %469, %470 : vector<1x512xf32>
    %472 = vector.extract_strided_slice %468 {offsets = [2, 0], sizes = [1, 512], strides = [1, 1]} : vector<3x512xf32> to vector<1x512xf32>
    %473 = arith.addf %471, %472 : vector<1x512xf32>
    %cst_118 = arith.constant 5.000000e-01 : f32
    %474 = vector.broadcast %cst_118 : f32 to vector<1x512xf32>
    %475 = arith.mulf %474, %473 : vector<1x512xf32>
    %cst_119 = arith.constant 9.99999971E-10 : f32
    %476 = vector.broadcast %cst_119 : f32 to vector<1x512xf32>
    %477 = arith.maximumf %475, %476 : vector<1x512xf32>
    %478 = math.log %477 : vector<1x512xf32>
    %cst_120 = arith.constant 2.000000e+00 : f32
    %479 = math.log %cst_120 : f32
    %480 = vector.broadcast %479 : f32 to vector<1x512xf32>
    %481 = arith.divf %478, %480 : vector<1x512xf32>
    %cst_121 = arith.constant 0.000000e+00 : f32
    %482 = vector.broadcast %cst_121 : f32 to vector<1x512xf32>
    %483 = arith.subf %482, %481 : vector<1x512xf32>
    %c0_122 = arith.constant 0 : index
    %484 = arith.index_cast %407 : i32 to index
    %485 = vector.load %arg9[%c0_122, %484] : memref<1x4096xf32, #tpu.memory_space<vmem>>, vector<1x512xf32>
    tpu.vector_store %arg9[%c0_122, %484], %483 {strides = array<i32>} : memref<1x4096xf32, #tpu.memory_space<vmem>>, vector<1x512xf32>,
    %c6_i32 = arith.constant 6 : i32
    %c512_i32_123 = arith.constant 512 : i32
    %486 = arith.muli %c6_i32, %c512_i32_123 : i32
    %487 = tpu.assume_multiple %486, 128 : i32
    %c0_124 = arith.constant 0 : index
    %488 = arith.index_cast %487 : i32 to index
    %489 = vector.load %arg1[%c0_124, %488] : memref<16x4096xbf16, #tpu.memory_space<vmem>>, vector<16x512xbf16>
    %c0_125 = arith.constant 0 : index
    %490 = arith.index_cast %487 : i32 to index
    %491 = vector.load %arg2[%c0_125, %490] : memref<1x4096xf32, #tpu.memory_space<vmem>>, vector<1x512xf32>
    %cst_126 = arith.constant dense<0.000000e+00> : vector<24x512xf32>
    %492 = tpu.matmul %0, %489, %cst_126 {dimension_numbers = #tpu.dot_dimension_numbers<[1], [0], [0], [1], [0, 0, 1, 1], [], []>} : vector<24x16xbf16>, vector<16x512xbf16>, vector<24x512xf32> -> vector<24x512xf32>
    %493 = vector.broadcast %1 : vector<24x1xf32> to vector<24x512xf32>
    %494 = arith.addf %492, %493 : vector<24x512xf32>
    %cst_127 = arith.constant 0.000000e+00 : f32
    %495 = vector.broadcast %cst_127 : f32 to vector<24x512xf32>
    %496 = arith.cmpf ogt, %494, %495 : vector<24x512xf32>
    %cst_128 = arith.constant 0.00999999977 : f32
    %497 = vector.broadcast %cst_128 : f32 to vector<24x512xf32>
    %498 = arith.mulf %497, %494 : vector<24x512xf32>
    %499 = arith.select %496, %494, %498 : vector<24x512xi1>, vector<24x512xf32>
    %cst_129 = arith.constant dense<0.000000e+00> : vector<24x512xf32>
    %500 = tpu.matmul %2, %499, %cst_129 {dimension_numbers = #tpu.dot_dimension_numbers<[1], [0], [0], [1], [0, 0, 1, 1], [], []>} : vector<24x24xf32>, vector<24x512xf32>, vector<24x512xf32> -> vector<24x512xf32>
    %501 = vector.broadcast %3 : vector<24x1xf32> to vector<24x512xf32>
    %502 = arith.addf %500, %501 : vector<24x512xf32>
    %cst_130 = arith.constant 0.000000e+00 : f32
    %503 = vector.broadcast %cst_130 : f32 to vector<24x512xf32>
    %504 = arith.cmpf ogt, %502, %503 : vector<24x512xf32>
    %cst_131 = arith.constant 0.00999999977 : f32
    %505 = vector.broadcast %cst_131 : f32 to vector<24x512xf32>
    %506 = arith.mulf %505, %502 : vector<24x512xf32>
    %507 = arith.select %504, %502, %506 : vector<24x512xi1>, vector<24x512xf32>
    %cst_132 = arith.constant dense<0.000000e+00> : vector<24x512xf32>
    %508 = tpu.matmul %4, %507, %cst_132 {dimension_numbers = #tpu.dot_dimension_numbers<[1], [0], [0], [1], [0, 0, 1, 1], [], []>} : vector<24x24xf32>, vector<24x512xf32>, vector<24x512xf32> -> vector<24x512xf32>
    %509 = vector.broadcast %5 : vector<24x1xf32> to vector<24x512xf32>
    %510 = arith.addf %508, %509 : vector<24x512xf32>
    %511 = vector.extract_strided_slice %510 {offsets = [0, 0], sizes = [3, 512], strides = [1, 1]} : vector<24x512xf32> to vector<3x512xf32>
    %512 = math.absf %511 : vector<3x512xf32>
    %cst_133 = arith.constant 0.00999999977 : f32
    %513 = vector.broadcast %cst_133 : f32 to vector<3x512xf32>
    %514 = arith.maximumf %512, %513 : vector<3x512xf32>
    %515 = vector.extract_strided_slice %510 {offsets = [8, 0], sizes = [3, 512], strides = [1, 1]} : vector<24x512xf32> to vector<3x512xf32>
    %516 = vector.extract_strided_slice %510 {offsets = [16, 0], sizes = [3, 512], strides = [1, 1]} : vector<24x512xf32> to vector<3x512xf32>
    %517 = vector.extract_strided_slice %516 {offsets = [0, 0], sizes = [1, 512], strides = [1, 1]} : vector<3x512xf32> to vector<1x512xf32>
    %518 = vector.extract_strided_slice %516 {offsets = [1, 0], sizes = [1, 512], strides = [1, 1]} : vector<3x512xf32> to vector<1x512xf32>
    %519 = arith.maximumf %517, %518 : vector<1x512xf32>
    %520 = vector.extract_strided_slice %516 {offsets = [2, 0], sizes = [1, 512], strides = [1, 1]} : vector<3x512xf32> to vector<1x512xf32>
    %521 = arith.maximumf %519, %520 : vector<1x512xf32>
    %522 = vector.broadcast %521 : vector<1x512xf32> to vector<3x512xf32>
    %523 = arith.subf %516, %522 : vector<3x512xf32>
    %524 = math.exp %523 : vector<3x512xf32>
    %525 = vector.extract_strided_slice %524 {offsets = [0, 0], sizes = [1, 512], strides = [1, 1]} : vector<3x512xf32> to vector<1x512xf32>
    %526 = vector.extract_strided_slice %524 {offsets = [1, 0], sizes = [1, 512], strides = [1, 1]} : vector<3x512xf32> to vector<1x512xf32>
    %527 = arith.addf %525, %526 : vector<1x512xf32>
    %528 = vector.extract_strided_slice %524 {offsets = [2, 0], sizes = [1, 512], strides = [1, 1]} : vector<3x512xf32> to vector<1x512xf32>
    %529 = arith.addf %527, %528 : vector<1x512xf32>
    %530 = tpu.reciprocal %529 {approx = true} : vector<1x512xf32> -> vector<1x512xf32>
    %531 = vector.broadcast %530 : vector<1x512xf32> to vector<3x512xf32>
    %532 = arith.mulf %524, %531 : vector<3x512xf32>
    %533 = tpu.reciprocal %514 {approx = true} : vector<3x512xf32> -> vector<3x512xf32>
    %cst_134 = arith.constant 0.707106769 : f32
    %534 = vector.broadcast %cst_134 : f32 to vector<3x512xf32>
    %535 = arith.mulf %534, %533 : vector<3x512xf32>
    %536 = vector.broadcast %491 : vector<1x512xf32> to vector<3x512xf32>
    %537 = arith.subf %536, %515 : vector<3x512xf32>
    %538 = arith.mulf %537, %535 : vector<3x512xf32>
    %cst_135 = arith.constant 0.00196078443 : f32
    %539 = vector.broadcast %cst_135 : f32 to vector<3x512xf32>
    %540 = arith.mulf %539, %535 : vector<3x512xf32>
    %541 = arith.subf %540, %538 : vector<3x512xf32>
    %542 = math.erf %541 : vector<3x512xf32>
    %cst_136 = arith.constant 0.000000e+00 : f32
    %543 = vector.broadcast %cst_136 : f32 to vector<3x512xf32>
    %544 = arith.subf %543, %540 : vector<3x512xf32>
    %545 = arith.subf %544, %538 : vector<3x512xf32>
    %546 = math.erf %545 : vector<3x512xf32>
    %547 = arith.subf %542, %546 : vector<3x512xf32>
    %548 = arith.mulf %532, %547 : vector<3x512xf32>
    %549 = vector.extract_strided_slice %548 {offsets = [0, 0], sizes = [1, 512], strides = [1, 1]} : vector<3x512xf32> to vector<1x512xf32>
    %550 = vector.extract_strided_slice %548 {offsets = [1, 0], sizes = [1, 512], strides = [1, 1]} : vector<3x512xf32> to vector<1x512xf32>
    %551 = arith.addf %549, %550 : vector<1x512xf32>
    %552 = vector.extract_strided_slice %548 {offsets = [2, 0], sizes = [1, 512], strides = [1, 1]} : vector<3x512xf32> to vector<1x512xf32>
    %553 = arith.addf %551, %552 : vector<1x512xf32>
    %cst_137 = arith.constant 5.000000e-01 : f32
    %554 = vector.broadcast %cst_137 : f32 to vector<1x512xf32>
    %555 = arith.mulf %554, %553 : vector<1x512xf32>
    %cst_138 = arith.constant 9.99999971E-10 : f32
    %556 = vector.broadcast %cst_138 : f32 to vector<1x512xf32>
    %557 = arith.maximumf %555, %556 : vector<1x512xf32>
    %558 = math.log %557 : vector<1x512xf32>
    %cst_139 = arith.constant 2.000000e+00 : f32
    %559 = math.log %cst_139 : f32
    %560 = vector.broadcast %559 : f32 to vector<1x512xf32>
    %561 = arith.divf %558, %560 : vector<1x512xf32>
    %cst_140 = arith.constant 0.000000e+00 : f32
    %562 = vector.broadcast %cst_140 : f32 to vector<1x512xf32>
    %563 = arith.subf %562, %561 : vector<1x512xf32>
    %c0_141 = arith.constant 0 : index
    %564 = arith.index_cast %487 : i32 to index
    %565 = vector.load %arg9[%c0_141, %564] : memref<1x4096xf32, #tpu.memory_space<vmem>>, vector<1x512xf32>
    tpu.vector_store %arg9[%c0_141, %564], %563 {strides = array<i32>} : memref<1x4096xf32, #tpu.memory_space<vmem>>, vector<1x512xf32>,
    %c7_i32 = arith.constant 7 : i32
    %c512_i32_142 = arith.constant 512 : i32
    %566 = arith.muli %c7_i32, %c512_i32_142 : i32
    %567 = tpu.assume_multiple %566, 128 : i32
    %c0_143 = arith.constant 0 : index
    %568 = arith.index_cast %567 : i32 to index
    %569 = vector.load %arg1[%c0_143, %568] : memref<16x4096xbf16, #tpu.memory_space<vmem>>, vector<16x512xbf16>
    %c0_144 = arith.constant 0 : index
    %570 = arith.index_cast %567 : i32 to index
    %571 = vector.load %arg2[%c0_144, %570] : memref<1x4096xf32, #tpu.memory_space<vmem>>, vector<1x512xf32>
    %cst_145 = arith.constant dense<0.000000e+00> : vector<24x512xf32>
    %572 = tpu.matmul %0, %569, %cst_145 {dimension_numbers = #tpu.dot_dimension_numbers<[1], [0], [0], [1], [0, 0, 1, 1], [], []>} : vector<24x16xbf16>, vector<16x512xbf16>, vector<24x512xf32> -> vector<24x512xf32>
    %573 = vector.broadcast %1 : vector<24x1xf32> to vector<24x512xf32>
    %574 = arith.addf %572, %573 : vector<24x512xf32>
    %cst_146 = arith.constant 0.000000e+00 : f32
    %575 = vector.broadcast %cst_146 : f32 to vector<24x512xf32>
    %576 = arith.cmpf ogt, %574, %575 : vector<24x512xf32>
    %cst_147 = arith.constant 0.00999999977 : f32
    %577 = vector.broadcast %cst_147 : f32 to vector<24x512xf32>
    %578 = arith.mulf %577, %574 : vector<24x512xf32>
    %579 = arith.select %576, %574, %578 : vector<24x512xi1>, vector<24x512xf32>
    %cst_148 = arith.constant dense<0.000000e+00> : vector<24x512xf32>
    %580 = tpu.matmul %2, %579, %cst_148 {dimension_numbers = #tpu.dot_dimension_numbers<[1], [0], [0], [1], [0, 0, 1, 1], [], []>} : vector<24x24xf32>, vector<24x512xf32>, vector<24x512xf32> -> vector<24x512xf32>
    %581 = vector.broadcast %3 : vector<24x1xf32> to vector<24x512xf32>
    %582 = arith.addf %580, %581 : vector<24x512xf32>
    %cst_149 = arith.constant 0.000000e+00 : f32
    %583 = vector.broadcast %cst_149 : f32 to vector<24x512xf32>
    %584 = arith.cmpf ogt, %582, %583 : vector<24x512xf32>
    %cst_150 = arith.constant 0.00999999977 : f32
    %585 = vector.broadcast %cst_150 : f32 to vector<24x512xf32>
    %586 = arith.mulf %585, %582 : vector<24x512xf32>
    %587 = arith.select %584, %582, %586 : vector<24x512xi1>, vector<24x512xf32>
    %cst_151 = arith.constant dense<0.000000e+00> : vector<24x512xf32>
    %588 = tpu.matmul %4, %587, %cst_151 {dimension_numbers = #tpu.dot_dimension_numbers<[1], [0], [0], [1], [0, 0, 1, 1], [], []>} : vector<24x24xf32>, vector<24x512xf32>, vector<24x512xf32> -> vector<24x512xf32>
    %589 = vector.broadcast %5 : vector<24x1xf32> to vector<24x512xf32>
    %590 = arith.addf %588, %589 : vector<24x512xf32>
    %591 = vector.extract_strided_slice %590 {offsets = [0, 0], sizes = [3, 512], strides = [1, 1]} : vector<24x512xf32> to vector<3x512xf32>
    %592 = math.absf %591 : vector<3x512xf32>
    %cst_152 = arith.constant 0.00999999977 : f32
    %593 = vector.broadcast %cst_152 : f32 to vector<3x512xf32>
    %594 = arith.maximumf %592, %593 : vector<3x512xf32>
    %595 = vector.extract_strided_slice %590 {offsets = [8, 0], sizes = [3, 512], strides = [1, 1]} : vector<24x512xf32> to vector<3x512xf32>
    %596 = vector.extract_strided_slice %590 {offsets = [16, 0], sizes = [3, 512], strides = [1, 1]} : vector<24x512xf32> to vector<3x512xf32>
    %597 = vector.extract_strided_slice %596 {offsets = [0, 0], sizes = [1, 512], strides = [1, 1]} : vector<3x512xf32> to vector<1x512xf32>
    %598 = vector.extract_strided_slice %596 {offsets = [1, 0], sizes = [1, 512], strides = [1, 1]} : vector<3x512xf32> to vector<1x512xf32>
    %599 = arith.maximumf %597, %598 : vector<1x512xf32>
    %600 = vector.extract_strided_slice %596 {offsets = [2, 0], sizes = [1, 512], strides = [1, 1]} : vector<3x512xf32> to vector<1x512xf32>
    %601 = arith.maximumf %599, %600 : vector<1x512xf32>
    %602 = vector.broadcast %601 : vector<1x512xf32> to vector<3x512xf32>
    %603 = arith.subf %596, %602 : vector<3x512xf32>
    %604 = math.exp %603 : vector<3x512xf32>
    %605 = vector.extract_strided_slice %604 {offsets = [0, 0], sizes = [1, 512], strides = [1, 1]} : vector<3x512xf32> to vector<1x512xf32>
    %606 = vector.extract_strided_slice %604 {offsets = [1, 0], sizes = [1, 512], strides = [1, 1]} : vector<3x512xf32> to vector<1x512xf32>
    %607 = arith.addf %605, %606 : vector<1x512xf32>
    %608 = vector.extract_strided_slice %604 {offsets = [2, 0], sizes = [1, 512], strides = [1, 1]} : vector<3x512xf32> to vector<1x512xf32>
    %609 = arith.addf %607, %608 : vector<1x512xf32>
    %610 = tpu.reciprocal %609 {approx = true} : vector<1x512xf32> -> vector<1x512xf32>
    %611 = vector.broadcast %610 : vector<1x512xf32> to vector<3x512xf32>
    %612 = arith.mulf %604, %611 : vector<3x512xf32>
    %613 = tpu.reciprocal %594 {approx = true} : vector<3x512xf32> -> vector<3x512xf32>
    %cst_153 = arith.constant 0.707106769 : f32
    %614 = vector.broadcast %cst_153 : f32 to vector<3x512xf32>
    %615 = arith.mulf %614, %613 : vector<3x512xf32>
    %616 = vector.broadcast %571 : vector<1x512xf32> to vector<3x512xf32>
    %617 = arith.subf %616, %595 : vector<3x512xf32>
    %618 = arith.mulf %617, %615 : vector<3x512xf32>
    %cst_154 = arith.constant 0.00196078443 : f32
    %619 = vector.broadcast %cst_154 : f32 to vector<3x512xf32>
    %620 = arith.mulf %619, %615 : vector<3x512xf32>
    %621 = arith.subf %620, %618 : vector<3x512xf32>
    %622 = math.erf %621 : vector<3x512xf32>
    %cst_155 = arith.constant 0.000000e+00 : f32
    %623 = vector.broadcast %cst_155 : f32 to vector<3x512xf32>
    %624 = arith.subf %623, %620 : vector<3x512xf32>
    %625 = arith.subf %624, %618 : vector<3x512xf32>
    %626 = math.erf %625 : vector<3x512xf32>
    %627 = arith.subf %622, %626 : vector<3x512xf32>
    %628 = arith.mulf %612, %627 : vector<3x512xf32>
    %629 = vector.extract_strided_slice %628 {offsets = [0, 0], sizes = [1, 512], strides = [1, 1]} : vector<3x512xf32> to vector<1x512xf32>
    %630 = vector.extract_strided_slice %628 {offsets = [1, 0], sizes = [1, 512], strides = [1, 1]} : vector<3x512xf32> to vector<1x512xf32>
    %631 = arith.addf %629, %630 : vector<1x512xf32>
    %632 = vector.extract_strided_slice %628 {offsets = [2, 0], sizes = [1, 512], strides = [1, 1]} : vector<3x512xf32> to vector<1x512xf32>
    %633 = arith.addf %631, %632 : vector<1x512xf32>
    %cst_156 = arith.constant 5.000000e-01 : f32
    %634 = vector.broadcast %cst_156 : f32 to vector<1x512xf32>
    %635 = arith.mulf %634, %633 : vector<1x512xf32>
    %cst_157 = arith.constant 9.99999971E-10 : f32
    %636 = vector.broadcast %cst_157 : f32 to vector<1x512xf32>
    %637 = arith.maximumf %635, %636 : vector<1x512xf32>
    %638 = math.log %637 : vector<1x512xf32>
    %cst_158 = arith.constant 2.000000e+00 : f32
    %639 = math.log %cst_158 : f32
    %640 = vector.broadcast %639 : f32 to vector<1x512xf32>
    %641 = arith.divf %638, %640 : vector<1x512xf32>
    %cst_159 = arith.constant 0.000000e+00 : f32
    %642 = vector.broadcast %cst_159 : f32 to vector<1x512xf32>
    %643 = arith.subf %642, %641 : vector<1x512xf32>
    %c0_160 = arith.constant 0 : index
    %644 = arith.index_cast %567 : i32 to index
    %645 = vector.load %arg9[%c0_160, %644] : memref<1x4096xf32, #tpu.memory_space<vmem>>, vector<1x512xf32>
    tpu.vector_store %arg9[%c0_160, %644], %643 {strides = array<i32>} : memref<1x4096xf32, #tpu.memory_space<vmem>>, vector<1x512xf32>,
    %c8_i32 = arith.constant 8 : i32
    return
  }
  func.func @transform_0(%arg0: i32) -> (i32, i32) {
    %c0_i32 = arith.constant 0 : i32
    %c0_i32_0 = arith.constant 0 : i32
    return %c0_i32, %arg0 : i32, i32
  }
  func.func @transform_1(%arg0: i32) -> (i32, i32) {
    %c0_i32 = arith.constant 0 : i32
    %c0_i32_0 = arith.constant 0 : i32
    return %c0_i32, %arg0 : i32, i32
  }
  func.func @transform_2(%arg0: i32) -> (i32, i32) {
    %c0_i32 = arith.constant 0 : i32
    %c0_i32_0 = arith.constant 0 : i32
    %c0_i32_1 = arith.constant 0 : i32
    return %c0_i32, %c0_i32_0 : i32, i32
  }
  func.func @transform_3(%arg0: i32) -> (i32, i32) {
    %c0_i32 = arith.constant 0 : i32
    %c0_i32_0 = arith.constant 0 : i32
    %c0_i32_1 = arith.constant 0 : i32
    return %c0_i32, %c0_i32_0 : i32, i32
  }
  func.func @transform_4(%arg0: i32) -> (i32, i32) {
    %c0_i32 = arith.constant 0 : i32
    %c0_i32_0 = arith.constant 0 : i32
    %c0_i32_1 = arith.constant 0 : i32
    return %c0_i32, %c0_i32_0 : i32, i32
  }
  func.func @transform_5(%arg0: i32) -> (i32, i32) {
    %c0_i32 = arith.constant 0 : i32
    %c0_i32_0 = arith.constant 0 : i32
    %c0_i32_1 = arith.constant 0 : i32
    return %c0_i32, %c0_i32_0 : i32, i32
  }
  func.func @transform_6(%arg0: i32) -> (i32, i32) {
    %c0_i32 = arith.constant 0 : i32
    %c0_i32_0 = arith.constant 0 : i32
    %c0_i32_1 = arith.constant 0 : i32
    return %c0_i32, %c0_i32_0 : i32, i32
  }
  func.func @transform_7(%arg0: i32) -> (i32, i32) {
    %c0_i32 = arith.constant 0 : i32
    %c0_i32_0 = arith.constant 0 : i32
    %c0_i32_1 = arith.constant 0 : i32
    return %c0_i32, %c0_i32_0 : i32, i32
  }
  func.func @transform_8(%arg0: i32) -> (i32, i32) {
    %c0_i32 = arith.constant 0 : i32
    %c0_i32_0 = arith.constant 0 : i32
    return %c0_i32, %arg0 : i32, i32
  }
}

</mosaic_0001>

<bundles_post_ra>
// kernel: tpu_custom_call.1
= control target key start
LH: loop header
LB: loop body
LE: loop exit
PB: predicated region body
PF: predicated region fallthrough
CT: control target
= control target key end

     0   :  { %13 = vsyncpa [#allocation3], 0  ;;  %s9149_s0 = inlined_call_operand.hbm [shape: bf16[16,4096], index: 0, kind: input, shape index: {}]   ;;  %s9150_s1 = inlined_call_operand.vmem [shape: f32[1,4096], index: 1, kind: input, shape index: {}]   ;;  %s9151_s2 = inlined_call_operand.vmem [shape: bf16[24,16], index: 2, kind: input, shape index: {}]   ;;  %s9152_s3 = inlined_call_operand.vmem [shape: f32[24,1], index: 3, kind: input, shape index: {}]   ;;  %s9153_s4 = inlined_call_operand.vmem [shape: f32[24,24], index: 4, kind: input, shape index: {}]   ;;  %s9154_s5 = inlined_call_operand.vmem [shape: f32[24,1], index: 5, kind: input, shape index: {}]   ;;  %s9155_s6 = inlined_call_operand.vmem [shape: f32[24,24], index: 6, kind: input, shape index: {}]   ;;  %s9156_s7 = inlined_call_operand.vmem [shape: f32[24,1], index: 7, kind: input, shape index: {}]   ;;  %s9157_s8 = inlined_call_operand.hbm [shape: f32[1,4096], index: 8, kind: output, shape index: {}]  }
   0x1   :  { %14 = vsyncpa [#allocation4], 0  ;;  %s7331_s27 = smov [#allocation2]   ;;  %s7283_s9 = scalar_lea.hbm %s9149_s0, 4096 }
   0x2   :  { %s20_s28 = sshll.u32 %s7331_s27, 4  ;;  %p7284_p0 = scmp.ne.s32.totalorder %s9149_s0, %s7283_s9  ;;  %s21_s28 = int_to_ptr.vmem [resolvable:$true] %s20_s28 }
   0x3   :  { %p7287_p1 = scmp.lt.u32.totalorder %s7283_s9, %s9149_s0 }
   0x5   :  { %p7289_p2 = pnand %p7287_p1, %p7284_p0 }
   0x7   :  { %7292 = shalt.err (!%p7289_p2)
}
   0x8   :  { %s7293_s14 = scalar_lea.vmem %s21_s28, 4096  ;;  %p7298_p4 = scmp.lt.s32.totalorder %s21_s28, %s21_s28 }
   0x9   :  { %p7294_p3 = scmp.ne.s32.totalorder %s21_s28, %s7293_s14  ;;  %p7299_p5 = scmp.lt.s32.totalorder %s7293_s14, %s7293_s14 }
   0xb   :  { %p7300_p6 = por %p7299_p5, %p7298_p4 }
   0xd   :  { %p7301_p7 = pnand %p7300_p6, %p7294_p3 }
   0xf   :  { %7304 = shalt.err (!%p7301_p7)
}
  0x10   :  { %s7332_s15 = smov 2048   ;;  %s7333_s16 = smov 128  }
  0x11   :  { %26 = dma.hbm_to_vmem [thread:$0]  %s9149_s0, 4096, %s21_s28, [#allocation3], %s7332_s15, %s7332_s15, %s7333_s16  }
  0x12   :  { %7327 = dma.done.wait [#allocation3], 4096  }
  0x13   :  { %7328 = vsyncadd [#allocation3], 4294963200  ;;  %v9158_v0 = vmov 0   ;;  %v63_v1 = vld [vmem:[#allocation2] sm:$0xff]  ;;  %v64_v3 = vld [vmem:[#allocation2 + $0x8] sm:$0xff]  ;;  %vm111_vm0 = vcmask 130048  }
  0x14   :  { %150 = vmatprep.mubr.bf16.mxu0 %v9158_v0  ;;  %201 = vmatprep.mubr.bf16.mxu1 %v9158_v0  ;;  %v65_v2 = vld [vmem:[#allocation2 + $0x80] sm:$0xff]  ;;  %v66_v5 = vld [vmem:[#allocation2 + $0x88] sm:$0xff]  ;;  %v50_v11 = vld [vmem:[%s9152_s3 + $0x10] sm:$0xff]  ;;  %v9161_v20 = vmov 0.0   ;;  %vm271_vm13 = vcmask 195584  }
  0x15   :  { %6871 = vset.pattern.permute.xlu0 %v9158_v0  ;;  %6872 = vset.pattern.permute.xlu1 %v9158_v0  ;;  %v6570_v4 = vcombine.high %v63_v1, %v65_v2  ;;  %v6569_v6 = vcombine.low %v63_v1, %v65_v2  ;;  %v6572_v7 = vcombine.high %v64_v3, %v66_v5  ;;  %v7402_v9 = vld [vmem:[%s9151_s2] sm:$0xff]   ;;  %v49_v12 = vld [vmem:[%s9152_s3 + $0x8] sm:$0xff]  ;;  %v56_v16 = vld [vmem:[%s9154_s5 + $0x10] sm:$0xff] }
  0x16   :  { %v6571_v8 = vcombine.low %v64_v3, %v66_v5  ;;  %v48_v10 = vld [vmem:[%s9152_s3] sm:$0xff]  ;;  %80 = vperm.xlu1 %6872, %v50_v11   ;;  %v55_v14 = vld [vmem:[%s9154_s5 + $0x8] sm:$0xff]  ;;  %v62_v17 = vld [vmem:[%s9156_s7 + $0x10] sm:$0xff] }
  0x17   :  { %118 = vmatprep.subr.bf16.mxu0 %v6570_v4  ;;  %169 = vmatprep.subr.bf16.mxu1 %v6572_v7  ;;  %v54_v13 = vld [vmem:[%s9154_s5] sm:$0xff]  ;;  %v7428_v15 = vld [vmem:[%s9151_s2 + $0x8] ss:$0 sps:$4 sm:$0xff]  }
  0x18   :  { %119 = vmatpush1.bf16.msra.mxu0 %v6569_v6  ;;  %170 = vmatpush1.bf16.msra.mxu1 %v6571_v8  ;;  %v60_v18 = vld [vmem:[%s9156_s7] sm:$0xff]  ;;  %v61_v19 = vld [vmem:[%s9156_s7 + $0x8] sm:$0xff] }
  0x19   :  { %70 = vperm.xlu0 %6871, %v48_v10  }
  0x1a   :  { %258 = vperm.xlu1 %6872, %v54_v13  }
  0x1b   :  { %6573 = vmatmul.mubr.msk.bf16.vlgmr.msra.gmra.mrb[0].mxu0 %vm111_vm0, %v7402_v9  ;;  %6575 = vmatmul.mubr.msk.bf16.vlgmr.msra.gmra.mrb[0].mxu1 %vm111_vm0, %v7402_v9 }
  0x1c   :  { %160 = vmatprep.mubr.bf16.mxu0 %v9158_v0  ;;  %211 = vmatprep.mubr.bf16.mxu1 %v9158_v0 }
  0x1d   :  { %75 = vperm.xlu0 %6871, %v49_v12  }
  0x1e   :  { %268 = vperm.xlu1 %6872, %v56_v16  }
  0x21   :  { %263 = vperm.xlu0 %6871, %v55_v14  }
  0x22   :  { %485 = vperm.xlu1 %6872, %v60_v18  }
  0x23   :  { %6574 = vmatmul.mubr.msk.bf16.gmra.mrb[4].mxu0 %vm111_vm0, %v7428_v15  ;;  %6576 = vmatmul.mubr.msk.bf16.gmra.mrb[4].mxu1 %vm111_vm0, %v7428_v15 }
  0x24   :  { %345 = vmatprep.mubr.f32.mxu0 %v9161_v20  ;;  %428 = vmatprep.mubr.f32.mxu1 %v9161_v20 }
  0x25   :  { %495 = vperm.xlu0 %6871, %v62_v17   ;;  %v7474_v17 = vld [vmem:[%s9153_s4] sm:$0xff] }
  0x29   :  { %490 = vperm.xlu0 %6871, %v61_v19  }
  0x95   :  { %v7460_v48 = vpop.permute.xlu1 %80 }
  0x98   :  { %v7448_v21 = vpop.permute.xlu0 %70 }
  0x99   :  { %9178 = vst [vmem:[#allocation8_spill] sm:$0xff] %v7448_v21 }
  0x9c   :  { %v7450_v22 = vpop.permute.xlu0 %75 }
  0xee   :  { %v152_v23 = vpop.f32.mrb[0].mxu0  ;;  %v203_v25 = vpop.f32.mrb[0].mxu1 }
  0xef   :  { %v153_v24 = vadd.f32 %v152_v23, %v7448_v21  ;;  %v154_v26 = vpop.f32.mrb[1].mxu0  ;;  %v204_v27 = vadd.f32 %v203_v25, %v7448_v21  ;;  %v205_v29 = vpop.f32.mrb[1].mxu1  ;;  %v7484_v23 = vld [vmem:[%s9153_s4 + $0x8] sm:$0xff] }
  0xf0   :  { %v155_v28 = vadd.f32 %v154_v26, %v7448_v21  ;;  %v156_v30 = vpop.f32.mrb[2].mxu0  ;;  %v206_v32 = vadd.f32 %v205_v29, %v7448_v21  ;;  %v207_v34 = vpop.f32.mrb[2].mxu1 }
  0xf1   :  { %v232_v31 = vmul.f32 0.01, %v153_v24  ;;  %v157_v33 = vadd.f32 %v156_v30, %v7450_v22  ;;  %v158_v35 = vpop.f32.mrb[3].mxu0  ;;  %vm220_vm1 = vcmp.gt.f32.partialorder %v153_v24, 0.0  ;;  %vm222_vm2 = vcmp.gt.f32.partialorder %v204_v27, 0.0  ;;  %v209_v37 = vpop.f32.mrb[3].mxu1 }
  0xf2   :  { %v234_v36 = vmul.f32 0.01, %v204_v27  ;;  %vm221_vm4 = vcmp.gt.f32.partialorder %v155_v28, 0.0  ;;  %v208_v39 = vadd.f32 %v207_v34, %v7450_v22  ;;  %v159_v40 = vadd.f32 %v158_v35, %v7450_v22  ;;  %v7504_v25 = vpop.permute.xlu1 %258  ;;  %v7510_v35 = vpop.permute.xlu0 %263 }
  0xf3   :  { %vm224_vm3 = vcmp.gt.f32.partialorder %v157_v33, 0.0  ;;  %v236_v38 = vmul.f32 0.01, %v157_v33  ;;  %v244_v41 = vsel %vm220_vm1, %v153_v24, %v232_v31  ;;  %v233_v42 = vmul.f32 0.01, %v155_v28  ;;  %v7495_v24 = vld [vmem:[%s9153_s4 + $0x10] sm:$0xff] }
  0xf4   :  { %v235_v43 = vmul.f32 0.01, %v206_v32  ;;  %v210_v44 = vadd.f32 %v209_v37, %v7450_v22  ;;  %vm226_vm5 = vcmp.gt.f32.partialorder %v208_v39, 0.0  ;;  %v238_v46 = vmul.f32 0.01, %v208_v39 }
  0xf5   :  { %v248_v45 = vsel %vm224_vm3, %v157_v33, %v236_v38  ;;  %vm225_vm6 = vcmp.gt.f32.partialorder %v159_v40, 0.0  ;;  %vm223_vm7 = vcmp.gt.f32.partialorder %v206_v32, 0.0  ;;  %v237_v50 = vmul.f32 0.01, %v159_v40 }
  0xf6   :  { %v162_v47 = vpop.f32.mrb[4].mxu0  ;;  %v6738_v49 = vpack.c.bf16 %v248_v45, %v244_v41  ;;  %v239_v51 = vmul.f32 0.01, %v210_v44  ;;  %v213_v52 = vpop.f32.mrb[4].mxu1  ;;  %v246_v53 = vsel %vm222_vm2, %v204_v27, %v234_v36  ;;  %v250_v54 = vsel %vm226_vm5, %v208_v39, %v238_v46 }
  0xf7   :  { %vm227_vm8 = vcmp.gt.f32.partialorder %v210_v44, 0.0  ;;  %v163_v55 = vadd.f32 %v162_v47, %v7460_v48  ;;  %v164_v56 = vpop.f32.mrb[5].mxu0  ;;  %v215_v57 = vpop.f32.mrb[5].mxu1  ;;  %v6742_v58 = vpack.c.bf16 %v250_v54, %v246_v53  ;;  %v249_v63 = vsel %vm225_vm6, %v159_v40, %v237_v50 }
  0xf8   :  { %v165_v59 = vadd.f32 %v164_v56, %v7460_v48  ;;  %v216_v60 = vadd.f32 %v215_v57, %v7460_v48  ;;  %v166_v61 = vpop.f32.mrb[6].mxu0  ;;  %v217_v62 = vpop.f32.mrb[6].mxu1  ;;  %v214_v1 = vadd.f32 %v213_v52, %v7460_v48  ;;  %v245_v2 = vsel %vm221_vm4, %v155_v28, %v233_v42 }
  0xf9   :  { %v247_v3 = vsel %vm223_vm7, %v206_v32, %v235_v43  ;;  %v167_v6 = vpop.f32.mrb[7].mxu0  ;;  %v218_v7 = vpop.f32.mrb[7].mxu1  ;;  %v6736_v8 = vpack.c.bf16 %v249_v63, %v245_v2  ;;  %v251_v10 = vsel %vm227_vm8, %v210_v44, %v239_v51  ;;  %v240_v12 = vmul.f32 0.01, %v163_v55 }
  0xfa   :  { %v241_v4 = vmul.f32 0.01, %v165_v59  ;;  %v243_v5 = vmul.f32 0.01, %v216_v60  ;;  %v6740_v11 = vpack.c.bf16 %v251_v10, %v247_v3  ;;  %vm229_vm9 = vcmp.gt.f32.partialorder %v165_v59, 0.0  ;;  %v7516_v51 = vpop.permute.xlu1 %268 }
  0xfb   :  { %vm231_vm10 = vcmp.gt.f32.partialorder %v216_v60, 0.0  ;;  %6737 = vmatprep.subr.bf16.mxu0 %v6736_v8  ;;  %vm228_vm11 = vcmp.gt.f32.partialorder %v163_v55, 0.0  ;;  %v242_v16 = vmul.f32 0.01, %v214_v1  ;;  %vm230_vm12 = vcmp.gt.f32.partialorder %v214_v1, 0.0 }
  0xfc   :  { %v253_v13 = vsel %vm229_vm9, %v165_v59, %v241_v4  ;;  %v255_v14 = vsel %vm231_vm10, %v216_v60, %v243_v5  ;;  %6741 = vmatprep.subr.bf16.mxu1 %v6740_v11  ;;  %6739 = vmatpush1.bf16.msra.mxu0 %v6738_v49  ;;  %v252_v18 = vsel %vm228_vm11, %v163_v55, %v240_v12 }
  0xfd   :  { %6743 = vmatpush1.bf16.msra.mxu1 %v6742_v58  ;;  %285 = vmatprep.subr.mxu0 %v253_v13  ;;  %v254_v19 = vsel %vm230_vm12, %v214_v1, %v242_v16 }
  0xfe   :  { %368 = vmatprep.subr.mxu1 %v255_v14 }
 0x100   :  { %286 = vmatpush1.msra.mxu0 %v252_v18 }
 0x101   :  { %369 = vmatpush1.msra.mxu1 %v254_v19  ;;  %6577 = vmatmul.mubr.msk.f32.vlgmr.msra.gmra.mrb[8].mxu0 %vm271_vm13, %v7474_v17  ;;  %v946_v19 = vld [vmem:[#allocation2 + $0x10] sm:$0xff] }
 0x102   :  { %6580 = vmatmul.mubr.msk.f32.vlgmr.msra.gmra.mrb[8].mxu1 %vm271_vm13, %v7474_v17  ;;  %351 = vmatprep.mubr.f32.mxu0 %v9161_v20 }
 0x103   :  { %434 = vmatprep.mubr.f32.mxu1 %v9161_v20 }
 0x105   :  { %6578 = vmatmul.mubr.msk.f32.gmra.mrb[10].mxu0 %vm271_vm13, %v7484_v23 }
 0x106   :  { %6581 = vmatmul.mubr.msk.f32.gmra.mrb[10].mxu1 %vm271_vm13, %v7484_v23  ;;  %357 = vmatprep.mubr.f32.mxu0 %v9161_v20 }
 0x107   :  { %440 = vmatprep.mubr.f32.mxu1 %v9161_v20 }
 0x109   :  { %6579 = vmatmul.mubr.msk.f32.gmra.mrb[12].mxu0 %vm271_vm13, %v7495_v24 }
 0x10a   :  { %6582 = vmatmul.mubr.msk.f32.gmra.mrb[12].mxu1 %vm271_vm13, %v7495_v24  ;;  %571 = vmatprep.mubr.f32.mxu0 %v9161_v20 }
 0x10b   :  { %654 = vmatprep.mubr.f32.mxu1 %v9161_v20 }
 0x1d4   :  { %v347_v26 = vpop.f32.mrb[8].mxu0 }
 0x1d5   :  { %v348_v27 = vadd.f32 %v347_v26, %v7504_v25  ;;  %v430_v28 = vpop.f32.mrb[8].mxu1  ;;  %v349_v29 = vpop.f32.mrb[9].mxu0  ;;  %v948_v26 = vld [vmem:[#allocation2 + $0x90] sm:$0xff] }
 0x1d6   :  { %v431_v30 = vadd.f32 %v430_v28, %v7504_v25  ;;  %v350_v31 = vadd.f32 %v349_v29, %v7504_v25  ;;  %v432_v32 = vpop.f32.mrb[9].mxu1  ;;  %v949_v28 = vld [vmem:[#allocation2 + $0x98] sm:$0xff]  ;;  %v7530_v29 = vld [vmem:[%s9155_s6] sm:$0xff] }
 0x1d7   :  { %v459_v33 = vmul.f32 0.01, %v348_v27  ;;  %v433_v34 = vadd.f32 %v432_v32, %v7504_v25  ;;  %vm447_vm14 = vcmp.gt.f32.partialorder %v348_v27, 0.0  ;;  %v6591_v32 = vcombine.high %v946_v19, %v948_v26 }
 0x1d8   :  { %vm449_vm15 = vcmp.gt.f32.partialorder %v431_v30, 0.0  ;;  %v461_v36 = vmul.f32 0.01, %v431_v30  ;;  %v353_v37 = vpop.f32.mrb[10].mxu0  ;;  %vm448_vm1 = vcmp.gt.f32.partialorder %v350_v31, 0.0 }
 0x1d9   :  { %v436_v38 = vpop.f32.mrb[10].mxu1  ;;  %v460_v39 = vmul.f32 0.01, %v350_v31  ;;  %v354_v40 = vadd.f32 %v353_v37, %v7510_v35  ;;  %v355_v42 = vpop.f32.mrb[11].mxu0  ;;  %v471_v44 = vsel %vm447_vm14, %v348_v27, %v459_v33  ;;  %v462_v45 = vmul.f32 0.01, %v433_v34 }
 0x1da   :  { %v437_v41 = vadd.f32 %v436_v38, %v7510_v35  ;;  %v438_v43 = vpop.f32.mrb[11].mxu1  ;;  %v356_v46 = vadd.f32 %v355_v42, %v7510_v35  ;;  %v473_v54 = vsel %vm449_vm15, %v431_v30, %v461_v36  ;;  %vm450_vm6 = vcmp.gt.f32.partialorder %v433_v34, 0.0  ;;  %v947_v27 = vld [vmem:[#allocation2 + $0x18] sm:$0xff]  ;;  %v7541_v37 = vld [vmem:[%s9155_s6 + $0x8] sm:$0xff]  ;;  %v7552_v38 = vld [vmem:[%s9155_s6 + $0x10] sm:$0xff] }
 0x1db   :  { %v439_v47 = vadd.f32 %v438_v43, %v7510_v35  ;;  %vm451_vm2 = vcmp.gt.f32.partialorder %v354_v40, 0.0  ;;  %v463_v49 = vmul.f32 0.01, %v354_v40  ;;  %v472_v6 = vsel %vm448_vm1, %v350_v31, %v460_v39 }
 0x1dc   :  { %vm453_vm3 = vcmp.gt.f32.partialorder %v437_v41, 0.0  ;;  %v465_v50 = vmul.f32 0.01, %v437_v41  ;;  %vm452_vm4 = vcmp.gt.f32.partialorder %v356_v46, 0.0  ;;  %v464_v52 = vmul.f32 0.01, %v356_v46 }
 0x1dd   :  { %vm454_vm5 = vcmp.gt.f32.partialorder %v439_v47, 0.0  ;;  %v466_v53 = vmul.f32 0.01, %v439_v47  ;;  %v475_v55 = vsel %vm451_vm2, %v354_v40, %v463_v49  ;;  %v359_v57 = vpop.f32.mrb[12].mxu0  ;;  %v442_v58 = vpop.f32.mrb[12].mxu1  ;;  %v474_v7 = vsel %vm450_vm6, %v433_v34, %v462_v45 }
 0x1de   :  { %v477_v56 = vsel %vm453_vm3, %v437_v41, %v465_v50  ;;  %v6746_v59 = vpack.c.bf16 %v475_v55, %v471_v44  ;;  %v360_v61 = vadd.f32 %v359_v57, %v7516_v51  ;;  %v443_v62 = vadd.f32 %v442_v58, %v7516_v51  ;;  %v361_v63 = vpop.f32.mrb[13].mxu0  ;;  %v444_v1 = vpop.f32.mrb[13].mxu1  ;;  %v7586_v50 = vld [vmem:[%s9150_s1] sm:$0xf] }
 0x1df   :  { %v6750_v60 = vpack.c.bf16 %v477_v56, %v473_v54  ;;  %v362_v2 = vadd.f32 %v361_v63, %v7516_v51  ;;  %v445_v3 = vadd.f32 %v444_v1, %v7516_v51  ;;  %v476_v4 = vsel %vm452_vm4, %v356_v46, %v464_v52  ;;  %v7575_v41 = vpop.permute.xlu0 %495 }
 0x1e0   :  { %v478_v5 = vsel %vm454_vm5, %v439_v47, %v466_v53  ;;  %v6744_v11 = vpack.c.bf16 %v476_v4, %v472_v6  ;;  %v467_v13 = vmul.f32 0.01, %v360_v61  ;;  %v469_v14 = vmul.f32 0.01, %v443_v62  ;;  %9179 = vst [vmem:[#allocation9_spill] sm:$0xff] %v7575_v41 }
 0x1e1   :  { %v468_v8 = vmul.f32 0.01, %v362_v2  ;;  %v470_v10 = vmul.f32 0.01, %v445_v3  ;;  %v6748_v12 = vpack.c.bf16 %v478_v5, %v474_v7  ;;  %vm456_vm7 = vcmp.gt.f32.partialorder %v362_v2, 0.0 }
 0x1e2   :  { %vm458_vm8 = vcmp.gt.f32.partialorder %v445_v3, 0.0  ;;  %6745 = vmatprep.subr.bf16.mxu0 %v6744_v11  ;;  %vm455_vm9 = vcmp.gt.f32.partialorder %v360_v61, 0.0  ;;  %vm457_vm10 = vcmp.gt.f32.partialorder %v443_v62, 0.0  ;;  %v6593_v33 = vcombine.high %v947_v27, %v949_v28 }
 0x1e3   :  { %6749 = vmatprep.subr.bf16.mxu1 %v6748_v12  ;;  %v480_v16 = vsel %vm456_vm7, %v362_v2, %v468_v8  ;;  %v482_v18 = vsel %vm458_vm8, %v445_v3, %v470_v10  ;;  %6747 = vmatpush1.bf16.msra.mxu0 %v6746_v59  ;;  %v479_v30 = vsel %vm455_vm9, %v360_v61, %v467_v13  ;;  %v9160_v39 = vlaneseq  ;;  %v7600_v3 = vpop.permute.xlu0 %490 }
 0x1e4   :  { %6751 = vmatpush1.bf16.msra.mxu1 %v6750_v60  ;;  %511 = vmatprep.subr.mxu0 %v480_v16  ;;  %v481_v31 = vsel %vm457_vm10, %v443_v62, %v469_v14  ;;  %v6590_v34 = vcombine.low %v946_v19, %v948_v26  ;;  %v6592_v36 = vcombine.low %v947_v27, %v949_v28 }
 0x1e5   :  { %594 = vmatprep.subr.mxu1 %v482_v18  ;;  %v7573_v40 = vshrl.u32 %v9160_v39, 7 }
 0x1e7   :  { %512 = vmatpush1.msra.mxu0 %v479_v30  ;;  %v7589_v52 = vsub.s32 0, %v7573_v40  ;;  %v7592_v53 = vsub.s32 2, %v7573_v40  ;;  %v7595_v56 = vsub.s32 1, %v7573_v40  ;;  %v7598_v57 = vsub.s32 3, %v7573_v40 }
 0x1e8   :  { %595 = vmatpush1.msra.mxu1 %v481_v31  ;;  %6583 = vmatmul.mubr.msk.f32.vlgmr.msra.gmra.mrb[14].mxu0 %vm271_vm13, %v7530_v29 }
 0x1e9   :  { %6586 = vmatmul.mubr.msk.f32.vlgmr.msra.gmra.mrb[14].mxu1 %vm271_vm13, %v7530_v29  ;;  %577 = vmatprep.mubr.f32.mxu0 %v9161_v20  ;;  %9180 = vst [vmem:[#allocation10_spill] sm:$0xff] %v7595_v56  ;;  %9181 = vst [vmem:[#allocation11_spill] sm:$0xff] %v7598_v57  ;;  %v801_v7 = vrot.slane %v7586_v50, %v7589_v52  ;;  %v809_v8 = vrot.slane %v7586_v50, %v7592_v53 }
 0x1ea   :  { %660 = vmatprep.mubr.f32.mxu1 %v9161_v20  ;;  %972 = vmatprep.subr.bf16.mxu0 %v6591_v32  ;;  %v805_v10 = vrot.slane %v7586_v50, %v7595_v56  ;;  %v813_v11 = vrot.slane %v7586_v50, %v7598_v57 }
 0x1eb   :  { %1023 = vmatprep.subr.bf16.mxu1 %v6593_v33  ;;  %973 = vmatpush1.bf16.msra.mxu0 %v6590_v34 }
 0x1ec   :  { %1024 = vmatpush1.bf16.msra.mxu1 %v6592_v36  ;;  %6584 = vmatmul.mubr.msk.f32.gmra.mrb[16].mxu0 %vm271_vm13, %v7541_v37 }
 0x1ed   :  { %6587 = vmatmul.mubr.msk.f32.gmra.mrb[16].mxu1 %vm271_vm13, %v7541_v37  ;;  %583 = vmatprep.mubr.f32.mxu0 %v9161_v20 }
 0x1ee   :  { %666 = vmatprep.mubr.f32.mxu1 %v9161_v20 }
 0x1f0   :  { %6585 = vmatmul.mubr.msk.f32.gmra.mrb[18].mxu0 %vm271_vm13, %v7552_v38 }
 0x1f1   :  { %6588 = vmatmul.mubr.msk.f32.gmra.mrb[18].mxu1 %vm271_vm13, %v7552_v38  ;;  %1004 = vmatprep.mubr.bf16.mxu0 %v9158_v0 }
 0x1f2   :  { %1055 = vmatprep.mubr.bf16.mxu1 %v9158_v0 }
 0x1f4   :  { %6594 = vmatmul.mubr.msk.bf16.vlgmr.msra.gmra.mrb[20].mxu0 %vm111_vm0, %v7402_v9 }
 0x1f5   :  { %6596 = vmatmul.mubr.msk.bf16.vlgmr.msra.gmra.mrb[20].mxu1 %vm111_vm0, %v7402_v9  ;;  %1014 = vmatprep.mubr.bf16.mxu0 %v9158_v0  ;;  %v7577_v9 = vpop.permute.xlu1 %485 }
 0x1f6   :  { %1065 = vmatprep.mubr.bf16.mxu1 %v9158_v0 }
 0x1fc   :  { %6595 = vmatmul.mubr.msk.bf16.gmra.mrb[24].mxu0 %vm111_vm0, %v7428_v15 }
 0x1fd   :  { %6597 = vmatmul.mubr.msk.bf16.gmra.mrb[24].mxu1 %vm111_vm0, %v7428_v15  ;;  %1174 = vmatprep.mubr.f32.mxu0 %v9161_v20 }
 0x1fe   :  { %1257 = vmatprep.mubr.f32.mxu1 %v9161_v20 }
 0x2bb   :  { %v573_v42 = vpop.f32.mrb[14].mxu0 }
 0x2bc   :  { %v656_v43 = vpop.f32.mrb[14].mxu1  ;;  %v574_v44 = vadd.f32 %v573_v42, %v7577_v9  ;;  %v575_v46 = vpop.f32.mrb[15].mxu0 }
 0x2bd   :  { %v657_v45 = vadd.f32 %v656_v43, %v7577_v9  ;;  %v658_v15 = vpop.f32.mrb[15].mxu1  ;;  %v576_v47 = vadd.f32 %v575_v46, %v7577_v9 }
 0x2be   :  { %v659_v49 = vadd.f32 %v658_v15, %v7577_v9  ;;  %v673_v54 = vand.u32 2147483647, %v574_v44 }
 0x2bf   :  { %v675_v55 = vand.u32 2147483647, %v657_v45  ;;  %v674_v58 = vand.u32 2147483647, %v576_v47  ;;  %v579_v60 = vpop.f32.mrb[16].mxu0 }
 0x2c0   :  { %v676_v59 = vand.u32 2147483647, %v659_v49  ;;  %v662_v61 = vpop.f32.mrb[16].mxu1  ;;  %v677_v62 = vmax.f32 %v673_v54, 0.01  ;;  %v581_v1 = vpop.f32.mrb[17].mxu0  ;;  %v580_v6 = vadd.f32 %v579_v60, %v7600_v3 }
 0x2c1   :  { %v679_v63 = vmax.f32 %v675_v55, 0.01  ;;  %v664_v2 = vpop.f32.mrb[17].mxu1  ;;  %v678_v4 = vmax.f32 %v674_v58, 0.01  ;;  %v663_v14 = vadd.f32 %v662_v61, %v7600_v3  ;;  %v582_v27 = vadd.f32 %v581_v1, %v7600_v3 }
 0x2c2   :  { %v680_v5 = vmax.f32 %v676_v59, 0.01  ;;  %6875 = vrcp.f32 %v677_v62  ;;  %v818_v31 = vsub.f32 %v801_v7, %v580_v6  ;;  %v665_v32 = vadd.f32 %v664_v2, %v7600_v3 }
 0x2c3   :  { %6877 = vrcp.f32 %v679_v63  ;;  %v585_v12 = vpop.f32.mrb[18].mxu0  ;;  %v820_v1 = vsub.f32 %v809_v8, %v663_v14 }
 0x2c4   :  { %v668_v13 = vpop.f32.mrb[18].mxu1  ;;  %6879 = vrcp.f32 %v678_v4  ;;  %v586_v16 = vadd.f32 %v585_v12, %v7575_v41  ;;  %v587_v19 = vpop.f32.mrb[19].mxu0  ;;  %v819_v12 = vsub.f32 %v805_v10, %v582_v27 }
 0x2c5   :  { %v7614_v18 = vadd.f32 %v668_v13, %v7575_v41  ;;  %v670_v26 = vpop.f32.mrb[19].mxu1  ;;  %6881 = vrcp.f32 %v680_v5  ;;  %v7618_v28 = vadd.f32 %v587_v19, %v7575_v41 }
 0x2c6   :  { %v7621_v30 = vadd.f32 %v670_v26, %v7575_v41  ;;  %v685_v33 = vrot.slane %v586_v16, 1  ;;  %v697_v36 = vrot.slane %v586_v16, 2 }
 0x2c7   :  { %v687_v34 = vrot.slane %v7614_v18, 1  ;;  %v699_v42 = vrot.slane %v7614_v18, 2  ;;  %v686_v43 = vrot.slane %v7618_v28, 1  ;;  %v1006_v45 = vpop.f32.mrb[20].mxu0  ;;  %v698_v49 = vrot.slane %v7618_v28, 2 }
 0x2c8   :  { %v688_v44 = vrot.slane %v7621_v30, 1  ;;  %v1057_v46 = vpop.f32.mrb[20].mxu1  ;;  %v693_v15 = vmax.f32 %v586_v16, %v685_v33  ;;  %v1007_v50 = vadd.f32 %v1006_v45, %v7448_v21  ;;  %v1008_v54 = vpop.f32.mrb[21].mxu0  ;;  %v700_v60 = vrot.slane %v7621_v30, 2 }
 0x2c9   :  { %v695_v47 = vmax.f32 %v7614_v18, %v687_v34  ;;  %v1059_v55 = vpop.f32.mrb[21].mxu1  ;;  %v694_v58 = vmax.f32 %v7618_v28, %v686_v43  ;;  %v7635_v61 = vadd.f32 %v1057_v46, %v7448_v21  ;;  %v7637_v62 = vpop.f32.mrb[22].mxu0  ;;  %v821_v33 = vsub.f32 %v813_v11, %v665_v32 }
 0x2ca   :  { %v696_v59 = vmax.f32 %v7621_v30, %v688_v44  ;;  %v7639_v63 = vpop.f32.mrb[22].mxu1  ;;  %v705_v2 = vmax.f32 %v693_v15, %v697_v36  ;;  %v1086_v5 = vmul.f32 0.01, %v1007_v50  ;;  %v7641_v6 = vpop.f32.mrb[23].mxu0  ;;  %vm1074_vm11 = vcmp.gt.f32.partialorder %v1007_v50, 0.0 }
 0x2cb   :  { %v707_v4 = vmax.f32 %v695_v47, %v699_v42  ;;  %v7643_v7 = vpop.f32.mrb[23].mxu1  ;;  %v706_v13 = vmax.f32 %v694_v58, %v698_v49  ;;  %v7648_v44 = vadd.f32 %v1008_v54, %v7448_v21  ;;  %vm1076_vm12 = vcmp.gt.f32.partialorder %v7635_v61, 0.0 }
 0x2cc   :  { %v708_v19 = vmax.f32 %v696_v59, %v700_v60  ;;  %v6876_v26 = vpop.eup %6875  ;;  %v712_v34 = vrot.slane %v705_v2, %v7589_v52  ;;  %v1088_v36 = vmul.f32 0.01, %v7635_v61  ;;  %v7653_v10 = vadd.f32 %v1059_v55, %v7448_v21 }
 0x2cd   :  { %v720_v43 = vrot.slane %v707_v4, %v7589_v52  ;;  %v6878_v8 = vpop.eup %6877  ;;  %v793_v14 = vmul.f32 0.70710677, %v6876_v26  ;;  %v716_v11 = vrot.slane %v706_v13, %v7589_v52  ;;  %v7657_v45 = vsel %vm1074_vm11, %v1007_v50, %v1086_v5 }
 0x2ce   :  { %v6880_v27 = vpop.eup %6879  ;;  %v795_v42 = vmul.f32 0.70710677, %v6878_v8  ;;  %v724_v32 = vrot.slane %v708_v19, %v7589_v52  ;;  %v725_v54 = vsub.f32 %v586_v16, %v712_v34  ;;  %vm1075_vm14 = vcmp.gt.f32.partialorder %v7648_v44, 0.0 }
 0x2cf   :  { %v6882_v46 = vpop.eup %6881  ;;  %v826_v15 = vmul.f32 0.0019607844, %v793_v14  ;;  %v794_v47 = vmul.f32 0.70710677, %v6880_v27  ;;  %v822_v49 = vmul.f32 %v818_v31, %v793_v14  ;;  %v7659_v58 = vpop.f32.mrb[24].mxu0  ;;  %v727_v4 = vsub.f32 %v7614_v18, %v720_v43 }
 0x2d0   :  { %v7661_v59 = vpop.f32.mrb[24].mxu1  ;;  %v828_v60 = vmul.f32 0.0019607844, %v795_v42  ;;  %v796_v55 = vmul.f32 0.70710677, %v6882_v46  ;;  %v824_v2 = vmul.f32 %v820_v1, %v795_v42  ;;  %v1018_v50 = vpop.f32.mrb[25].mxu0 }
 0x2d1   :  { %v827_v26 = vmul.f32 0.0019607844, %v794_v47  ;;  %v830_v13 = vsub.f32 %v826_v15, %v822_v49  ;;  %v838_v8 = vsub.f32 0.0, %v826_v15  ;;  %v823_v19 = vmul.f32 %v819_v12, %v794_v47  ;;  %v1069_v5 = vpop.f32.mrb[25].mxu1  ;;  %v1020_v16 = vpop.f32.mrb[26].mxu0 }
 0x2d2   :  { %v829_v0 = vmul.f32 0.0019607844, %v796_v55  ;;  %v832_v39 = vsub.f32 %v828_v60, %v824_v2  ;;  %v840_v27 = vsub.f32 0.0, %v828_v60  ;;  %v825_v31 = vmul.f32 %v821_v33, %v796_v55  ;;  %v1071_v34 = vpop.f32.mrb[26].mxu1  ;;  %v1021_v46 = vpop.f32.mrb[27].mxu0 }
 0x2d3   :  { %6883 = verf.f32 %v830_v13  ;;  %v842_v14 = vsub.f32 %v838_v8, %v822_v49  ;;  %v831_v20 = vsub.f32 %v827_v26, %v823_v19  ;;  %v839_v21 = vsub.f32 0.0, %v827_v26  ;;  %v1072_v1 = vpop.f32.mrb[27].mxu1 }
 0x2d4   :  { %6885 = verf.f32 %v832_v39  ;;  %v844_v18 = vsub.f32 %v840_v27, %v824_v2  ;;  %v833_v43 = vsub.f32 %v829_v0, %v825_v31  ;;  %v841_v42 = vsub.f32 0.0, %v829_v0 }
 0x2d5   :  { %6887 = verf.f32 %v842_v14  ;;  %v843_v12 = vsub.f32 %v839_v21, %v823_v19  ;;  %v7668_v33 = vsel %vm1076_vm12, %v7635_v61, %v1088_v36  ;;  %v1087_v15 = vmul.f32 0.01, %v7648_v44 }
 0x2d6   :  { %6889 = verf.f32 %v844_v18  ;;  %v845_v47 = vsub.f32 %v841_v42, %v825_v31  ;;  %v729_v49 = vmul.f32 1.442695, %v725_v54  ;;  %v726_v60 = vsub.f32 %v7618_v28, %v716_v11 }
 0x2d7   :  { %6891 = verf.f32 %v831_v20  ;;  %v728_v39 = vsub.f32 %v7621_v30, %v724_v32  ;;  %v1011_v0 = vadd.f32 %v7637_v62, %v7450_v22  ;;  %v1062_v21 = vadd.f32 %v7639_v63, %v7450_v22 }
 0x2d8   :  { %6893 = verf.f32 %v843_v12  ;;  %v733_v55 = vmul.f32 1.442695, %v727_v4  ;;  %v1013_v61 = vadd.f32 %v7641_v6, %v7450_v22  ;;  %v1064_v36 = vadd.f32 %v7643_v7, %v7450_v22 }
 0x2d9   :  { %6895 = verf.f32 %v833_v43  ;;  %vm1078_vm15 = vcmp.gt.f32.partialorder %v1011_v0, 0.0  ;;  %v1090_v28 = vmul.f32 0.01, %v1011_v0  ;;  %vm1080_vm1 = vcmp.gt.f32.partialorder %v1062_v21, 0.0 }
 0x2da   :  { %6897 = verf.f32 %v845_v47  ;;  %v731_v20 = vmul.f32 1.442695, %v726_v60  ;;  %vm1077_vm2 = vcmp.gt.f32.partialorder %v7653_v10, 0.0  ;;  %v1092_v30 = vmul.f32 0.01, %v1062_v21 }
 0x2db   :  { %v735_v62 = vmul.f32 1.442695, %v728_v39  ;;  %v1089_v63 = vmul.f32 0.01, %v7653_v10  ;;  %v1102_v11 = vsel %vm1078_vm15, %v1011_v0, %v1090_v28  ;;  %vm1079_vm3 = vcmp.gt.f32.partialorder %v1013_v61, 0.0 }
 0x2dc   :  { %6899 = vpow2.f32 %v729_v49  ;;  %v6754_v6 = vpack.c.bf16 %v1102_v11, %v7657_v45  ;;  %v1104_v32 = vsel %vm1080_vm1, %v1062_v21, %v1092_v30  ;;  %v1091_v54 = vmul.f32 0.01, %v1013_v61 }
 0x2dd   :  { %v7684_v7 = vpop.eup %6883  ;;  %6901 = vpow2.f32 %v733_v55  ;;  %v6758_v2 = vpack.c.bf16 %v1104_v32, %v7668_v33  ;;  %v1093_v4 = vmul.f32 0.01, %v1064_v36  ;;  %v1019_v26 = vadd.f32 %v1018_v50, %v7460_v48 }
 0x2de   :  { %v7688_v13 = vpop.eup %6885  ;;  %6903 = vpow2.f32 %v731_v20  ;;  %vm1081_vm4 = vcmp.gt.f32.partialorder %v1064_v36, 0.0  ;;  %v1017_v8 = vadd.f32 %v7659_v58, %v7460_v48  ;;  %v1070_v19 = vadd.f32 %v1069_v5, %v7460_v48 }
 0x2df   :  { %v7693_v45 = vpop.eup %6887  ;;  %6905 = vpow2.f32 %v735_v62  ;;  %v1068_v27 = vadd.f32 %v7661_v59, %v7460_v48  ;;  %v1095_v31 = vmul.f32 0.01, %v1019_v26  ;;  %v1099_v50 = vsel %vm1075_vm14, %v7648_v44, %v1087_v15 }
 0x2e0   :  { %v7700_v16 = vpop.eup %6889  ;;  %v850_v34 = vsub.f32 %v7684_v7, %v7693_v45  ;;  %v1097_v14 = vmul.f32 0.01, %v1070_v19  ;;  %v1103_v58 = vsel %vm1079_vm3, %v1013_v61, %v1091_v54  ;;  %v1101_v5 = vsel %vm1077_vm2, %v7653_v10, %v1089_v63 }
 0x2e1   :  { %v7708_v46 = vpop.eup %6891  ;;  %v852_v59 = vsub.f32 %v7688_v13, %v7700_v16  ;;  %v6752_v1 = vpack.c.bf16 %v1103_v58, %v1099_v50  ;;  %v1105_v44 = vsel %vm1081_vm4, %v1064_v36, %v1093_v4  ;;  %vm1083_vm5 = vcmp.gt.f32.partialorder %v1019_v26, 0.0 }
 0x2e2   :  { %v7713_v18 = vpop.eup %6893  ;;  %v6756_v43 = vpack.c.bf16 %v1105_v44, %v1101_v5  ;;  %v1107_v42 = vsel %vm1083_vm5, %v1019_v26, %v1095_v31  ;;  %vm1085_vm6 = vcmp.gt.f32.partialorder %v1070_v19, 0.0  ;;  %v1094_v10 = vmul.f32 0.01, %v1017_v8 }
 0x2e3   :  { %v7715_v12 = vpop.eup %6895  ;;  %v851_v33 = vsub.f32 %v7708_v46, %v7713_v18  ;;  %6753 = vmatprep.subr.bf16.mxu0 %v6752_v1  ;;  %v1109_v15 = vsel %vm1085_vm6, %v1070_v19, %v1097_v14  ;;  %vm1082_vm7 = vcmp.gt.f32.partialorder %v1017_v8, 0.0  ;;  %v1096_v49 = vmul.f32 0.01, %v1068_v27 }
 0x2e4   :  { %v7719_v47 = vpop.eup %6897  ;;  %6757 = vmatprep.subr.bf16.mxu1 %v6756_v43  ;;  %6755 = vmatpush1.bf16.msra.mxu0 %v6754_v6  ;;  %vm1084_vm8 = vcmp.gt.f32.partialorder %v1068_v27, 0.0  ;;  %v1106_v21 = vsel %vm1082_vm7, %v1017_v8, %v1094_v10  ;;  %v9182_v20 = vmov 0.0  }
 0x2e5   :  { %v853_v60 = vsub.f32 %v7715_v12, %v7719_v47  ;;  %6759 = vmatpush1.bf16.msra.mxu1 %v6758_v2  ;;  %1114 = vmatprep.subr.mxu0 %v1107_v42  ;;  %v1108_v61 = vsel %vm1084_vm8, %v1068_v27, %v1096_v49 }
 0x2e6   :  { %v6900_v39 = vpop.eup %6899  ;;  %1197 = vmatprep.subr.mxu1 %v1109_v15 }
 0x2e7   :  { %v6902_v0 = vpop.eup %6901  ;;  %v741_v28 = vrot.slane %v6900_v39, 1 }
 0x2e8   :  { %v6904_v55 = vpop.eup %6903  ;;  %1115 = vmatpush1.msra.mxu0 %v1106_v21  ;;  %v743_v30 = vrot.slane %v6902_v0, 1  ;;  %v755_v54 = vrot.slane %v6902_v0, 2 }
 0x2e9   :  { %v6906_v36 = vpop.eup %6905  ;;  %1198 = vmatpush1.msra.mxu1 %v1108_v61  ;;  %6598 = vmatmul.mubr.msk.f32.vlgmr.msra.gmra.mrb[28].mxu0 %vm271_vm13, %v7474_v17  ;;  %v742_v62 = vrot.slane %v6904_v55, 1  ;;  %v749_v11 = vadd.f32 %v6900_v39, %v741_v28  ;;  %v754_v26 = vrot.slane %v6904_v55, 2 }
 0x2ea   :  { %6601 = vmatmul.mubr.msk.f32.vlgmr.msra.gmra.mrb[28].mxu1 %vm271_vm13, %v7474_v17  ;;  %1180 = vmatprep.mubr.f32.mxu0 %v9182_v20  ;;  %v744_v63 = vrot.slane %v6906_v36, 1  ;;  %v751_v6 = vadd.f32 %v6902_v0, %v743_v30  ;;  %v753_v17 = vrot.slane %v6900_v39, 2  ;;  %v756_v8 = vrot.slane %v6906_v36, 2 }
 0x2eb   :  { %1263 = vmatprep.mubr.f32.mxu1 %v9182_v20  ;;  %v750_v32 = vadd.f32 %v6904_v55, %v742_v62 }
 0x2ec   :  { %v752_v2 = vadd.f32 %v6906_v36, %v744_v63  ;;  %v761_v4 = vadd.f32 %v753_v17, %v749_v11 }
 0x2ed   :  { %6599 = vmatmul.mubr.msk.f32.gmra.mrb[30].mxu0 %vm271_vm13, %v7484_v23  ;;  %v762_v19 = vadd.f32 %v754_v26, %v750_v32 }
 0x2ee   :  { %6602 = vmatmul.mubr.msk.f32.gmra.mrb[30].mxu1 %vm271_vm13, %v7484_v23  ;;  %1186 = vmatprep.mubr.f32.mxu0 %v9182_v20  ;;  %v763_v23 = vadd.f32 %v755_v54, %v751_v6  ;;  %v764_v27 = vadd.f32 %v756_v8, %v752_v2  ;;  %6907 = vrcp.f32 %v761_v4  ;;  %v7336_v2 = vmov 1966171168  }
 0x2ef   :  { %1269 = vmatprep.mubr.f32.mxu1 %v9182_v20  ;;  %v918_v4 = vunpack.c.l.s4 %v7336_v2 }
 0x2f0   :  { %6909 = vrcp.f32 %v763_v23 }
 0x2f1   :  { %6600 = vmatmul.mubr.msk.f32.gmra.mrb[32].mxu0 %vm271_vm13, %v7495_v24  ;;  %6911 = vrcp.f32 %v762_v19 }
 0x2f2   :  { %6603 = vmatmul.mubr.msk.f32.gmra.mrb[32].mxu1 %vm271_vm13, %v7495_v24  ;;  %1376 = vmatprep.mubr.f32.mxu0 %v9182_v20  ;;  %6913 = vrcp.f32 %v764_v27  ;;  %v919_v27 = vunpack.c.0.s8 %v918_v4 }
 0x2f3   :  { %1459 = vmatprep.mubr.f32.mxu1 %v9182_v20 }
 0x2f8   :  { %v6908_v31 = vpop.eup %6907 }
 0x2f9   :  { %v772_v5 = vrot.slane %v6908_v31, %v7589_v52 }
 0x2fa   :  { %v6910_v50 = vpop.eup %6909 }
 0x2fb   :  { %v6912_v14 = vpop.eup %6911  ;;  %v780_v24 = vrot.slane %v6910_v50, %v7589_v52  ;;  %v785_v43 = vmul.f32 %v6900_v39, %v772_v5 }
 0x2fc   :  { %v6914_v58 = vpop.eup %6913  ;;  %v776_v1 = vrot.slane %v6912_v14, %v7589_v52 }
 0x2fd   :  { %v784_v44 = vrot.slane %v6914_v58, %v7589_v52  ;;  %v787_v42 = vmul.f32 %v6902_v0, %v780_v24  ;;  %v854_v15 = vmul.f32 %v850_v34, %v785_v43  ;;  %v7755_v43 = vsub.s32 %v919_v27, %v7573_v40 }
 0x2fe   :  { %v786_v12 = vmul.f32 %v6904_v55, %v776_v1 }
 0x2ff   :  { %v788_v10 = vmul.f32 %v6906_v36, %v784_v44  ;;  %v856_v47 = vmul.f32 %v852_v59, %v787_v42  ;;  %v862_v61 = vrot.slane %v854_v15, 1  ;;  %v874_v36 = vrot.slane %v854_v15, 2 }
 0x300   :  { %v855_v49 = vmul.f32 %v851_v33, %v786_v12 }
 0x301   :  { %v857_v21 = vmul.f32 %v853_v60, %v788_v10  ;;  %v864_v28 = vrot.slane %v856_v47, 1  ;;  %v870_v0 = vadd.f32 %v862_v61, %v854_v15  ;;  %v876_v62 = vrot.slane %v856_v47, 2 }
 0x302   :  { %v863_v30 = vrot.slane %v855_v49, 1  ;;  %v875_v45 = vrot.slane %v855_v49, 2 }
 0x303   :  { %v865_v39 = vrot.slane %v857_v21, 1  ;;  %v872_v55 = vadd.f32 %v864_v28, %v856_v47  ;;  %v877_v34 = vrot.slane %v857_v21, 2  ;;  %v882_v11 = vadd.f32 %v874_v36, %v870_v0 }
 0x304   :  { %v871_v63 = vadd.f32 %v863_v30, %v855_v49  ;;  %v9183_v30 = vlaneseq }
 0x305   :  { %v873_v7 = vadd.f32 %v865_v39, %v857_v21  ;;  %v884_v13 = vadd.f32 %v876_v62, %v872_v55  ;;  %v886_v6 = vmul.f32 0.5, %v882_v11 }
 0x306   :  { %v883_v16 = vadd.f32 %v875_v45, %v871_v63  ;;  %vm7760_vm9 = vcmp.lt.s32.totalorder %v9183_v30, 512 }
 0x307   :  { %v885_v59 = vadd.f32 %v877_v34, %v873_v7  ;;  %v888_v46 = vmul.f32 0.5, %v884_v13  ;;  %v890_v60 = vmax.f32 %v886_v6, 1e-09 }
 0x308   :  { %v887_v18 = vmul.f32 0.5, %v883_v16 }
 0x309   :  { %v889_v33 = vmul.f32 0.5, %v885_v59  ;;  %v892_v17 = vmax.f32 %v888_v46, 1e-09  ;;  %6915 = vlog2.f32 %v890_v60 }
 0x30a   :  { %v891_v32 = vmax.f32 %v887_v18, 1e-09 }
 0x30b   :  { %v893_v54 = vmax.f32 %v889_v33, 1e-09 }
 0x30c   :  { %6917 = vlog2.f32 %v891_v32 }
 0x30d   :  { %6919 = vlog2.f32 %v892_v17 }
 0x30e   :  { %6921 = vlog2.f32 %v893_v54 }
 0x313   :  { %v6916_v26 = vpop.eup %6915 }
 0x314   :  { %v895_v8 = vmul.f32 0.6931472, %v6916_v26 }
 0x316   :  { %v6918_v23 = vpop.eup %6917  ;;  %v903_v58 = vmul.f32 1.442695, %v895_v8 }
 0x317   :  { %v6920_v19 = vpop.eup %6919  ;;  %v897_v31 = vmul.f32 0.6931472, %v6918_v23 }
 0x318   :  { %v6922_v50 = vpop.eup %6921  ;;  %v899_v14 = vmul.f32 0.6931472, %v6920_v19  ;;  %v907_v44 = vsub.f32 0.0, %v903_v58 }
 0x319   :  { %v901_v5 = vmul.f32 0.6931472, %v6922_v50  ;;  %v904_v24 = vmul.f32 1.442695, %v897_v31 }
 0x31a   :  { %v905_v1 = vmul.f32 1.442695, %v899_v14 }
 0x31b   :  { %v906_v42 = vmul.f32 1.442695, %v901_v5  ;;  %v908_v12 = vsub.f32 0.0, %v904_v24 }
 0x31c   :  { %v909_v10 = vsub.f32 0.0, %v905_v1 }
 0x31d   :  { %v910_v15 = vsub.f32 0.0, %v906_v42  ;;  %v915_v47 = vcombine.low %v907_v44, %v908_v12 }
 0x31f   :  { %v916_v49 = vcombine.low %v909_v10, %v910_v15  ;;  %v923_v21 = vrot.slane %v915_v47, %v7755_v43 }
 0x321   :  { %v930_v61 = vrot.slane %v916_v49, %v7755_v43 }
 0x323   :  { %v931_v28 = vcombine.low %v923_v21, %v930_v61 }
 0x325   :  { %v938_v0 = vrot.slane %v931_v28, %v7755_v43 }
 0x327   :  { %944 = vst.msk [vmem:[#allocation5] sm:$0xf] %vm7760_vm9, %v938_v0 }
 0x3bc   :  { %v1176_v40 = vpop.f32.mrb[28].mxu0 }
 0x3bd   :  { %v1177_v55 = vadd.f32 %v1176_v40, %v7504_v25  ;;  %v1259_v36 = vpop.f32.mrb[28].mxu1  ;;  %v1178_v62 = vpop.f32.mrb[29].mxu0 }
 0x3be   :  { %v1260_v63 = vadd.f32 %v1259_v36, %v7504_v25  ;;  %v1179_v7 = vadd.f32 %v1178_v62, %v7504_v25  ;;  %v1261_v45 = vpop.f32.mrb[29].mxu1 }
 0x3bf   :  { %v1288_v34 = vmul.f32 0.01, %v1177_v55  ;;  %v1262_v11 = vadd.f32 %v1261_v45, %v7504_v25  ;;  %vm1276_vm10 = vcmp.gt.f32.partialorder %v1177_v55, 0.0  ;;  %v1748_v45 = vld [vmem:[#allocation2 + $0x28] sm:$0xff] }
 0x3c0   :  { %vm1278_vm11 = vcmp.gt.f32.partialorder %v1260_v63, 0.0  ;;  %v1290_v13 = vmul.f32 0.01, %v1260_v63  ;;  %v1182_v16 = vpop.f32.mrb[30].mxu0  ;;  %vm1277_vm12 = vcmp.gt.f32.partialorder %v1179_v7, 0.0 }
 0x3c1   :  { %v1265_v59 = vpop.f32.mrb[30].mxu1  ;;  %v1289_v6 = vmul.f32 0.01, %v1179_v7  ;;  %v1183_v46 = vadd.f32 %v1182_v16, %v7510_v35  ;;  %v1184_v33 = vpop.f32.mrb[31].mxu0  ;;  %v1300_v17 = vsel %vm1276_vm10, %v1177_v55, %v1288_v34  ;;  %v1291_v32 = vmul.f32 0.01, %v1262_v11 }
 0x3c2   :  { %v1266_v18 = vadd.f32 %v1265_v59, %v7510_v35  ;;  %v1267_v60 = vpop.f32.mrb[31].mxu1  ;;  %v1185_v54 = vadd.f32 %v1184_v33, %v7510_v35  ;;  %v1302_v19 = vsel %vm1278_vm11, %v1260_v63, %v1290_v13  ;;  %vm1279_vm3 = vcmp.gt.f32.partialorder %v1262_v11, 0.0  ;;  %v1747_v63 = vld [vmem:[#allocation2 + $0x20] sm:$0xff]  ;;  %v1750_v34 = vld [vmem:[#allocation2 + $0xa8] sm:$0xff] }
 0x3c3   :  { %v1268_v2 = vadd.f32 %v1267_v60, %v7510_v35  ;;  %vm1280_vm14 = vcmp.gt.f32.partialorder %v1183_v46, 0.0  ;;  %v1292_v4 = vmul.f32 0.01, %v1183_v46  ;;  %v1301_v49 = vsel %vm1277_vm12, %v1179_v7, %v1289_v6  ;;  %v1749_v7 = vld [vmem:[#allocation2 + $0xa0] sm:$0xff] }
 0x3c4   :  { %vm1282_vm15 = vcmp.gt.f32.partialorder %v1266_v18, 0.0  ;;  %v1294_v26 = vmul.f32 0.01, %v1266_v18  ;;  %vm1281_vm1 = vcmp.gt.f32.partialorder %v1185_v54, 0.0  ;;  %v1293_v23 = vmul.f32 0.01, %v1185_v54 }
 0x3c5   :  { %vm1283_vm2 = vcmp.gt.f32.partialorder %v1268_v2, 0.0  ;;  %v1295_v8 = vmul.f32 0.01, %v1268_v2  ;;  %v1304_v27 = vsel %vm1280_vm14, %v1183_v46, %v1292_v4  ;;  %v1188_v50 = vpop.f32.mrb[32].mxu0  ;;  %v1271_v14 = vpop.f32.mrb[32].mxu1  ;;  %v1303_v21 = vsel %vm1279_vm3, %v1262_v11, %v1291_v32 }
 0x3c6   :  { %v1306_v31 = vsel %vm1282_vm15, %v1266_v18, %v1294_v26  ;;  %v6762_v58 = vpack.c.bf16 %v1304_v27, %v1300_v17  ;;  %v1189_v24 = vadd.f32 %v1188_v50, %v7516_v51  ;;  %v1272_v1 = vadd.f32 %v1271_v14, %v7516_v51  ;;  %v1190_v44 = vpop.f32.mrb[33].mxu0  ;;  %v1273_v42 = vpop.f32.mrb[33].mxu1  ;;  %v7805_v18 = vld [vmem:[%s9151_s2] sm:$0xff]  }
 0x3c7   :  { %v6766_v5 = vpack.c.bf16 %v1306_v31, %v1302_v19  ;;  %v1191_v12 = vadd.f32 %v1190_v44, %v7516_v51  ;;  %v1274_v10 = vadd.f32 %v1273_v42, %v7516_v51  ;;  %v1305_v15 = vsel %vm1281_vm1, %v1185_v54, %v1293_v23 }
 0x3c8   :  { %v1307_v47 = vsel %vm1283_vm2, %v1268_v2, %v1295_v8  ;;  %v6760_v30 = vpack.c.bf16 %v1305_v15, %v1301_v49  ;;  %v1296_v40 = vmul.f32 0.01, %v1189_v24  ;;  %v1298_v55 = vmul.f32 0.01, %v1272_v1  ;;  %v6589_v8 = vld [vmem:[%s9150_s1 + $0x4] sm:$0xf] }
 0x3c9   :  { %v1297_v61 = vmul.f32 0.01, %v1191_v12  ;;  %v1299_v28 = vmul.f32 0.01, %v1274_v10  ;;  %v6764_v0 = vpack.c.bf16 %v1307_v47, %v1303_v21  ;;  %vm1285_vm4 = vcmp.gt.f32.partialorder %v1191_v12, 0.0 }
 0x3ca   :  { %vm1287_vm5 = vcmp.gt.f32.partialorder %v1274_v10, 0.0  ;;  %6761 = vmatprep.subr.bf16.mxu0 %v6760_v30  ;;  %vm1284_vm6 = vcmp.gt.f32.partialorder %v1189_v24, 0.0  ;;  %vm1286_vm7 = vcmp.gt.f32.partialorder %v1272_v1, 0.0  ;;  %v6612_v16 = vcombine.high %v1747_v63, %v1749_v7 }
 0x3cb   :  { %6765 = vmatprep.subr.bf16.mxu1 %v6764_v0  ;;  %v1309_v36 = vsel %vm1285_vm4, %v1191_v12, %v1297_v61  ;;  %v1311_v62 = vsel %vm1287_vm5, %v1274_v10, %v1299_v28  ;;  %6763 = vmatpush1.bf16.msra.mxu0 %v6762_v58  ;;  %v1308_v11 = vsel %vm1284_vm6, %v1189_v24, %v1296_v40 }
 0x3cc   :  { %6767 = vmatpush1.bf16.msra.mxu1 %v6766_v5  ;;  %1316 = vmatprep.subr.mxu0 %v1309_v36  ;;  %v1310_v13 = vsel %vm1286_vm7, %v1272_v1, %v1298_v55  ;;  %v6614_v59 = vcombine.high %v1748_v45, %v1750_v34  ;;  %v6611_v6 = vcombine.low %v1747_v63, %v1749_v7 }
 0x3cd   :  { %1399 = vmatprep.subr.mxu1 %v1311_v62  ;;  %v6613_v46 = vcombine.low %v1748_v45, %v1750_v34  ;;  %v1606_v42 = vrot.slane %v6589_v8, %v7589_v52  ;;  %v1614_v15 = vrot.slane %v6589_v8, %v7592_v53  ;;  %v1610_v47 = vrot.slane %v6589_v8, %v7595_v56 }
 0x3ce   :  { %v1618_v49 = vrot.slane %v6589_v8, %v7598_v57 }
 0x3cf   :  { %1317 = vmatpush1.msra.mxu0 %v1308_v11 }
 0x3d0   :  { %1400 = vmatpush1.msra.mxu1 %v1310_v13  ;;  %6604 = vmatmul.mubr.msk.f32.vlgmr.msra.gmra.mrb[34].mxu0 %vm271_vm13, %v7530_v29 }
 0x3d1   :  { %6607 = vmatmul.mubr.msk.f32.vlgmr.msra.gmra.mrb[34].mxu1 %vm271_vm13, %v7530_v29  ;;  %1382 = vmatprep.mubr.f32.mxu0 %v9182_v20  ;;  %v9186_v29 = vmov 0  }
 0x3d2   :  { %1465 = vmatprep.mubr.f32.mxu1 %v9182_v20  ;;  %1773 = vmatprep.subr.bf16.mxu0 %v6612_v16 }
 0x3d3   :  { %1824 = vmatprep.subr.bf16.mxu1 %v6614_v59  ;;  %1774 = vmatpush1.bf16.msra.mxu0 %v6611_v6 }
 0x3d4   :  { %1825 = vmatpush1.bf16.msra.mxu1 %v6613_v46  ;;  %6605 = vmatmul.mubr.msk.f32.gmra.mrb[36].mxu0 %vm271_vm13, %v7541_v37 }
 0x3d5   :  { %6608 = vmatmul.mubr.msk.f32.gmra.mrb[36].mxu1 %vm271_vm13, %v7541_v37  ;;  %1388 = vmatprep.mubr.f32.mxu0 %v9182_v20  ;;  %v7816_v37 = vld [vmem:[%s9151_s2 + $0x8] ss:$0 sps:$4 sm:$0xff]  }
 0x3d6   :  { %1471 = vmatprep.mubr.f32.mxu1 %v9182_v20 }
 0x3d8   :  { %6606 = vmatmul.mubr.msk.f32.gmra.mrb[38].mxu0 %vm271_vm13, %v7552_v38 }
 0x3d9   :  { %6609 = vmatmul.mubr.msk.f32.gmra.mrb[38].mxu1 %vm271_vm13, %v7552_v38  ;;  %1805 = vmatprep.mubr.bf16.mxu0 %v9186_v29 }
 0x3da   :  { %1856 = vmatprep.mubr.bf16.mxu1 %v9186_v29 }
 0x3dc   :  { %6615 = vmatmul.mubr.msk.bf16.vlgmr.msra.gmra.mrb[40].mxu0 %vm111_vm0, %v7805_v18 }
 0x3dd   :  { %6617 = vmatmul.mubr.msk.bf16.vlgmr.msra.gmra.mrb[40].mxu1 %vm111_vm0, %v7805_v18  ;;  %1815 = vmatprep.mubr.bf16.mxu0 %v9186_v29 }
 0x3de   :  { %1866 = vmatprep.mubr.bf16.mxu1 %v9186_v29 }
 0x3e4   :  { %6616 = vmatmul.mubr.msk.bf16.gmra.mrb[44].mxu0 %vm111_vm0, %v7816_v37 }
 0x3e5   :  { %6618 = vmatmul.mubr.msk.bf16.gmra.mrb[44].mxu1 %vm111_vm0, %v7816_v37  ;;  %1975 = vmatprep.mubr.f32.mxu0 %v9182_v20 }
 0x3e6   :  { %2058 = vmatprep.mubr.f32.mxu1 %v9182_v20 }
 0x4a3   :  { %v1378_v38 = vpop.f32.mrb[34].mxu0 }
 0x4a4   :  { %v1461_v33 = vpop.f32.mrb[34].mxu1  ;;  %v1379_v60 = vadd.f32 %v1378_v38, %v7577_v9  ;;  %v1380_v32 = vpop.f32.mrb[35].mxu0 }
 0x4a5   :  { %v1462_v17 = vadd.f32 %v1461_v33, %v7577_v9  ;;  %v1463_v54 = vpop.f32.mrb[35].mxu1  ;;  %v1381_v2 = vadd.f32 %v1380_v32, %v7577_v9  ;;  %v9187_v32 = vld [vmem:[#allocation8_spill] sm:$0xff] }
 0x4a6   :  { %v1464_v4 = vadd.f32 %v1463_v54, %v7577_v9  ;;  %v1478_v26 = vand.u32 2147483647, %v1379_v60 }
 0x4a7   :  { %v1480_v23 = vand.u32 2147483647, %v1462_v17  ;;  %v1479_v19 = vand.u32 2147483647, %v1381_v2  ;;  %v1384_v31 = vpop.f32.mrb[36].mxu0 }
 0x4a8   :  { %v1481_v27 = vand.u32 2147483647, %v1464_v4  ;;  %v1467_v50 = vpop.f32.mrb[36].mxu1  ;;  %v1482_v14 = vmax.f32 %v1478_v26, 0.01  ;;  %v1386_v5 = vpop.f32.mrb[37].mxu0  ;;  %v1385_v12 = vadd.f32 %v1384_v31, %v7600_v3 }
 0x4a9   :  { %v1484_v58 = vmax.f32 %v1480_v23, 0.01  ;;  %v1469_v24 = vpop.f32.mrb[37].mxu1  ;;  %v1483_v1 = vmax.f32 %v1479_v19, 0.01  ;;  %v1468_v10 = vadd.f32 %v1467_v50, %v7600_v3  ;;  %v1387_v28 = vadd.f32 %v1386_v5, %v7600_v3 }
 0x4aa   :  { %v1485_v44 = vmax.f32 %v1481_v27, 0.01  ;;  %6923 = vrcp.f32 %v1482_v14  ;;  %v1470_v36 = vadd.f32 %v1469_v24, %v7600_v3  ;;  %v1623_v7 = vsub.f32 %v1606_v42, %v1385_v12 }
 0x4ab   :  { %6925 = vrcp.f32 %v1484_v58  ;;  %v1390_v21 = vpop.f32.mrb[38].mxu0  ;;  %v1625_v45 = vsub.f32 %v1614_v15, %v1468_v10  ;;  %v1624_v50 = vsub.f32 %v1610_v47, %v1387_v28 }
 0x4ac   :  { %v1473_v61 = vpop.f32.mrb[38].mxu1  ;;  %6927 = vrcp.f32 %v1483_v1  ;;  %v1391_v30 = vadd.f32 %v1390_v21, %v7575_v41  ;;  %v1392_v40 = vpop.f32.mrb[39].mxu0 }
 0x4ad   :  { %v1474_v0 = vadd.f32 %v1473_v61, %v7575_v41  ;;  %v1475_v55 = vpop.f32.mrb[39].mxu1  ;;  %6929 = vrcp.f32 %v1485_v44  ;;  %v1393_v62 = vadd.f32 %v1392_v40, %v7575_v41  ;;  %v1626_v44 = vsub.f32 %v1618_v49, %v1470_v36 }
 0x4ae   :  { %v7843_v63 = vadd.f32 %v1475_v55, %v7575_v41  ;;  %v1490_v34 = vrot.slane %v1391_v30, 1  ;;  %v1502_v13 = vrot.slane %v1391_v30, 2 }
 0x4af   :  { %v1492_v11 = vrot.slane %v1474_v0, 1  ;;  %v1504_v16 = vrot.slane %v1474_v0, 2  ;;  %v1491_v59 = vrot.slane %v1393_v62, 1  ;;  %v1807_v46 = vpop.f32.mrb[40].mxu0  ;;  %v1503_v17 = vrot.slane %v1393_v62, 2 }
 0x4b0   :  { %v1493_v6 = vrot.slane %v7843_v63, 1  ;;  %v1858_v38 = vpop.f32.mrb[40].mxu1  ;;  %v1498_v33 = vmax.f32 %v1391_v30, %v1490_v34  ;;  %v1808_v54 = vadd.f32 %v1807_v46, %v9187_v32  ;;  %v1809_v2 = vpop.f32.mrb[41].mxu0  ;;  %v1505_v8 = vrot.slane %v7843_v63, 2 }
 0x4b1   :  { %v1500_v60 = vmax.f32 %v1474_v0, %v1492_v11  ;;  %v1860_v4 = vpop.f32.mrb[41].mxu1  ;;  %v1499_v26 = vmax.f32 %v1393_v62, %v1491_v59  ;;  %v7850_v19 = vadd.f32 %v1858_v38, %v9187_v32  ;;  %v7852_v27 = vpop.f32.mrb[42].mxu0  ;;  %v7863_v61 = vadd.f32 %v1809_v2, %v9187_v32 }
 0x4b2   :  { %v1501_v23 = vmax.f32 %v7843_v63, %v1493_v6  ;;  %v7854_v31 = vpop.f32.mrb[42].mxu1  ;;  %v1510_v14 = vmax.f32 %v1498_v33, %v1502_v13  ;;  %v1887_v5 = vmul.f32 0.01, %v1808_v54  ;;  %v7856_v24 = vpop.f32.mrb[43].mxu0  ;;  %vm1875_vm8 = vcmp.gt.f32.partialorder %v1808_v54, 0.0 }
 0x4b3   :  { %v1512_v58 = vmax.f32 %v1500_v60, %v1504_v16  ;;  %v7858_v1 = vpop.f32.mrb[43].mxu1  ;;  %v1511_v42 = vmax.f32 %v1499_v26, %v1503_v17  ;;  %v7866_v47 = vadd.f32 %v1860_v4, %v9187_v32  ;;  %vm1877_vm10 = vcmp.gt.f32.partialorder %v7850_v19, 0.0 }
 0x4b4   :  { %v1513_v12 = vmax.f32 %v1501_v23, %v1505_v8  ;;  %v6924_v10 = vpop.eup %6923  ;;  %v1517_v15 = vrot.slane %v1510_v14, %v7589_v52  ;;  %v1889_v49 = vmul.f32 0.01, %v7850_v19  ;;  %v7872_v16 = vsel %vm1875_vm8, %v1808_v54, %v1887_v5 }
 0x4b5   :  { %v1525_v21 = vrot.slane %v1512_v58, %v7589_v52  ;;  %v6926_v28 = vpop.eup %6925  ;;  %v1598_v40 = vmul.f32 0.70710677, %v6924_v10  ;;  %v1521_v55 = vrot.slane %v1511_v42, %v7589_v52  ;;  %vm1876_vm11 = vcmp.gt.f32.partialorder %v7863_v61, 0.0 }
 0x4b6   :  { %v6928_v36 = vpop.eup %6927  ;;  %v1600_v34 = vmul.f32 0.70710677, %v6926_v28  ;;  %v1530_v11 = vsub.f32 %v1391_v30, %v1517_v15  ;;  %v1529_v13 = vrot.slane %v1513_v12, %v7589_v52  ;;  %vm1878_vm15 = vcmp.gt.f32.partialorder %v7866_v47, 0.0 }
 0x4b7   :  { %v6930_v59 = vpop.eup %6929  ;;  %v1631_v6 = vmul.f32 0.0019607844, %v1598_v40  ;;  %v1599_v46 = vmul.f32 0.70710677, %v6928_v36  ;;  %v1627_v38 = vmul.f32 %v1623_v7, %v1598_v40  ;;  %v1532_v33 = vsub.f32 %v1474_v0, %v1525_v21  ;;  %v7874_v60 = vpop.f32.mrb[44].mxu0 }
 0x4b8   :  { %v7876_v17 = vpop.f32.mrb[44].mxu1  ;;  %v1633_v2 = vmul.f32 0.0019607844, %v1600_v34  ;;  %v1601_v4 = vmul.f32 0.70710677, %v6930_v59  ;;  %v1629_v26 = vmul.f32 %v1625_v45, %v1600_v34  ;;  %v1531_v23 = vsub.f32 %v1393_v62, %v1521_v55  ;;  %v1819_v42 = vpop.f32.mrb[45].mxu0 }
 0x4b9   :  { %v1632_v8 = vmul.f32 0.0019607844, %v1599_v46  ;;  %v1635_v14 = vsub.f32 %v1631_v6, %v1627_v38  ;;  %v1643_v30 = vsub.f32 0.0, %v1631_v6  ;;  %v1628_v58 = vmul.f32 %v1624_v50, %v1599_v46  ;;  %v1870_v54 = vpop.f32.mrb[45].mxu1  ;;  %v1821_v7 = vpop.f32.mrb[46].mxu0 }
 0x4ba   :  { %v1634_v5 = vmul.f32 0.0019607844, %v1601_v4  ;;  %v1637_v12 = vsub.f32 %v1633_v2, %v1629_v26  ;;  %v1645_v10 = vsub.f32 0.0, %v1633_v2  ;;  %v1630_v15 = vmul.f32 %v1626_v44, %v1601_v4  ;;  %v1872_v0 = vpop.f32.mrb[46].mxu1  ;;  %v1822_v36 = vpop.f32.mrb[47].mxu0 }
 0x4bb   :  { %6931 = verf.f32 %v1635_v14  ;;  %v1647_v21 = vsub.f32 %v1643_v30, %v1627_v38  ;;  %v1636_v28 = vsub.f32 %v1632_v8, %v1628_v58  ;;  %v1644_v40 = vsub.f32 0.0, %v1632_v8  ;;  %v1873_v59 = vpop.f32.mrb[47].mxu1 }
 0x4bc   :  { %6933 = verf.f32 %v1637_v12  ;;  %v1649_v62 = vsub.f32 %v1645_v10, %v1629_v26  ;;  %v1638_v45 = vsub.f32 %v1634_v5, %v1630_v15  ;;  %v1646_v55 = vsub.f32 0.0, %v1634_v5 }
 0x4bd   :  { %6935 = verf.f32 %v1647_v21  ;;  %v1648_v50 = vsub.f32 %v1644_v40, %v1628_v58  ;;  %v7882_v44 = vsel %vm1877_vm10, %v7850_v19, %v1889_v49  ;;  %v1888_v34 = vmul.f32 0.01, %v7863_v61 }
 0x4be   :  { %6937 = verf.f32 %v1649_v62  ;;  %v1650_v6 = vsub.f32 %v1646_v55, %v1630_v15  ;;  %v1534_v46 = vmul.f32 1.442695, %v1530_v11  ;;  %v1533_v38 = vsub.f32 %v7843_v63, %v1529_v13 }
 0x4bf   :  { %6939 = verf.f32 %v1636_v28  ;;  %v1538_v2 = vmul.f32 1.442695, %v1532_v33  ;;  %v1812_v4 = vadd.f32 %v7852_v27, %v7450_v22  ;;  %v1863_v26 = vadd.f32 %v7854_v31, %v7450_v22 }
 0x4c0   :  { %6941 = verf.f32 %v1648_v50  ;;  %v1536_v8 = vmul.f32 1.442695, %v1531_v23  ;;  %v1814_v19 = vadd.f32 %v7856_v24, %v7450_v22  ;;  %v1865_v49 = vadd.f32 %v7858_v1, %v7450_v22 }
 0x4c1   :  { %6943 = verf.f32 %v1638_v45  ;;  %vm1879_vm12 = vcmp.gt.f32.partialorder %v1812_v4, 0.0  ;;  %v1891_v11 = vmul.f32 0.01, %v1812_v4  ;;  %vm1881_vm14 = vcmp.gt.f32.partialorder %v1863_v26, 0.0 }
 0x4c2   :  { %6945 = verf.f32 %v1650_v6  ;;  %v1540_v63 = vmul.f32 1.442695, %v1533_v38  ;;  %v1893_v27 = vmul.f32 0.01, %v1863_v26  ;;  %v1890_v31 = vmul.f32 0.01, %v7866_v47 }
 0x4c3   :  { %6947 = vpow2.f32 %v1534_v46  ;;  %v1903_v13 = vsel %vm1879_vm12, %v1812_v4, %v1891_v11  ;;  %vm1880_vm1 = vcmp.gt.f32.partialorder %v1814_v19, 0.0  ;;  %v1892_v23 = vmul.f32 0.01, %v1814_v19 }
 0x4c4   :  { %6949 = vpow2.f32 %v1538_v2  ;;  %v6770_v24 = vpack.c.bf16 %v1903_v13, %v7872_v16  ;;  %v1905_v33 = vsel %vm1881_vm14, %v1863_v26, %v1893_v27  ;;  %v1894_v30 = vmul.f32 0.01, %v1865_v49 }
 0x4c5   :  { %v7897_v1 = vpop.eup %6931  ;;  %6951 = vpow2.f32 %v1536_v8  ;;  %v6774_v14 = vpack.c.bf16 %v1905_v33, %v7882_v44  ;;  %v1820_v58 = vadd.f32 %v1819_v42, %v7460_v48  ;;  %vm1882_vm2 = vcmp.gt.f32.partialorder %v1865_v49, 0.0 }
 0x4c6   :  { %v7901_v5 = vpop.eup %6933  ;;  %6953 = vpow2.f32 %v1540_v63  ;;  %v1871_v12 = vadd.f32 %v1870_v54, %v7460_v48  ;;  %v1818_v16 = vadd.f32 %v7874_v60, %v7460_v48  ;;  %v1869_v15 = vadd.f32 %v7876_v17, %v7460_v48 }
 0x4c7   :  { %v7904_v10 = vpop.eup %6935  ;;  %v1896_v7 = vmul.f32 0.01, %v1820_v58  ;;  %v1900_v0 = vsel %vm1876_vm11, %v7863_v61, %v1888_v34  ;;  %v1904_v54 = vsel %vm1880_vm1, %v1814_v19, %v1892_v23  ;;  %v1902_v60 = vsel %vm1878_vm15, %v7866_v47, %v1890_v31  ;;  %v7938_v23 = vld [vmem:[%s9153_s4] sm:$0xff] }
 0x4c8   :  { %v7913_v42 = vpop.eup %6937  ;;  %v1655_v21 = vsub.f32 %v7897_v1, %v7904_v10  ;;  %v1898_v28 = vmul.f32 0.01, %v1871_v12  ;;  %v6768_v36 = vpack.c.bf16 %v1904_v54, %v1900_v0  ;;  %v1906_v59 = vsel %vm1882_vm2, %v1865_v49, %v1894_v30  ;;  %v7960_v54 = vld [vmem:[%s9153_s4 + $0x10] sm:$0xff] }
 0x4c9   :  { %v7921_v40 = vpop.eup %6939  ;;  %v1657_v17 = vsub.f32 %v7901_v5, %v7913_v42  ;;  %vm1884_vm3 = vcmp.gt.f32.partialorder %v1820_v58, 0.0  ;;  %v6772_v62 = vpack.c.bf16 %v1906_v59, %v1902_v60  ;;  %vm1886_vm4 = vcmp.gt.f32.partialorder %v1871_v12, 0.0 }
 0x4ca   :  { %v7925_v61 = vpop.eup %6941  ;;  %v1908_v45 = vsel %vm1884_vm3, %v1820_v58, %v1896_v7  ;;  %v1895_v44 = vmul.f32 0.01, %v1818_v16  ;;  %6769 = vmatprep.subr.bf16.mxu0 %v6768_v36  ;;  %v1910_v47 = vsel %vm1886_vm4, %v1871_v12, %v1898_v28  ;;  %vm1883_vm5 = vcmp.gt.f32.partialorder %v1818_v16, 0.0  ;;  %v7949_v28 = vld [vmem:[%s9153_s4 + $0x8] sm:$0xff] }
 0x4cb   :  { %v7927_v55 = vpop.eup %6943  ;;  %v1656_v50 = vsub.f32 %v7921_v40, %v7925_v61  ;;  %v1897_v6 = vmul.f32 0.01, %v1869_v15  ;;  %6773 = vmatprep.subr.bf16.mxu1 %v6772_v62  ;;  %6771 = vmatpush1.bf16.msra.mxu0 %v6770_v24  ;;  %vm1885_vm6 = vcmp.gt.f32.partialorder %v1869_v15, 0.0 }
 0x4cc   :  { %v7931_v34 = vpop.eup %6945  ;;  %6775 = vmatpush1.bf16.msra.mxu1 %v6774_v14  ;;  %1915 = vmatprep.subr.mxu0 %v1908_v45  ;;  %v1907_v19 = vsel %vm1883_vm5, %v1818_v16, %v1895_v44 }
 0x4cd   :  { %v6948_v46 = vpop.eup %6947  ;;  %v1658_v38 = vsub.f32 %v7927_v55, %v7931_v34  ;;  %1998 = vmatprep.subr.mxu1 %v1910_v47  ;;  %v1909_v31 = vsel %vm1885_vm6, %v1869_v15, %v1897_v6 }
 0x4ce   :  { %v6950_v2 = vpop.eup %6949  ;;  %v1546_v4 = vrot.slane %v6948_v46, 1  ;;  %v1558_v63 = vrot.slane %v6948_v46, 2 }
 0x4cf   :  { %v6952_v26 = vpop.eup %6951  ;;  %v1548_v8 = vrot.slane %v6950_v2, 1  ;;  %1916 = vmatpush1.msra.mxu0 %v1907_v19  ;;  %v1560_v24 = vrot.slane %v6950_v2, 2 }
 0x4d0   :  { %v6954_v49 = vpop.eup %6953  ;;  %v1554_v11 = vadd.f32 %v6948_v46, %v1546_v4  ;;  %v1547_v27 = vrot.slane %v6952_v26, 1  ;;  %1999 = vmatpush1.msra.mxu1 %v1909_v31  ;;  %6619 = vmatmul.mubr.msk.f32.vlgmr.msra.gmra.mrb[48].mxu0 %vm271_vm13, %v7938_v23  ;;  %v1559_v58 = vrot.slane %v6952_v26, 2 }
 0x4d1   :  { %v1556_v13 = vadd.f32 %v6950_v2, %v1548_v8  ;;  %v1549_v33 = vrot.slane %v6954_v49, 1  ;;  %6622 = vmatmul.mubr.msk.f32.vlgmr.msra.gmra.mrb[48].mxu1 %vm271_vm13, %v7938_v23  ;;  %1981 = vmatprep.mubr.f32.mxu0 %v9182_v20  ;;  %v1561_v15 = vrot.slane %v6954_v49, 2 }
 0x4d2   :  { %v1566_v14 = vadd.f32 %v1558_v63, %v1554_v11  ;;  %v1555_v30 = vadd.f32 %v6952_v26, %v1547_v27  ;;  %2064 = vmatprep.mubr.f32.mxu1 %v9182_v20 }
 0x4d3   :  { %v1568_v12 = vadd.f32 %v1560_v24, %v1556_v13  ;;  %v1557_v16 = vadd.f32 %v6954_v49, %v1549_v33 }
 0x4d4   :  { %6955 = vrcp.f32 %v1566_v14  ;;  %v1567_v7 = vadd.f32 %v1559_v58, %v1555_v30  ;;  %6620 = vmatmul.mubr.msk.f32.gmra.mrb[50].mxu0 %vm271_vm13, %v7949_v28 }
 0x4d5   :  { %6957 = vrcp.f32 %v1568_v12  ;;  %v1569_v0 = vadd.f32 %v1561_v15, %v1557_v16  ;;  %6623 = vmatmul.mubr.msk.f32.gmra.mrb[50].mxu1 %vm271_vm13, %v7949_v28  ;;  %1987 = vmatprep.mubr.f32.mxu0 %v9182_v20 }
 0x4d6   :  { %6959 = vrcp.f32 %v1567_v7  ;;  %2070 = vmatprep.mubr.f32.mxu1 %v9182_v20 }
 0x4d7   :  { %6961 = vrcp.f32 %v1569_v0 }
 0x4d8   :  { %6621 = vmatmul.mubr.msk.f32.gmra.mrb[52].mxu0 %vm271_vm13, %v7960_v54 }
 0x4d9   :  { %6624 = vmatmul.mubr.msk.f32.gmra.mrb[52].mxu1 %vm271_vm13, %v7960_v54  ;;  %2177 = vmatprep.mubr.f32.mxu0 %v9182_v20 }
 0x4da   :  { %2260 = vmatprep.mubr.f32.mxu1 %v9182_v20 }
 0x4de   :  { %v6956_v60 = vpop.eup %6955 }
 0x4df   :  { %v6958_v36 = vpop.eup %6957  ;;  %v1577_v59 = vrot.slane %v6956_v60, %v7589_v52 }
 0x4e0   :  { %v6960_v62 = vpop.eup %6959  ;;  %v1585_v45 = vrot.slane %v6958_v36, %v7589_v52 }
 0x4e1   :  { %v6962_v44 = vpop.eup %6961  ;;  %v1581_v47 = vrot.slane %v6960_v62, %v7589_v52  ;;  %v1590_v6 = vmul.f32 %v6948_v46, %v1577_v59 }
 0x4e2   :  { %v1589_v4 = vrot.slane %v6962_v44, %v7589_v52  ;;  %v1592_v8 = vmul.f32 %v6950_v2, %v1585_v45 }
 0x4e3   :  { %v1591_v19 = vmul.f32 %v6952_v26, %v1581_v47  ;;  %v1659_v11 = vmul.f32 %v1655_v21, %v1590_v6 }
 0x4e4   :  { %v1593_v63 = vmul.f32 %v6954_v49, %v1589_v4  ;;  %v1661_v27 = vmul.f32 %v1657_v17, %v1592_v8 }
 0x4e5   :  { %v1660_v31 = vmul.f32 %v1656_v50, %v1591_v19  ;;  %v1667_v13 = vrot.slane %v1659_v11, 1  ;;  %v1679_v33 = vrot.slane %v1659_v11, 2 }
 0x4e6   :  { %v1662_v46 = vmul.f32 %v1658_v38, %v1593_v63  ;;  %v1669_v2 = vrot.slane %v1661_v27, 1  ;;  %v1681_v21 = vrot.slane %v1661_v27, 2 }
 0x4e7   :  { %v1668_v26 = vrot.slane %v1660_v31, 1  ;;  %v1675_v24 = vadd.f32 %v1667_v13, %v1659_v11  ;;  %v1680_v14 = vrot.slane %v1660_v31, 2 }
 0x4e8   :  { %v1670_v1 = vrot.slane %v1662_v46, 1  ;;  %v1677_v10 = vadd.f32 %v1669_v2, %v1661_v27  ;;  %v1682_v17 = vrot.slane %v1662_v46, 2 }
 0x4e9   :  { %v1676_v49 = vadd.f32 %v1668_v26, %v1660_v31  ;;  %v1687_v5 = vadd.f32 %v1679_v33, %v1675_v24 }
 0x4ea   :  { %v1678_v42 = vadd.f32 %v1670_v1, %v1662_v46  ;;  %v1689_v30 = vadd.f32 %v1681_v21, %v1677_v10 }
 0x4eb   :  { %v1688_v40 = vadd.f32 %v1680_v14, %v1676_v49  ;;  %v1691_v61 = vmul.f32 0.5, %v1687_v5 }
 0x4ec   :  { %v1690_v50 = vadd.f32 %v1682_v17, %v1678_v42  ;;  %v1693_v58 = vmul.f32 0.5, %v1689_v30 }
 0x4ed   :  { %v1692_v12 = vmul.f32 0.5, %v1688_v40  ;;  %v1695_v55 = vmax.f32 %v1691_v61, 1e-09 }
 0x4ee   :  { %v1694_v34 = vmul.f32 0.5, %v1690_v50  ;;  %v1697_v38 = vmax.f32 %v1693_v58, 1e-09 }
 0x4ef   :  { %v1696_v16 = vmax.f32 %v1692_v12, 1e-09  ;;  %6963 = vlog2.f32 %v1695_v55 }
 0x4f0   :  { %v1698_v15 = vmax.f32 %v1694_v34, 1e-09  ;;  %6965 = vlog2.f32 %v1697_v38 }
 0x4f1   :  { %6967 = vlog2.f32 %v1696_v16 }
 0x4f2   :  { %6969 = vlog2.f32 %v1698_v15 }
 0x4f9   :  { %v6964_v7 = vpop.eup %6963 }
 0x4fa   :  { %v6966_v0 = vpop.eup %6965  ;;  %v1700_v60 = vmul.f32 0.6931472, %v6964_v7 }
 0x4fb   :  { %v6968_v36 = vpop.eup %6967  ;;  %v1704_v59 = vmul.f32 0.6931472, %v6966_v0 }
 0x4fc   :  { %v6970_v62 = vpop.eup %6969  ;;  %v1702_v45 = vmul.f32 0.6931472, %v6968_v36  ;;  %v1707_v44 = vmul.f32 1.442695, %v1700_v60 }
 0x4fd   :  { %v1706_v47 = vmul.f32 0.6931472, %v6970_v62  ;;  %v1709_v6 = vmul.f32 1.442695, %v1704_v59 }
 0x4fe   :  { %v1708_v4 = vmul.f32 1.442695, %v1702_v45  ;;  %v1711_v8 = vsub.f32 0.0, %v1707_v44 }
 0x4ff   :  { %v1710_v19 = vmul.f32 1.442695, %v1706_v47  ;;  %v1713_v11 = vsub.f32 0.0, %v1709_v6 }
 0x500   :  { %v1712_v63 = vsub.f32 0.0, %v1708_v4 }
 0x501   :  { %v1714_v27 = vsub.f32 0.0, %v1710_v19 }
 0x502   :  { %v1719_v31 = vcombine.low %v1711_v8, %v1712_v63 }
 0x503   :  { %v1720_v13 = vcombine.low %v1713_v11, %v1714_v27 }
 0x504   :  { %v1727_v46 = vrot.slane %v1719_v31, %v7755_v43 }
 0x505   :  { %v1734_v2 = vrot.slane %v1720_v13, %v7755_v43 }
 0x507   :  { %v1735_v26 = vcombine.low %v1727_v46, %v1734_v2 }
 0x509   :  { %v1742_v24 = vrot.slane %v1735_v26, %v7755_v43 }
 0x50b   :  { %1745 = vst.msk [vmem:[#allocation5 + $0x4] sm:$0xf] %vm7760_vm9, %v1742_v24 }
 0x5a3   :  { %v1977_v33 = vpop.f32.mrb[48].mxu0 }
 0x5a4   :  { %v1978_v1 = vadd.f32 %v1977_v33, %v7504_v25  ;;  %v2060_v10 = vpop.f32.mrb[48].mxu1  ;;  %v1979_v21 = vpop.f32.mrb[49].mxu0 }
 0x5a5   :  { %v2061_v49 = vadd.f32 %v2060_v10, %v7504_v25  ;;  %v1980_v14 = vadd.f32 %v1979_v21, %v7504_v25  ;;  %v2062_v5 = vpop.f32.mrb[49].mxu1 }
 0x5a6   :  { %v2089_v42 = vmul.f32 0.01, %v1978_v1  ;;  %v2063_v17 = vadd.f32 %v2062_v5, %v7504_v25  ;;  %vm2077_vm7 = vcmp.gt.f32.partialorder %v1978_v1, 0.0 }
 0x5a7   :  { %vm2079_vm8 = vcmp.gt.f32.partialorder %v2061_v49, 0.0  ;;  %v2091_v30 = vmul.f32 0.01, %v2061_v49  ;;  %v1983_v40 = vpop.f32.mrb[50].mxu0  ;;  %vm2078_vm10 = vcmp.gt.f32.partialorder %v1980_v14, 0.0 }
 0x5a8   :  { %v2066_v61 = vpop.f32.mrb[50].mxu1  ;;  %v2090_v50 = vmul.f32 0.01, %v1980_v14  ;;  %v1984_v58 = vadd.f32 %v1983_v40, %v7510_v35  ;;  %v1985_v55 = vpop.f32.mrb[51].mxu0  ;;  %v2101_v38 = vsel %vm2077_vm7, %v1978_v1, %v2089_v42  ;;  %v2092_v16 = vmul.f32 0.01, %v2063_v17 }
 0x5a9   :  { %v2067_v12 = vadd.f32 %v2066_v61, %v7510_v35  ;;  %v2068_v34 = vpop.f32.mrb[51].mxu1  ;;  %v1986_v15 = vadd.f32 %v1985_v55, %v7510_v35  ;;  %v2103_v62 = vsel %vm2079_vm8, %v2061_v49, %v2091_v30  ;;  %vm2080_vm1 = vcmp.gt.f32.partialorder %v2063_v17, 0.0  ;;  %v2548_v40 = vld [vmem:[#allocation2 + $0x30] sm:$0xff]  ;;  %v2549_v61 = vld [vmem:[#allocation2 + $0x38] sm:$0xff] }
 0x5aa   :  { %v2069_v7 = vadd.f32 %v2068_v34, %v7510_v35  ;;  %vm2081_vm11 = vcmp.gt.f32.partialorder %v1984_v58, 0.0  ;;  %v2093_v0 = vmul.f32 0.01, %v1984_v58  ;;  %v2102_v26 = vsel %vm2078_vm10, %v1980_v14, %v2090_v50  ;;  %v2550_v14 = vld [vmem:[#allocation2 + $0xb0] sm:$0xff] }
 0x5ab   :  { %vm2083_vm12 = vcmp.gt.f32.partialorder %v2067_v12, 0.0  ;;  %v2095_v60 = vmul.f32 0.01, %v2067_v12  ;;  %vm2082_vm14 = vcmp.gt.f32.partialorder %v1986_v15, 0.0  ;;  %v2094_v36 = vmul.f32 0.01, %v1986_v15 }
 0x5ac   :  { %vm2084_vm15 = vcmp.gt.f32.partialorder %v2069_v7, 0.0  ;;  %v2096_v59 = vmul.f32 0.01, %v2069_v7  ;;  %v2105_v45 = vsel %vm2081_vm11, %v1984_v58, %v2093_v0  ;;  %v1989_v47 = vpop.f32.mrb[52].mxu0  ;;  %v2072_v6 = vpop.f32.mrb[52].mxu1  ;;  %v2104_v24 = vsel %vm2080_vm1, %v2063_v17, %v2092_v16  ;;  %v2551_v17 = vld [vmem:[#allocation2 + $0xb8] sm:$0xff] }
 0x5ad   :  { %v2107_v44 = vsel %vm2083_vm12, %v2067_v12, %v2095_v60  ;;  %v6778_v4 = vpack.c.bf16 %v2105_v45, %v2101_v38  ;;  %v1990_v19 = vadd.f32 %v1989_v47, %v7516_v51  ;;  %v2073_v11 = vadd.f32 %v2072_v6, %v7516_v51  ;;  %v1991_v63 = vpop.f32.mrb[53].mxu0  ;;  %v2074_v27 = vpop.f32.mrb[53].mxu1  ;;  %v8009_v16 = vld [vmem:[%s9155_s6] sm:$0xff] }
 0x5ae   :  { %v6782_v8 = vpack.c.bf16 %v2107_v44, %v2103_v62  ;;  %v1992_v31 = vadd.f32 %v1991_v63, %v7516_v51  ;;  %v2075_v13 = vadd.f32 %v2074_v27, %v7516_v51  ;;  %v2106_v46 = vsel %vm2082_vm14, %v1986_v15, %v2094_v36  ;;  %v8020_v15 = vld [vmem:[%s9155_s6 + $0x8] sm:$0xff] }
 0x5af   :  { %v2108_v2 = vsel %vm2084_vm15, %v2069_v7, %v2096_v59  ;;  %v6776_v10 = vpack.c.bf16 %v2106_v46, %v2102_v26  ;;  %v2097_v49 = vmul.f32 0.01, %v1990_v19  ;;  %v2099_v5 = vmul.f32 0.01, %v2073_v11  ;;  %v8031_v7 = vld [vmem:[%s9155_s6 + $0x10] sm:$0xff] }
 0x5b0   :  { %v2098_v33 = vmul.f32 0.01, %v1992_v31  ;;  %v2100_v1 = vmul.f32 0.01, %v2075_v13  ;;  %v6780_v21 = vpack.c.bf16 %v2108_v2, %v2104_v24  ;;  %vm2086_vm2 = vcmp.gt.f32.partialorder %v1992_v31, 0.0 }
 0x5b1   :  { %vm2088_vm3 = vcmp.gt.f32.partialorder %v2075_v13, 0.0  ;;  %6777 = vmatprep.subr.bf16.mxu0 %v6776_v10  ;;  %vm2085_vm4 = vcmp.gt.f32.partialorder %v1990_v19, 0.0  ;;  %vm2087_vm5 = vcmp.gt.f32.partialorder %v2073_v11, 0.0  ;;  %v6633_v12 = vcombine.high %v2548_v40, %v2550_v14 }
 0x5b2   :  { %6781 = vmatprep.subr.bf16.mxu1 %v6780_v21  ;;  %v2110_v42 = vsel %vm2086_vm2, %v1992_v31, %v2098_v33  ;;  %v2112_v30 = vsel %vm2088_vm3, %v2075_v13, %v2100_v1  ;;  %6779 = vmatpush1.bf16.msra.mxu0 %v6778_v4  ;;  %v2109_v50 = vsel %vm2085_vm4, %v1990_v19, %v2097_v49 }
 0x5b3   :  { %6783 = vmatpush1.bf16.msra.mxu1 %v6782_v8  ;;  %2117 = vmatprep.subr.mxu0 %v2110_v42  ;;  %v2111_v58 = vsel %vm2087_vm5, %v2073_v11, %v2099_v5  ;;  %v6635_v55 = vcombine.high %v2549_v61, %v2551_v17  ;;  %v6632_v34 = vcombine.low %v2548_v40, %v2550_v14 }
 0x5b4   :  { %2200 = vmatprep.subr.mxu1 %v2112_v30  ;;  %v6634_v38 = vcombine.low %v2549_v61, %v2551_v17 }
 0x5b6   :  { %2118 = vmatpush1.msra.mxu0 %v2109_v50 }
 0x5b7   :  { %2201 = vmatpush1.msra.mxu1 %v2111_v58  ;;  %6625 = vmatmul.mubr.msk.f32.vlgmr.msra.gmra.mrb[54].mxu0 %vm271_vm13, %v8009_v16 }
 0x5b8   :  { %6628 = vmatmul.mubr.msk.f32.vlgmr.msra.gmra.mrb[54].mxu1 %vm271_vm13, %v8009_v16  ;;  %2183 = vmatprep.mubr.f32.mxu0 %v9182_v20 }
 0x5b9   :  { %2266 = vmatprep.mubr.f32.mxu1 %v9182_v20  ;;  %2574 = vmatprep.subr.bf16.mxu0 %v6633_v12 }
 0x5ba   :  { %2625 = vmatprep.subr.bf16.mxu1 %v6635_v55  ;;  %2575 = vmatpush1.bf16.msra.mxu0 %v6632_v34 }
 0x5bb   :  { %2626 = vmatpush1.bf16.msra.mxu1 %v6634_v38  ;;  %6626 = vmatmul.mubr.msk.f32.gmra.mrb[56].mxu0 %vm271_vm13, %v8020_v15 }
 0x5bc   :  { %6629 = vmatmul.mubr.msk.f32.gmra.mrb[56].mxu1 %vm271_vm13, %v8020_v15  ;;  %2189 = vmatprep.mubr.f32.mxu0 %v9182_v20 }
 0x5bd   :  { %2272 = vmatprep.mubr.f32.mxu1 %v9182_v20 }
 0x5bf   :  { %6627 = vmatmul.mubr.msk.f32.gmra.mrb[58].mxu0 %vm271_vm13, %v8031_v7 }
 0x5c0   :  { %6630 = vmatmul.mubr.msk.f32.gmra.mrb[58].mxu1 %vm271_vm13, %v8031_v7  ;;  %2606 = vmatprep.mubr.bf16.mxu0 %v9186_v29 }
 0x5c1   :  { %2657 = vmatprep.mubr.bf16.mxu1 %v9186_v29 }
 0x5c3   :  { %6636 = vmatmul.mubr.msk.bf16.vlgmr.msra.gmra.mrb[60].mxu0 %vm111_vm0, %v7805_v18 }
 0x5c4   :  { %6638 = vmatmul.mubr.msk.bf16.vlgmr.msra.gmra.mrb[60].mxu1 %vm111_vm0, %v7805_v18  ;;  %2616 = vmatprep.mubr.bf16.mxu0 %v9186_v29 }
 0x5c5   :  { %2667 = vmatprep.mubr.bf16.mxu1 %v9186_v29 }
 0x5cb   :  { %6637 = vmatmul.mubr.msk.bf16.gmra.mrb[64].mxu0 %vm111_vm0, %v7816_v37 }
 0x5cc   :  { %6639 = vmatmul.mubr.msk.bf16.gmra.mrb[64].mxu1 %vm111_vm0, %v7816_v37  ;;  %2776 = vmatprep.mubr.f32.mxu0 %v9182_v20  ;;  %v6610_v37 = vld [vmem:[%s9150_s1 + $0x8] sm:$0xf] }
 0x5cd   :  { %2859 = vmatprep.mubr.f32.mxu1 %v9182_v20  ;;  %v2407_v26 = vrot.slane %v6610_v37, %v7589_v52  ;;  %v2415_v1 = vrot.slane %v6610_v37, %v7592_v53  ;;  %v2411_v10 = vrot.slane %v6610_v37, %v7595_v56  ;;  %v2419_v21 = vrot.slane %v6610_v37, %v7598_v57 }
 0x68a   :  { %v2179_v0 = vpop.f32.mrb[54].mxu0 }
 0x68b   :  { %v2262_v60 = vpop.f32.mrb[54].mxu1  ;;  %v2180_v36 = vadd.f32 %v2179_v0, %v7577_v9  ;;  %v2181_v59 = vpop.f32.mrb[55].mxu0 }
 0x68c   :  { %v2263_v18 = vadd.f32 %v2262_v60, %v7577_v9  ;;  %v2264_v62 = vpop.f32.mrb[55].mxu1  ;;  %v2182_v45 = vadd.f32 %v2181_v59, %v7577_v9 }
 0x68d   :  { %v2265_v44 = vadd.f32 %v2264_v62, %v7577_v9  ;;  %v2279_v47 = vand.u32 2147483647, %v2180_v36 }
 0x68e   :  { %v2281_v6 = vand.u32 2147483647, %v2263_v18  ;;  %v2280_v4 = vand.u32 2147483647, %v2182_v45  ;;  %v2185_v19 = vpop.f32.mrb[56].mxu0 }
 0x68f   :  { %v2282_v8 = vand.u32 2147483647, %v2265_v44  ;;  %v2268_v11 = vpop.f32.mrb[56].mxu1  ;;  %v2283_v63 = vmax.f32 %v2279_v47, 0.01  ;;  %v2187_v31 = vpop.f32.mrb[57].mxu0  ;;  %v2186_v24 = vadd.f32 %v2185_v19, %v7600_v3 }
 0x690   :  { %v2285_v27 = vmax.f32 %v2281_v6, 0.01  ;;  %v2270_v13 = vpop.f32.mrb[57].mxu1  ;;  %v2284_v46 = vmax.f32 %v2280_v4, 0.01  ;;  %v2269_v33 = vadd.f32 %v2268_v11, %v7600_v3  ;;  %v2188_v42 = vadd.f32 %v2187_v31, %v7600_v3 }
 0x691   :  { %v2286_v2 = vmax.f32 %v2282_v8, 0.01  ;;  %6971 = vrcp.f32 %v2283_v63  ;;  %v2271_v17 = vadd.f32 %v2270_v13, %v7600_v3  ;;  %v2424_v12 = vsub.f32 %v2407_v26, %v2186_v24 }
 0x692   :  { %6973 = vrcp.f32 %v2285_v27  ;;  %v2191_v49 = vpop.f32.mrb[58].mxu0  ;;  %v2426_v55 = vsub.f32 %v2415_v1, %v2269_v33  ;;  %v2425_v13 = vsub.f32 %v2411_v10, %v2188_v42 }
 0x693   :  { %v2274_v5 = vpop.f32.mrb[58].mxu1  ;;  %6975 = vrcp.f32 %v2284_v46  ;;  %v2192_v30 = vadd.f32 %v2191_v49, %v7575_v41  ;;  %v2193_v14 = vpop.f32.mrb[59].mxu0  ;;  %v2427_v1 = vsub.f32 %v2419_v21, %v2271_v17 }
 0x694   :  { %v2275_v40 = vadd.f32 %v2274_v5, %v7575_v41  ;;  %v2276_v61 = vpop.f32.mrb[59].mxu1  ;;  %6977 = vrcp.f32 %v2286_v2  ;;  %v2194_v50 = vadd.f32 %v2193_v14, %v7575_v41 }
 0x695   :  { %v8070_v58 = vadd.f32 %v2276_v61, %v7575_v41  ;;  %v2291_v34 = vrot.slane %v2192_v30, 1  ;;  %v2303_v0 = vrot.slane %v2192_v30, 2 }
 0x696   :  { %v2293_v38 = vrot.slane %v2275_v40, 1  ;;  %v2305_v60 = vrot.slane %v2275_v40, 2  ;;  %v2292_v36 = vrot.slane %v2194_v50, 1  ;;  %v2608_v59 = vpop.f32.mrb[60].mxu0  ;;  %v2304_v47 = vrot.slane %v2194_v50, 2 }
 0x697   :  { %v2294_v18 = vrot.slane %v8070_v58, 1  ;;  %v2659_v62 = vpop.f32.mrb[60].mxu1  ;;  %v2299_v45 = vmax.f32 %v2192_v30, %v2291_v34  ;;  %v2609_v6 = vadd.f32 %v2608_v59, %v9187_v32  ;;  %v2610_v37 = vpop.f32.mrb[61].mxu0  ;;  %v2306_v11 = vrot.slane %v8070_v58, 2 }
 0x698   :  { %v2301_v44 = vmax.f32 %v2275_v40, %v2293_v38  ;;  %v2661_v4 = vpop.f32.mrb[61].mxu1  ;;  %v2300_v8 = vmax.f32 %v2194_v50, %v2292_v36  ;;  %v8077_v63 = vadd.f32 %v2659_v62, %v9187_v32  ;;  %v8079_v27 = vpop.f32.mrb[62].mxu0  ;;  %v8090_v38 = vadd.f32 %v2610_v37, %v9187_v32 }
 0x699   :  { %v2302_v19 = vmax.f32 %v8070_v58, %v2294_v18  ;;  %v8081_v31 = vpop.f32.mrb[62].mxu1  ;;  %v2311_v46 = vmax.f32 %v2299_v45, %v2303_v0  ;;  %v2688_v26 = vmul.f32 0.01, %v2609_v6  ;;  %v8083_v24 = vpop.f32.mrb[63].mxu0  ;;  %vm2676_vm6 = vcmp.gt.f32.partialorder %v2609_v6, 0.0 }
 0x69a   :  { %v2313_v2 = vmax.f32 %v2301_v44, %v2305_v60  ;;  %v8085_v33 = vpop.f32.mrb[63].mxu1  ;;  %v2312_v49 = vmax.f32 %v2300_v8, %v2304_v47  ;;  %v8093_v10 = vadd.f32 %v2661_v4, %v9187_v32  ;;  %vm2678_vm7 = vcmp.gt.f32.partialorder %v8077_v63, 0.0 }
 0x69b   :  { %v2314_v5 = vmax.f32 %v2302_v19, %v2306_v11  ;;  %v6972_v14 = vpop.eup %6971  ;;  %v2318_v61 = vrot.slane %v2311_v46, %v7589_v52  ;;  %v2690_v21 = vmul.f32 0.01, %v8077_v63  ;;  %v8099_v62 = vsel %vm2676_vm6, %v2609_v6, %v2688_v26 }
 0x69c   :  { %v2326_v34 = vrot.slane %v2313_v2, %v7589_v52  ;;  %v6974_v42 = vpop.eup %6973  ;;  %v2399_v0 = vmul.f32 0.70710677, %v6972_v14  ;;  %v2322_v60 = vrot.slane %v2312_v49, %v7589_v52  ;;  %vm2677_vm8 = vcmp.gt.f32.partialorder %v8090_v38, 0.0 }
 0x69d   :  { %v6976_v17 = vpop.eup %6975  ;;  %v2401_v36 = vmul.f32 0.70710677, %v6974_v42  ;;  %v2331_v18 = vsub.f32 %v2192_v30, %v2318_v61  ;;  %v2330_v59 = vrot.slane %v2314_v5, %v7589_v52  ;;  %vm2679_vm12 = vcmp.gt.f32.partialorder %v8093_v10, 0.0 }
 0x69e   :  { %v6978_v45 = vpop.eup %6977  ;;  %v2432_v44 = vmul.f32 0.0019607844, %v2399_v0  ;;  %v2400_v47 = vmul.f32 0.70710677, %v6976_v17  ;;  %v2428_v37 = vmul.f32 %v2424_v12, %v2399_v0  ;;  %v2333_v4 = vsub.f32 %v2275_v40, %v2326_v34  ;;  %v8101_v8 = vpop.f32.mrb[64].mxu0 }
 0x69f   :  { %v8103_v19 = vpop.f32.mrb[64].mxu1  ;;  %v2434_v11 = vmul.f32 0.0019607844, %v2401_v36  ;;  %v2402_v46 = vmul.f32 0.70710677, %v6978_v45  ;;  %v2430_v2 = vmul.f32 %v2426_v55, %v2401_v36  ;;  %v2332_v49 = vsub.f32 %v2194_v50, %v2322_v60  ;;  %v2620_v5 = vpop.f32.mrb[65].mxu0 }
 0x6a0   :  { %v2433_v14 = vmul.f32 0.0019607844, %v2400_v47  ;;  %v2436_v42 = vsub.f32 %v2432_v44, %v2428_v37  ;;  %v2444_v30 = vsub.f32 0.0, %v2432_v44  ;;  %v2429_v61 = vmul.f32 %v2425_v13, %v2400_v47  ;;  %v2671_v6 = vpop.f32.mrb[65].mxu1  ;;  %v2622_v12 = vpop.f32.mrb[66].mxu0 }
 0x6a1   :  { %v2435_v26 = vmul.f32 0.0019607844, %v2402_v46  ;;  %v2438_v32 = vsub.f32 %v2434_v11, %v2430_v2  ;;  %v2446_v41 = vsub.f32 0.0, %v2434_v11  ;;  %v2431_v17 = vmul.f32 %v2427_v1, %v2402_v46  ;;  %v2673_v40 = vpop.f32.mrb[66].mxu1  ;;  %v2623_v56 = vpop.f32.mrb[67].mxu0 }
 0x6a2   :  { %6979 = verf.f32 %v2436_v42  ;;  %v2448_v34 = vsub.f32 %v2444_v30, %v2428_v37  ;;  %v2437_v0 = vsub.f32 %v2433_v14, %v2429_v61  ;;  %v2445_v57 = vsub.f32 0.0, %v2433_v14  ;;  %v2674_v45 = vpop.f32.mrb[67].mxu1 }
 0x6a3   :  { %6981 = verf.f32 %v2438_v32  ;;  %v2450_v50 = vsub.f32 %v2446_v41, %v2430_v2  ;;  %v2439_v55 = vsub.f32 %v2435_v26, %v2431_v17  ;;  %v2447_v60 = vsub.f32 0.0, %v2435_v26 }
 0x6a4   :  { %6983 = verf.f32 %v2448_v34  ;;  %v2449_v13 = vsub.f32 %v2445_v57, %v2429_v61  ;;  %v8109_v1 = vsel %vm2678_vm7, %v8077_v63, %v2690_v21  ;;  %v2689_v36 = vmul.f32 0.01, %v8090_v38 }
 0x6a5   :  { %6985 = verf.f32 %v2450_v50  ;;  %v2451_v44 = vsub.f32 %v2447_v60, %v2431_v17  ;;  %v2335_v47 = vmul.f32 1.442695, %v2331_v18  ;;  %v2334_v56 = vsub.f32 %v8070_v58, %v2330_v59 }
 0x6a6   :  { %6987 = verf.f32 %v2437_v0  ;;  %v2339_v41 = vmul.f32 1.442695, %v2333_v4  ;;  %v2613_v32 = vadd.f32 %v8079_v27, %v7450_v22  ;;  %v2664_v57 = vadd.f32 %v8081_v31, %v7450_v22 }
 0x6a7   :  { %6989 = verf.f32 %v2449_v13  ;;  %v2337_v37 = vmul.f32 1.442695, %v2332_v49  ;;  %v2615_v63 = vadd.f32 %v8083_v24, %v7450_v22  ;;  %v2666_v21 = vadd.f32 %v8085_v33, %v7450_v22 }
 0x6a8   :  { %6991 = verf.f32 %v2439_v55  ;;  %vm2680_vm10 = vcmp.gt.f32.partialorder %v2613_v32, 0.0  ;;  %v2692_v18 = vmul.f32 0.01, %v2613_v32  ;;  %vm2682_vm11 = vcmp.gt.f32.partialorder %v2664_v57, 0.0 }
 0x6a9   :  { %6993 = verf.f32 %v2451_v44  ;;  %v2341_v58 = vmul.f32 1.442695, %v2334_v56  ;;  %v2694_v27 = vmul.f32 0.01, %v2664_v57  ;;  %v2691_v31 = vmul.f32 0.01, %v8093_v10 }
 0x6aa   :  { %6995 = vpow2.f32 %v2335_v47  ;;  %v2704_v59 = vsel %vm2680_vm10, %v2613_v32, %v2692_v18  ;;  %vm2681_vm14 = vcmp.gt.f32.partialorder %v2615_v63, 0.0  ;;  %v2693_v11 = vmul.f32 0.01, %v2615_v63 }
 0x6ab   :  { %6997 = vpow2.f32 %v2339_v41  ;;  %v6786_v24 = vpack.c.bf16 %v2704_v59, %v8099_v62  ;;  %v2706_v4 = vsel %vm2682_vm11, %v2664_v57, %v2694_v27  ;;  %v2695_v2 = vmul.f32 0.01, %v2666_v21 }
 0x6ac   :  { %v8124_v33 = vpop.eup %6979  ;;  %6999 = vpow2.f32 %v2337_v37  ;;  %v6790_v46 = vpack.c.bf16 %v2706_v4, %v8109_v1  ;;  %v2621_v49 = vadd.f32 %v2620_v5, %v7460_v48  ;;  %vm2683_vm15 = vcmp.gt.f32.partialorder %v2666_v21, 0.0 }
 0x6ad   :  { %v8128_v14 = vpop.eup %6981  ;;  %7001 = vpow2.f32 %v2341_v58  ;;  %v2672_v42 = vadd.f32 %v2671_v6, %v7460_v48  ;;  %v2619_v62 = vadd.f32 %v8101_v8, %v7460_v48  ;;  %v2670_v61 = vadd.f32 %v8103_v19, %v7460_v48 }
 0x6ae   :  { %v8131_v30 = vpop.eup %6983  ;;  %v2697_v26 = vmul.f32 0.01, %v2621_v49  ;;  %v2701_v17 = vsel %vm2677_vm8, %v8090_v38, %v2689_v36  ;;  %v2705_v6 = vsel %vm2681_vm14, %v2615_v63, %v2693_v11  ;;  %v2703_v8 = vsel %vm2679_vm12, %v8093_v10, %v2691_v31 }
 0x6af   :  { %v8140_v5 = vpop.eup %6985  ;;  %v2456_v12 = vsub.f32 %v8124_v33, %v8131_v30  ;;  %v2699_v40 = vmul.f32 0.01, %v2672_v42  ;;  %v6784_v0 = vpack.c.bf16 %v2705_v6, %v2701_v17  ;;  %v2707_v45 = vsel %vm2683_vm15, %v2666_v21, %v2695_v2 }
 0x6b0   :  { %v8148_v34 = vpop.eup %6987  ;;  %v2458_v19 = vsub.f32 %v8128_v14, %v8140_v5  ;;  %vm2685_vm1 = vcmp.gt.f32.partialorder %v2621_v49, 0.0  ;;  %v6788_v50 = vpack.c.bf16 %v2707_v45, %v2703_v8  ;;  %vm2687_vm2 = vcmp.gt.f32.partialorder %v2672_v42, 0.0 }
 0x6b1   :  { %v8152_v38 = vpop.eup %6989  ;;  %v2709_v55 = vsel %vm2685_vm1, %v2621_v49, %v2697_v26  ;;  %v2696_v1 = vmul.f32 0.01, %v2619_v62  ;;  %6785 = vmatprep.subr.bf16.mxu0 %v6784_v0  ;;  %v2711_v10 = vsel %vm2687_vm2, %v2672_v42, %v2699_v40  ;;  %vm2684_vm3 = vcmp.gt.f32.partialorder %v2619_v62, 0.0 }
 0x6b2   :  { %v8154_v60 = vpop.eup %6991  ;;  %v2457_v13 = vsub.f32 %v8148_v34, %v8152_v38  ;;  %v2698_v44 = vmul.f32 0.01, %v2670_v61  ;;  %6789 = vmatprep.subr.bf16.mxu1 %v6788_v50  ;;  %6787 = vmatpush1.bf16.msra.mxu0 %v6786_v24  ;;  %vm2686_vm4 = vcmp.gt.f32.partialorder %v2670_v61, 0.0 }
 0x6b3   :  { %v8158_v36 = vpop.eup %6993  ;;  %6791 = vmatpush1.bf16.msra.mxu1 %v6790_v46  ;;  %2716 = vmatprep.subr.mxu0 %v2709_v55  ;;  %v2708_v63 = vsel %vm2684_vm3, %v2619_v62, %v2696_v1 }
 0x6b4   :  { %v6996_v47 = vpop.eup %6995  ;;  %v2459_v56 = vsub.f32 %v8154_v60, %v8158_v36  ;;  %2799 = vmatprep.subr.mxu1 %v2711_v10  ;;  %v2710_v31 = vsel %vm2686_vm4, %v2670_v61, %v2698_v44 }
 0x6b5   :  { %v6998_v41 = vpop.eup %6997  ;;  %v2347_v32 = vrot.slane %v6996_v47, 1  ;;  %v2359_v58 = vrot.slane %v6996_v47, 2 }
 0x6b6   :  { %v7000_v57 = vpop.eup %6999  ;;  %v2349_v37 = vrot.slane %v6998_v41, 1  ;;  %2717 = vmatpush1.msra.mxu0 %v2708_v63  ;;  %v2361_v24 = vrot.slane %v6998_v41, 2 }
 0x6b7   :  { %v7002_v21 = vpop.eup %7001  ;;  %v2355_v18 = vadd.f32 %v6996_v47, %v2347_v32  ;;  %v2348_v27 = vrot.slane %v7000_v57, 1  ;;  %2800 = vmatpush1.msra.mxu1 %v2710_v31  ;;  %6640 = vmatmul.mubr.msk.f32.vlgmr.msra.gmra.mrb[68].mxu0 %vm271_vm13, %v7938_v23  ;;  %v2360_v2 = vrot.slane %v7000_v57, 2 }
 0x6b8   :  { %v2357_v59 = vadd.f32 %v6998_v41, %v2349_v37  ;;  %v2350_v4 = vrot.slane %v7002_v21, 1  ;;  %6643 = vmatmul.mubr.msk.f32.vlgmr.msra.gmra.mrb[68].mxu1 %vm271_vm13, %v7938_v23  ;;  %2782 = vmatprep.mubr.f32.mxu0 %v9182_v20  ;;  %v2362_v62 = vrot.slane %v7002_v21, 2 }
 0x6b9   :  { %v2367_v11 = vadd.f32 %v2359_v58, %v2355_v18  ;;  %v2356_v46 = vadd.f32 %v7000_v57, %v2348_v27  ;;  %2865 = vmatprep.mubr.f32.mxu1 %v9182_v20 }
 0x6ba   :  { %v2369_v49 = vadd.f32 %v2361_v24, %v2357_v59  ;;  %v2358_v42 = vadd.f32 %v7002_v21, %v2350_v4 }
 0x6bb   :  { %7003 = vrcp.f32 %v2367_v11  ;;  %v2368_v61 = vadd.f32 %v2360_v2, %v2356_v46  ;;  %6641 = vmatmul.mubr.msk.f32.gmra.mrb[70].mxu0 %vm271_vm13, %v7949_v28 }
 0x6bc   :  { %7005 = vrcp.f32 %v2369_v49  ;;  %v2370_v26 = vadd.f32 %v2362_v62, %v2358_v42  ;;  %6644 = vmatmul.mubr.msk.f32.gmra.mrb[70].mxu1 %vm271_vm13, %v7949_v28  ;;  %2788 = vmatprep.mubr.f32.mxu0 %v9182_v20 }
 0x6bd   :  { %7007 = vrcp.f32 %v2368_v61  ;;  %2871 = vmatprep.mubr.f32.mxu1 %v9182_v20 }
 0x6be   :  { %7009 = vrcp.f32 %v2370_v26 }
 0x6bf   :  { %6642 = vmatmul.mubr.msk.f32.gmra.mrb[72].mxu0 %vm271_vm13, %v7960_v54 }
 0x6c0   :  { %6645 = vmatmul.mubr.msk.f32.gmra.mrb[72].mxu1 %vm271_vm13, %v7960_v54  ;;  %2978 = vmatprep.mubr.f32.mxu0 %v9182_v20 }
 0x6c1   :  { %3061 = vmatprep.mubr.f32.mxu1 %v9182_v20 }
 0x6c5   :  { %v7004_v23 = vpop.eup %7003 }
 0x6c6   :  { %v7006_v17 = vpop.eup %7005  ;;  %v2378_v40 = vrot.slane %v7004_v23, %v7589_v52 }
 0x6c7   :  { %v7008_v28 = vpop.eup %7007  ;;  %v2386_v6 = vrot.slane %v7006_v17, %v7589_v52 }
 0x6c8   :  { %v7010_v8 = vpop.eup %7009  ;;  %v2382_v0 = vrot.slane %v7008_v28, %v7589_v52  ;;  %v2391_v45 = vmul.f32 %v6996_v47, %v2378_v40 }
 0x6c9   :  { %v2390_v50 = vrot.slane %v7010_v8, %v7589_v52  ;;  %v2393_v55 = vmul.f32 %v6998_v41, %v2386_v6 }
 0x6ca   :  { %v2392_v60 = vmul.f32 %v7000_v57, %v2382_v0  ;;  %v2460_v54 = vmul.f32 %v2456_v12, %v2391_v45 }
 0x6cb   :  { %v2394_v1 = vmul.f32 %v7002_v21, %v2390_v50  ;;  %v2462_v10 = vmul.f32 %v2458_v19, %v2393_v55 }
 0x6cc   :  { %v2461_v36 = vmul.f32 %v2457_v13, %v2392_v60  ;;  %v2468_v44 = vrot.slane %v2460_v54, 1  ;;  %v2480_v41 = vrot.slane %v2460_v54, 2 }
 0x6cd   :  { %v2463_v32 = vmul.f32 %v2459_v56, %v2394_v1  ;;  %v2470_v47 = vrot.slane %v2462_v10, 1  ;;  %v2482_v58 = vrot.slane %v2462_v10, 2 }
 0x6ce   :  { %v2469_v37 = vrot.slane %v2461_v36, 1  ;;  %v2476_v63 = vadd.f32 %v2468_v44, %v2460_v54  ;;  %v2481_v30 = vrot.slane %v2461_v36, 2 }
 0x6cf   :  { %v2471_v57 = vrot.slane %v2463_v32, 1  ;;  %v2478_v18 = vadd.f32 %v2470_v47, %v2462_v10  ;;  %v2483_v27 = vrot.slane %v2463_v32, 2 }
 0x6d0   :  { %v2477_v33 = vadd.f32 %v2469_v37, %v2461_v36  ;;  %v2488_v12 = vadd.f32 %v2480_v41, %v2476_v63 }
 0x6d1   :  { %v2479_v21 = vadd.f32 %v2471_v57, %v2463_v32  ;;  %v2490_v14 = vadd.f32 %v2482_v58, %v2478_v18 }
 0x6d2   :  { %v2489_v5 = vadd.f32 %v2481_v30, %v2477_v33  ;;  %v2492_v19 = vmul.f32 0.5, %v2488_v12 }
 0x6d3   :  { %v2491_v31 = vadd.f32 %v2483_v27, %v2479_v21  ;;  %v2494_v34 = vmul.f32 0.5, %v2490_v14 }
 0x6d4   :  { %v2493_v38 = vmul.f32 0.5, %v2489_v5  ;;  %v2496_v13 = vmax.f32 %v2492_v19, 1e-09 }
 0x6d5   :  { %v2495_v56 = vmul.f32 0.5, %v2491_v31  ;;  %v2498_v59 = vmax.f32 %v2494_v34, 1e-09 }
 0x6d6   :  { %v2497_v24 = vmax.f32 %v2493_v38, 1e-09  ;;  %7011 = vlog2.f32 %v2496_v13 }
 0x6d7   :  { %v2499_v4 = vmax.f32 %v2495_v56, 1e-09  ;;  %7013 = vlog2.f32 %v2498_v59 }
 0x6d8   :  { %7015 = vlog2.f32 %v2497_v24 }
 0x6d9   :  { %7017 = vlog2.f32 %v2499_v4 }
 0x6e0   :  { %v7012_v11 = vpop.eup %7011 }
 0x6e1   :  { %v7014_v46 = vpop.eup %7013  ;;  %v2501_v2 = vmul.f32 0.6931472, %v7012_v11 }
 0x6e2   :  { %v7016_v49 = vpop.eup %7015  ;;  %v2505_v42 = vmul.f32 0.6931472, %v7014_v46 }
 0x6e3   :  { %v7018_v62 = vpop.eup %7017  ;;  %v2503_v61 = vmul.f32 0.6931472, %v7016_v49  ;;  %v2508_v26 = vmul.f32 1.442695, %v2501_v2 }
 0x6e4   :  { %v2507_v23 = vmul.f32 0.6931472, %v7018_v62  ;;  %v2510_v17 = vmul.f32 1.442695, %v2505_v42 }
 0x6e5   :  { %v2509_v40 = vmul.f32 1.442695, %v2503_v61  ;;  %v2512_v28 = vsub.f32 0.0, %v2508_v26 }
 0x6e6   :  { %v2511_v6 = vmul.f32 1.442695, %v2507_v23  ;;  %v2514_v8 = vsub.f32 0.0, %v2510_v17 }
 0x6e7   :  { %v2513_v0 = vsub.f32 0.0, %v2509_v40 }
 0x6e8   :  { %v2515_v45 = vsub.f32 0.0, %v2511_v6 }
 0x6e9   :  { %v2520_v50 = vcombine.low %v2512_v28, %v2513_v0 }
 0x6ea   :  { %v2521_v55 = vcombine.low %v2514_v8, %v2515_v45 }
 0x6eb   :  { %v2528_v60 = vrot.slane %v2520_v50, %v7755_v43 }
 0x6ec   :  { %v2535_v54 = vrot.slane %v2521_v55, %v7755_v43 }
 0x6ee   :  { %v2536_v1 = vcombine.low %v2528_v60, %v2535_v54 }
 0x6f0   :  { %v2543_v10 = vrot.slane %v2536_v1, %v7755_v43 }
 0x6f2   :  { %2546 = vst.msk [vmem:[#allocation5 + $0x8] sm:$0xf] %vm7760_vm9, %v2543_v10 }
 0x78a   :  { %v2778_v36 = vpop.f32.mrb[68].mxu0 }
 0x78b   :  { %v2779_v44 = vadd.f32 %v2778_v36, %v7504_v25  ;;  %v2861_v32 = vpop.f32.mrb[68].mxu1  ;;  %v2780_v47 = vpop.f32.mrb[69].mxu0 }
 0x78c   :  { %v2862_v37 = vadd.f32 %v2861_v32, %v7504_v25  ;;  %v2781_v63 = vadd.f32 %v2780_v47, %v7504_v25  ;;  %v2863_v41 = vpop.f32.mrb[69].mxu1  ;;  %v3349_v32 = vld [vmem:[#allocation2 + $0x40] sm:$0xff] }
 0x78d   :  { %v2890_v57 = vmul.f32 0.01, %v2779_v44  ;;  %v2864_v18 = vadd.f32 %v2863_v41, %v7504_v25  ;;  %vm2878_vm5 = vcmp.gt.f32.partialorder %v2779_v44, 0.0  ;;  %v3351_v47 = vld [vmem:[#allocation2 + $0xc0] sm:$0xff] }
 0x78e   :  { %vm2880_vm6 = vcmp.gt.f32.partialorder %v2862_v37, 0.0  ;;  %v2892_v58 = vmul.f32 0.01, %v2862_v37  ;;  %v2784_v33 = vpop.f32.mrb[70].mxu0  ;;  %vm2879_vm7 = vcmp.gt.f32.partialorder %v2781_v63, 0.0 }
 0x78f   :  { %v2867_v30 = vpop.f32.mrb[70].mxu1  ;;  %v2891_v12 = vmul.f32 0.01, %v2781_v63  ;;  %v2785_v21 = vadd.f32 %v2784_v33, %v7510_v35  ;;  %v2786_v14 = vpop.f32.mrb[71].mxu0  ;;  %v2902_v19 = vsel %vm2878_vm5, %v2779_v44, %v2890_v57  ;;  %v2893_v31 = vmul.f32 0.01, %v2864_v18 }
 0x790   :  { %v2868_v27 = vadd.f32 %v2867_v30, %v7510_v35  ;;  %v2869_v5 = vpop.f32.mrb[71].mxu1  ;;  %v2787_v34 = vadd.f32 %v2786_v14, %v7510_v35  ;;  %v2904_v4 = vsel %vm2880_vm6, %v2862_v37, %v2892_v58  ;;  %vm2881_vm14 = vcmp.gt.f32.partialorder %v2864_v18, 0.0  ;;  %v3350_v37 = vld [vmem:[#allocation2 + $0x48] sm:$0xff] }
 0x791   :  { %v2870_v38 = vadd.f32 %v2869_v5, %v7510_v35  ;;  %vm2882_vm8 = vcmp.gt.f32.partialorder %v2785_v21, 0.0  ;;  %v2894_v13 = vmul.f32 0.01, %v2785_v21  ;;  %v2903_v0 = vsel %vm2879_vm7, %v2781_v63, %v2891_v12  ;;  %v3352_v63 = vld [vmem:[#allocation2 + $0xc8] sm:$0xff] }
 0x792   :  { %vm2884_vm10 = vcmp.gt.f32.partialorder %v2868_v27, 0.0  ;;  %v2896_v56 = vmul.f32 0.01, %v2868_v27  ;;  %vm2883_vm11 = vcmp.gt.f32.partialorder %v2787_v34, 0.0  ;;  %v2895_v59 = vmul.f32 0.01, %v2787_v34 }
 0x793   :  { %vm2885_vm12 = vcmp.gt.f32.partialorder %v2870_v38, 0.0  ;;  %v2897_v24 = vmul.f32 0.01, %v2870_v38  ;;  %v2906_v11 = vsel %vm2882_vm8, %v2785_v21, %v2894_v13  ;;  %v2790_v2 = vpop.f32.mrb[72].mxu0  ;;  %v2873_v49 = vpop.f32.mrb[72].mxu1  ;;  %v2905_v45 = vsel %vm2881_vm14, %v2864_v18, %v2893_v31 }
 0x794   :  { %v2908_v46 = vsel %vm2884_vm10, %v2868_v27, %v2896_v56  ;;  %v6794_v42 = vpack.c.bf16 %v2906_v11, %v2902_v19  ;;  %v2791_v61 = vadd.f32 %v2790_v2, %v7516_v51  ;;  %v2874_v26 = vadd.f32 %v2873_v49, %v7516_v51  ;;  %v2792_v23 = vpop.f32.mrb[73].mxu0  ;;  %v2875_v17 = vpop.f32.mrb[73].mxu1  ;;  %v6631_v13 = vld [vmem:[%s9150_s1 + $0xc] sm:$0xf] }
 0x795   :  { %v6798_v62 = vpack.c.bf16 %v2908_v46, %v2904_v4  ;;  %v2793_v40 = vadd.f32 %v2792_v23, %v7516_v51  ;;  %v2876_v28 = vadd.f32 %v2875_v17, %v7516_v51  ;;  %v2907_v6 = vsel %vm2883_vm11, %v2787_v34, %v2895_v59 }
 0x796   :  { %v2909_v8 = vsel %vm2885_vm12, %v2870_v38, %v2897_v24  ;;  %v6792_v60 = vpack.c.bf16 %v2907_v6, %v2903_v0  ;;  %v2898_v1 = vmul.f32 0.01, %v2791_v61  ;;  %v2900_v10 = vmul.f32 0.01, %v2874_v26  ;;  %v9189_v6 = vld [vmem:[#allocation11_spill] sm:$0xff] }
 0x797   :  { %v2899_v50 = vmul.f32 0.01, %v2793_v40  ;;  %v2901_v55 = vmul.f32 0.01, %v2876_v28  ;;  %v6796_v54 = vpack.c.bf16 %v2909_v8, %v2905_v45  ;;  %vm2887_vm15 = vcmp.gt.f32.partialorder %v2793_v40, 0.0 }
 0x798   :  { %vm2889_vm1 = vcmp.gt.f32.partialorder %v2876_v28, 0.0  ;;  %6793 = vmatprep.subr.bf16.mxu0 %v6792_v60  ;;  %vm2886_vm2 = vcmp.gt.f32.partialorder %v2791_v61, 0.0  ;;  %vm2888_vm3 = vcmp.gt.f32.partialorder %v2874_v26, 0.0  ;;  %v6654_v18 = vcombine.high %v3349_v32, %v3351_v47 }
 0x799   :  { %6797 = vmatprep.subr.bf16.mxu1 %v6796_v54  ;;  %v2911_v36 = vsel %vm2887_vm15, %v2793_v40, %v2899_v50  ;;  %v2913_v44 = vsel %vm2889_vm1, %v2876_v28, %v2901_v55  ;;  %6795 = vmatpush1.bf16.msra.mxu0 %v6794_v42  ;;  %v2910_v41 = vsel %vm2886_vm2, %v2791_v61, %v2898_v1  ;;  %v9188_v40 = vld [vmem:[#allocation10_spill] sm:$0xff]  ;;  %v9190_v55 = vld [vmem:[#allocation9_spill] sm:$0xff] }
 0x79a   :  { %6799 = vmatpush1.bf16.msra.mxu1 %v6798_v62  ;;  %2918 = vmatprep.subr.mxu0 %v2911_v36  ;;  %v2912_v57 = vsel %vm2888_vm3, %v2874_v26, %v2900_v10  ;;  %v6656_v58 = vcombine.high %v3350_v37, %v3352_v63  ;;  %v6653_v33 = vcombine.low %v3349_v32, %v3351_v47 }
 0x79b   :  { %3001 = vmatprep.subr.mxu1 %v2913_v44  ;;  %v6655_v30 = vcombine.low %v3350_v37, %v3352_v63  ;;  %v3208_v61 = vrot.slane %v6631_v13, %v7589_v52  ;;  %v3216_v17 = vrot.slane %v6631_v13, %v7592_v53  ;;  %v3212_v28 = vrot.slane %v6631_v13, %v9188_v40 }
 0x79c   :  { %v3220_v8 = vrot.slane %v6631_v13, %v9189_v6 }
 0x79d   :  { %2919 = vmatpush1.msra.mxu0 %v2910_v41 }
 0x79e   :  { %3002 = vmatpush1.msra.mxu1 %v2912_v57  ;;  %6646 = vmatmul.mubr.msk.f32.vlgmr.msra.gmra.mrb[74].mxu0 %vm271_vm13, %v8009_v16 }
 0x79f   :  { %6649 = vmatmul.mubr.msk.f32.vlgmr.msra.gmra.mrb[74].mxu1 %vm271_vm13, %v8009_v16  ;;  %2984 = vmatprep.mubr.f32.mxu0 %v9182_v20  ;;  %v8236_v16 = vld [vmem:[%s9151_s2] sm:$0xff]  }
 0x7a0   :  { %3067 = vmatprep.mubr.f32.mxu1 %v9182_v20  ;;  %3375 = vmatprep.subr.bf16.mxu0 %v6654_v18 }
 0x7a1   :  { %3426 = vmatprep.subr.bf16.mxu1 %v6656_v58  ;;  %3376 = vmatpush1.bf16.msra.mxu0 %v6653_v33 }
 0x7a2   :  { %3427 = vmatpush1.bf16.msra.mxu1 %v6655_v30  ;;  %6647 = vmatmul.mubr.msk.f32.gmra.mrb[76].mxu0 %vm271_vm13, %v8020_v15 }
 0x7a3   :  { %6650 = vmatmul.mubr.msk.f32.gmra.mrb[76].mxu1 %vm271_vm13, %v8020_v15  ;;  %2990 = vmatprep.mubr.f32.mxu0 %v9182_v20  ;;  %v8247_v15 = vld [vmem:[%s9151_s2 + $0x8] ss:$0 sps:$4 sm:$0xff]  }
 0x7a4   :  { %3073 = vmatprep.mubr.f32.mxu1 %v9182_v20 }
 0x7a6   :  { %6648 = vmatmul.mubr.msk.f32.gmra.mrb[78].mxu0 %vm271_vm13, %v8031_v7 }
 0x7a7   :  { %6651 = vmatmul.mubr.msk.f32.gmra.mrb[78].mxu1 %vm271_vm13, %v8031_v7  ;;  %3407 = vmatprep.mubr.bf16.mxu0 %v9186_v29 }
 0x7a8   :  { %3458 = vmatprep.mubr.bf16.mxu1 %v9186_v29 }
 0x7aa   :  { %6657 = vmatmul.mubr.msk.bf16.vlgmr.msra.gmra.mrb[80].mxu0 %vm111_vm0, %v8236_v16 }
 0x7ab   :  { %6659 = vmatmul.mubr.msk.bf16.vlgmr.msra.gmra.mrb[80].mxu1 %vm111_vm0, %v8236_v16  ;;  %3417 = vmatprep.mubr.bf16.mxu0 %v9186_v29 }
 0x7ac   :  { %3468 = vmatprep.mubr.bf16.mxu1 %v9186_v29 }
 0x7b2   :  { %6658 = vmatmul.mubr.msk.bf16.gmra.mrb[84].mxu0 %vm111_vm0, %v8247_v15 }
 0x7b3   :  { %6660 = vmatmul.mubr.msk.bf16.gmra.mrb[84].mxu1 %vm111_vm0, %v8247_v15  ;;  %3577 = vmatprep.mubr.f32.mxu0 %v9182_v20 }
 0x7b4   :  { %3660 = vmatprep.mubr.f32.mxu1 %v9182_v20 }
 0x871   :  { %v2980_v7 = vpop.f32.mrb[74].mxu0 }
 0x872   :  { %v3063_v12 = vpop.f32.mrb[74].mxu1  ;;  %v2981_v21 = vadd.f32 %v2980_v7, %v7577_v9  ;;  %v2982_v14 = vpop.f32.mrb[75].mxu0 }
 0x873   :  { %v3064_v27 = vadd.f32 %v3063_v12, %v7577_v9  ;;  %v3065_v5 = vpop.f32.mrb[75].mxu1  ;;  %v2983_v19 = vadd.f32 %v2982_v14, %v7577_v9  ;;  %v9191_v14 = vld [vmem:[#allocation8_spill] sm:$0xff] }
 0x874   :  { %v3066_v31 = vadd.f32 %v3065_v5, %v7577_v9  ;;  %v3080_v34 = vand.u32 2147483647, %v2981_v21 }
 0x875   :  { %v3082_v38 = vand.u32 2147483647, %v3064_v27  ;;  %v3081_v56 = vand.u32 2147483647, %v2983_v19  ;;  %v2986_v24 = vpop.f32.mrb[76].mxu0 }
 0x876   :  { %v3083_v59 = vand.u32 2147483647, %v3066_v31  ;;  %v3069_v4 = vpop.f32.mrb[76].mxu1  ;;  %v3084_v11 = vmax.f32 %v3080_v34, 0.01  ;;  %v2988_v2 = vpop.f32.mrb[77].mxu0  ;;  %v2987_v26 = vadd.f32 %v2986_v24, %v7600_v3 }
 0x877   :  { %v3086_v46 = vmax.f32 %v3082_v38, 0.01  ;;  %v3071_v49 = vpop.f32.mrb[77].mxu1  ;;  %v3085_v42 = vmax.f32 %v3081_v56, 0.01  ;;  %v3070_v23 = vadd.f32 %v3069_v4, %v7600_v3  ;;  %v2989_v50 = vadd.f32 %v2988_v2, %v7600_v3 }
 0x878   :  { %v3087_v62 = vmax.f32 %v3083_v59, 0.01  ;;  %7019 = vrcp.f32 %v3084_v11  ;;  %v3072_v36 = vadd.f32 %v3071_v49, %v7600_v3  ;;  %v3225_v47 = vsub.f32 %v3208_v61, %v2987_v26 }
 0x879   :  { %7021 = vrcp.f32 %v3086_v46  ;;  %v2992_v0 = vpop.f32.mrb[78].mxu0  ;;  %v3227_v37 = vsub.f32 %v3216_v17, %v3070_v23  ;;  %v3226_v4 = vsub.f32 %v3212_v28, %v2989_v50 }
 0x87a   :  { %v3075_v45 = vpop.f32.mrb[78].mxu1  ;;  %7023 = vrcp.f32 %v3085_v42  ;;  %v2993_v60 = vadd.f32 %v2992_v0, %v9190_v55  ;;  %v2994_v1 = vpop.f32.mrb[79].mxu0 }
 0x87b   :  { %v3076_v54 = vadd.f32 %v3075_v45, %v9190_v55  ;;  %v3077_v10 = vpop.f32.mrb[79].mxu1  ;;  %7025 = vrcp.f32 %v3087_v62  ;;  %v2995_v44 = vadd.f32 %v2994_v1, %v9190_v55  ;;  %v3228_v62 = vsub.f32 %v3220_v8, %v3072_v36 }
 0x87c   :  { %v8274_v32 = vadd.f32 %v3077_v10, %v9190_v55  ;;  %v3092_v63 = vrot.slane %v2993_v60, 1  ;;  %v3104_v57 = vrot.slane %v2993_v60, 2 }
 0x87d   :  { %v3094_v41 = vrot.slane %v3076_v54, 1  ;;  %v3106_v18 = vrot.slane %v3076_v54, 2  ;;  %v3093_v58 = vrot.slane %v2995_v44, 1  ;;  %v3409_v30 = vpop.f32.mrb[80].mxu0  ;;  %v3105_v27 = vrot.slane %v2995_v44, 2 }
 0x87e   :  { %v3095_v33 = vrot.slane %v8274_v32, 1  ;;  %v3460_v7 = vpop.f32.mrb[80].mxu1  ;;  %v3100_v12 = vmax.f32 %v2993_v60, %v3092_v63  ;;  %v3410_v5 = vadd.f32 %v3409_v30, %v9191_v14  ;;  %v3411_v19 = vpop.f32.mrb[81].mxu0  ;;  %v3107_v13 = vrot.slane %v8274_v32, 2 }
 0x87f   :  { %v3102_v21 = vmax.f32 %v3076_v54, %v3094_v41  ;;  %v3462_v31 = vpop.f32.mrb[81].mxu1  ;;  %v3101_v34 = vmax.f32 %v2995_v44, %v3093_v58  ;;  %v8281_v56 = vadd.f32 %v3460_v7, %v9191_v14  ;;  %v8283_v59 = vpop.f32.mrb[82].mxu0  ;;  %v8294_v45 = vadd.f32 %v3411_v19, %v9191_v14 }
 0x880   :  { %v3103_v38 = vmax.f32 %v8274_v32, %v3095_v33  ;;  %v8285_v24 = vpop.f32.mrb[82].mxu1  ;;  %v3112_v11 = vmax.f32 %v3100_v12, %v3104_v57  ;;  %v3489_v2 = vmul.f32 0.01, %v3410_v5  ;;  %v8287_v49 = vpop.f32.mrb[83].mxu0  ;;  %vm3477_vm4 = vcmp.gt.f32.partialorder %v3410_v5, 0.0 }
 0x881   :  { %v3114_v46 = vmax.f32 %v3102_v21, %v3106_v18  ;;  %v8289_v42 = vpop.f32.mrb[83].mxu1  ;;  %v3113_v61 = vmax.f32 %v3101_v34, %v3105_v27  ;;  %v8297_v28 = vadd.f32 %v3462_v31, %v9191_v14  ;;  %vm3479_vm5 = vcmp.gt.f32.partialorder %v8281_v56, 0.0 }
 0x882   :  { %v3115_v26 = vmax.f32 %v3103_v38, %v3107_v13  ;;  %v7020_v23 = vpop.eup %7019  ;;  %v3119_v17 = vrot.slane %v3112_v11, %v7589_v52  ;;  %v3491_v8 = vmul.f32 0.01, %v8281_v56  ;;  %v8303_v18 = vsel %vm3477_vm4, %v3410_v5, %v3489_v2 }
 0x883   :  { %v3127_v0 = vrot.slane %v3114_v46, %v7589_v52  ;;  %v7022_v50 = vpop.eup %7021  ;;  %v3200_v1 = vmul.f32 0.70710677, %v7020_v23  ;;  %v3123_v10 = vrot.slane %v3113_v61, %v7589_v52  ;;  %vm3478_vm6 = vcmp.gt.f32.partialorder %v8294_v45, 0.0 }
 0x884   :  { %v7024_v36 = vpop.eup %7023  ;;  %v3202_v63 = vmul.f32 0.70710677, %v7022_v50  ;;  %v3132_v41 = vsub.f32 %v2993_v60, %v3119_v17  ;;  %v3131_v57 = vrot.slane %v3115_v26, %v7589_v52  ;;  %vm3480_vm10 = vcmp.gt.f32.partialorder %v8297_v28, 0.0 }
 0x885   :  { %v7026_v58 = vpop.eup %7025  ;;  %v3233_v33 = vmul.f32 0.0019607844, %v3200_v1  ;;  %v3201_v30 = vmul.f32 0.70710677, %v7024_v36  ;;  %v3229_v7 = vmul.f32 %v3225_v47, %v3200_v1  ;;  %v3134_v12 = vsub.f32 %v3076_v54, %v3127_v0  ;;  %v8305_v21 = vpop.f32.mrb[84].mxu0 }
 0x886   :  { %v8307_v27 = vpop.f32.mrb[84].mxu1  ;;  %v3235_v19 = vmul.f32 0.0019607844, %v3202_v63  ;;  %v3203_v31 = vmul.f32 0.70710677, %v7026_v58  ;;  %v3231_v34 = vmul.f32 %v3227_v37, %v3202_v63  ;;  %v3133_v38 = vsub.f32 %v2995_v44, %v3123_v10  ;;  %v3421_v61 = vpop.f32.mrb[85].mxu0 }
 0x887   :  { %v3234_v13 = vmul.f32 0.0019607844, %v3201_v30  ;;  %v3237_v11 = vsub.f32 %v3233_v33, %v3229_v7  ;;  %v3245_v60 = vsub.f32 0.0, %v3233_v33  ;;  %v3230_v46 = vmul.f32 %v3226_v4, %v3201_v30  ;;  %v3472_v5 = vpop.f32.mrb[85].mxu1  ;;  %v3423_v47 = vpop.f32.mrb[86].mxu0 }
 0x888   :  { %v3236_v2 = vmul.f32 0.0019607844, %v3203_v31  ;;  %v3239_v26 = vsub.f32 %v3235_v19, %v3231_v34  ;;  %v3247_v23 = vsub.f32 0.0, %v3235_v19  ;;  %v3232_v17 = vmul.f32 %v3228_v62, %v3203_v31  ;;  %v3474_v54 = vpop.f32.mrb[86].mxu1  ;;  %v3424_v36 = vpop.f32.mrb[87].mxu0 }
 0x889   :  { %7027 = verf.f32 %v3237_v11  ;;  %v3249_v0 = vsub.f32 %v3245_v60, %v3229_v7  ;;  %v3238_v50 = vsub.f32 %v3234_v13, %v3230_v46  ;;  %v3246_v1 = vsub.f32 0.0, %v3234_v13  ;;  %v3475_v58 = vpop.f32.mrb[87].mxu1 }
 0x88a   :  { %7029 = verf.f32 %v3239_v26  ;;  %v3251_v44 = vsub.f32 %v3247_v23, %v3231_v34  ;;  %v3240_v37 = vsub.f32 %v3236_v2, %v3232_v17  ;;  %v3248_v10 = vsub.f32 0.0, %v3236_v2 }
 0x88b   :  { %7031 = verf.f32 %v3249_v0  ;;  %v3250_v4 = vsub.f32 %v3246_v1, %v3230_v46  ;;  %v8313_v62 = vsel %vm3479_vm5, %v8281_v56, %v3491_v8  ;;  %v3490_v63 = vmul.f32 0.01, %v8294_v45 }
 0x88c   :  { %7033 = verf.f32 %v3251_v44  ;;  %v3252_v33 = vsub.f32 %v3248_v10, %v3232_v17  ;;  %v3136_v30 = vmul.f32 1.442695, %v3132_v41  ;;  %v3135_v7 = vsub.f32 %v8274_v32, %v3131_v57 }
 0x88d   :  { %7035 = verf.f32 %v3238_v50  ;;  %v3140_v19 = vmul.f32 1.442695, %v3134_v12  ;;  %v3414_v31 = vadd.f32 %v8283_v59, %v7450_v22  ;;  %v3465_v34 = vadd.f32 %v8285_v24, %v7450_v22 }
 0x88e   :  { %7037 = verf.f32 %v3250_v4  ;;  %v3138_v13 = vmul.f32 1.442695, %v3133_v38  ;;  %v3416_v56 = vadd.f32 %v8287_v49, %v7450_v22  ;;  %v3467_v8 = vadd.f32 %v8289_v42, %v7450_v22 }
 0x88f   :  { %7039 = verf.f32 %v3240_v37  ;;  %vm3481_vm7 = vcmp.gt.f32.partialorder %v3414_v31, 0.0  ;;  %v3493_v41 = vmul.f32 0.01, %v3414_v31  ;;  %vm3483_vm8 = vcmp.gt.f32.partialorder %v3465_v34, 0.0 }
 0x890   :  { %7041 = verf.f32 %v3252_v33  ;;  %v3142_v32 = vmul.f32 1.442695, %v3135_v7  ;;  %v3495_v59 = vmul.f32 0.01, %v3465_v34  ;;  %v3492_v24 = vmul.f32 0.01, %v8297_v28 }
 0x891   :  { %7043 = vpow2.f32 %v3136_v30  ;;  %v3505_v57 = vsel %vm3481_vm7, %v3414_v31, %v3493_v41  ;;  %vm3482_vm11 = vcmp.gt.f32.partialorder %v3416_v56, 0.0  ;;  %v3494_v38 = vmul.f32 0.01, %v3416_v56 }
 0x892   :  { %7045 = vpow2.f32 %v3140_v19  ;;  %v6802_v49 = vpack.c.bf16 %v3505_v57, %v8303_v18  ;;  %v3507_v12 = vsel %vm3483_vm8, %v3465_v34, %v3495_v59  ;;  %v3496_v60 = vmul.f32 0.01, %v3467_v8 }
 0x893   :  { %v8328_v42 = vpop.eup %7027  ;;  %7047 = vpow2.f32 %v3138_v13  ;;  %v6806_v11 = vpack.c.bf16 %v3507_v12, %v8313_v62  ;;  %v3422_v46 = vadd.f32 %v3421_v61, %v7460_v48  ;;  %vm3484_vm12 = vcmp.gt.f32.partialorder %v3467_v8, 0.0 }
 0x894   :  { %v8332_v2 = vpop.eup %7029  ;;  %7049 = vpow2.f32 %v3142_v32  ;;  %v3473_v26 = vadd.f32 %v3472_v5, %v7460_v48  ;;  %v3420_v18 = vadd.f32 %v8305_v21, %v7460_v48  ;;  %v3471_v17 = vadd.f32 %v8307_v27, %v7460_v48 }
 0x895   :  { %v8335_v23 = vpop.eup %7031  ;;  %v3498_v47 = vmul.f32 0.01, %v3422_v46  ;;  %v3502_v54 = vsel %vm3478_vm6, %v8294_v45, %v3490_v63  ;;  %v3506_v5 = vsel %vm3482_vm11, %v3416_v56, %v3494_v38  ;;  %v3504_v21 = vsel %vm3480_vm10, %v8297_v28, %v3492_v24  ;;  %v8369_v38 = vld [vmem:[%s9153_s4] sm:$0xff] }
 0x896   :  { %v8344_v61 = vpop.eup %7033  ;;  %v3257_v0 = vsub.f32 %v8328_v42, %v8335_v23  ;;  %v3500_v50 = vmul.f32 0.01, %v3473_v26  ;;  %v6800_v36 = vpack.c.bf16 %v3506_v5, %v3502_v54  ;;  %v3508_v58 = vsel %vm3484_vm12, %v3467_v8, %v3496_v60  ;;  %v8391_v5 = vld [vmem:[%s9153_s4 + $0x10] sm:$0xff] }
 0x897   :  { %v8352_v1 = vpop.eup %7035  ;;  %v3259_v27 = vsub.f32 %v8332_v2, %v8344_v61  ;;  %vm3486_vm14 = vcmp.gt.f32.partialorder %v3422_v46, 0.0  ;;  %v6804_v44 = vpack.c.bf16 %v3508_v58, %v3504_v21  ;;  %vm3488_vm15 = vcmp.gt.f32.partialorder %v3473_v26, 0.0 }
 0x898   :  { %v8356_v45 = vpop.eup %7037  ;;  %v3510_v37 = vsel %vm3486_vm14, %v3422_v46, %v3498_v47  ;;  %v3497_v62 = vmul.f32 0.01, %v3420_v18  ;;  %6801 = vmatprep.subr.bf16.mxu0 %v6800_v36  ;;  %v3512_v28 = vsel %vm3488_vm15, %v3473_v26, %v3500_v50  ;;  %vm3485_vm1 = vcmp.gt.f32.partialorder %v3420_v18, 0.0  ;;  %v8380_v50 = vld [vmem:[%s9153_s4 + $0x8] sm:$0xff] }
 0x899   :  { %v8358_v10 = vpop.eup %7039  ;;  %v3258_v4 = vsub.f32 %v8352_v1, %v8356_v45  ;;  %v3499_v33 = vmul.f32 0.01, %v3471_v17  ;;  %6805 = vmatprep.subr.bf16.mxu1 %v6804_v44  ;;  %6803 = vmatpush1.bf16.msra.mxu0 %v6802_v49  ;;  %vm3487_vm2 = vcmp.gt.f32.partialorder %v3471_v17, 0.0 }
 0x89a   :  { %v8362_v63 = vpop.eup %7041  ;;  %6807 = vmatpush1.bf16.msra.mxu1 %v6806_v11  ;;  %3517 = vmatprep.subr.mxu0 %v3510_v37  ;;  %v3509_v56 = vsel %vm3485_vm1, %v3420_v18, %v3497_v62 }
 0x89b   :  { %v7044_v30 = vpop.eup %7043  ;;  %v3260_v7 = vsub.f32 %v8358_v10, %v8362_v63  ;;  %3600 = vmatprep.subr.mxu1 %v3512_v28  ;;  %v3511_v24 = vsel %vm3487_vm2, %v3471_v17, %v3499_v33 }
 0x89c   :  { %v7046_v19 = vpop.eup %7045  ;;  %v3148_v31 = vrot.slane %v7044_v30, 1  ;;  %v3160_v32 = vrot.slane %v7044_v30, 2 }
 0x89d   :  { %v7048_v34 = vpop.eup %7047  ;;  %v3150_v13 = vrot.slane %v7046_v19, 1  ;;  %3518 = vmatpush1.msra.mxu0 %v3509_v56  ;;  %v3162_v49 = vrot.slane %v7046_v19, 2 }
 0x89e   :  { %v7050_v8 = vpop.eup %7049  ;;  %v3156_v41 = vadd.f32 %v7044_v30, %v3148_v31  ;;  %v3149_v59 = vrot.slane %v7048_v34, 1  ;;  %3601 = vmatpush1.msra.mxu1 %v3511_v24  ;;  %6661 = vmatmul.mubr.msk.f32.vlgmr.msra.gmra.mrb[88].mxu0 %vm271_vm13, %v8369_v38  ;;  %v3161_v46 = vrot.slane %v7048_v34, 2 }
 0x89f   :  { %v3158_v57 = vadd.f32 %v7046_v19, %v3150_v13  ;;  %v3151_v12 = vrot.slane %v7050_v8, 1  ;;  %6664 = vmatmul.mubr.msk.f32.vlgmr.msra.gmra.mrb[88].mxu1 %vm271_vm13, %v8369_v38  ;;  %3583 = vmatprep.mubr.f32.mxu0 %v9182_v20  ;;  %v3163_v17 = vrot.slane %v7050_v8, 2 }
 0x8a0   :  { %v3168_v11 = vadd.f32 %v3160_v32, %v3156_v41  ;;  %v3157_v60 = vadd.f32 %v7048_v34, %v3149_v59  ;;  %3666 = vmatprep.mubr.f32.mxu1 %v9182_v20 }
 0x8a1   :  { %v3170_v26 = vadd.f32 %v3162_v49, %v3158_v57  ;;  %v3159_v18 = vadd.f32 %v7050_v8, %v3151_v12 }
 0x8a2   :  { %7051 = vrcp.f32 %v3168_v11  ;;  %v3169_v47 = vadd.f32 %v3161_v46, %v3157_v60  ;;  %6662 = vmatmul.mubr.msk.f32.gmra.mrb[90].mxu0 %vm271_vm13, %v8380_v50 }
 0x8a3   :  { %7053 = vrcp.f32 %v3170_v26  ;;  %v3171_v54 = vadd.f32 %v3163_v17, %v3159_v18  ;;  %6665 = vmatmul.mubr.msk.f32.gmra.mrb[90].mxu1 %vm271_vm13, %v8380_v50  ;;  %3589 = vmatprep.mubr.f32.mxu0 %v9182_v20 }
 0x8a4   :  { %7055 = vrcp.f32 %v3169_v47  ;;  %3672 = vmatprep.mubr.f32.mxu1 %v9182_v20 }
 0x8a5   :  { %7057 = vrcp.f32 %v3171_v54 }
 0x8a6   :  { %6663 = vmatmul.mubr.msk.f32.gmra.mrb[92].mxu0 %vm271_vm13, %v8391_v5 }
 0x8a7   :  { %6666 = vmatmul.mubr.msk.f32.gmra.mrb[92].mxu1 %vm271_vm13, %v8391_v5  ;;  %3779 = vmatprep.mubr.f32.mxu0 %v9182_v20 }
 0x8a8   :  { %3862 = vmatprep.mubr.f32.mxu1 %v9182_v20 }
 0x8ac   :  { %v7052_v21 = vpop.eup %7051 }
 0x8ad   :  { %v7054_v36 = vpop.eup %7053  ;;  %v3179_v58 = vrot.slane %v7052_v21, %v7589_v52 }
 0x8ae   :  { %v7056_v44 = vpop.eup %7055  ;;  %v3187_v37 = vrot.slane %v7054_v36, %v7589_v52 }
 0x8af   :  { %v7058_v62 = vpop.eup %7057  ;;  %v3183_v28 = vrot.slane %v7056_v44, %v7589_v52  ;;  %v3192_v33 = vmul.f32 %v7044_v30, %v3179_v58 }
 0x8b0   :  { %v3191_v31 = vrot.slane %v7058_v62, %v7589_v52  ;;  %v3194_v13 = vmul.f32 %v7046_v19, %v3187_v37 }
 0x8b1   :  { %v3193_v56 = vmul.f32 %v7048_v34, %v3183_v28  ;;  %v3261_v41 = vmul.f32 %v3257_v0, %v3192_v33 }
 0x8b2   :  { %v3195_v32 = vmul.f32 %v7050_v8, %v3191_v31  ;;  %v3263_v59 = vmul.f32 %v3259_v27, %v3194_v13 }
 0x8b3   :  { %v3262_v24 = vmul.f32 %v3258_v4, %v3193_v56  ;;  %v3269_v57 = vrot.slane %v3261_v41, 1  ;;  %v3281_v12 = vrot.slane %v3261_v41, 2 }
 0x8b4   :  { %v3264_v30 = vmul.f32 %v3260_v7, %v3195_v32  ;;  %v3271_v19 = vrot.slane %v3263_v59, 1  ;;  %v3283_v0 = vrot.slane %v3263_v59, 2 }
 0x8b5   :  { %v3270_v34 = vrot.slane %v3262_v24, 1  ;;  %v3277_v49 = vadd.f32 %v3269_v57, %v3261_v41  ;;  %v3282_v11 = vrot.slane %v3262_v24, 2 }
 0x8b6   :  { %v3272_v42 = vrot.slane %v3264_v30, 1  ;;  %v3279_v23 = vadd.f32 %v3271_v19, %v3263_v59  ;;  %v3284_v27 = vrot.slane %v3264_v30, 2 }
 0x8b7   :  { %v3278_v8 = vadd.f32 %v3270_v34, %v3262_v24  ;;  %v3289_v2 = vadd.f32 %v3281_v12, %v3277_v49 }
 0x8b8   :  { %v3280_v61 = vadd.f32 %v3272_v42, %v3264_v30  ;;  %v3291_v60 = vadd.f32 %v3283_v0, %v3279_v23 }
 0x8b9   :  { %v3290_v1 = vadd.f32 %v3282_v11, %v3278_v8  ;;  %v3293_v45 = vmul.f32 0.5, %v3289_v2 }
 0x8ba   :  { %v3292_v4 = vadd.f32 %v3284_v27, %v3280_v61  ;;  %v3295_v46 = vmul.f32 0.5, %v3291_v60 }
 0x8bb   :  { %v3294_v26 = vmul.f32 0.5, %v3290_v1  ;;  %v3297_v10 = vmax.f32 %v3293_v45, 1e-09 }
 0x8bc   :  { %v3296_v63 = vmul.f32 0.5, %v3292_v4  ;;  %v3299_v7 = vmax.f32 %v3295_v46, 1e-09 }
 0x8bd   :  { %v3298_v18 = vmax.f32 %v3294_v26, 1e-09  ;;  %7059 = vlog2.f32 %v3297_v10 }
 0x8be   :  { %v3300_v17 = vmax.f32 %v3296_v63, 1e-09  ;;  %7061 = vlog2.f32 %v3299_v7 }
 0x8bf   :  { %7063 = vlog2.f32 %v3298_v18 }
 0x8c0   :  { %7065 = vlog2.f32 %v3300_v17 }
 0x8c7   :  { %v7060_v47 = vpop.eup %7059 }
 0x8c8   :  { %v7062_v54 = vpop.eup %7061  ;;  %v3302_v21 = vmul.f32 0.6931472, %v7060_v47 }
 0x8c9   :  { %v7064_v36 = vpop.eup %7063  ;;  %v3306_v58 = vmul.f32 0.6931472, %v7062_v54 }
 0x8ca   :  { %v7066_v44 = vpop.eup %7065  ;;  %v3304_v37 = vmul.f32 0.6931472, %v7064_v36  ;;  %v3309_v62 = vmul.f32 1.442695, %v3302_v21 }
 0x8cb   :  { %v3308_v28 = vmul.f32 0.6931472, %v7066_v44  ;;  %v3311_v33 = vmul.f32 1.442695, %v3306_v58 }
 0x8cc   :  { %v3310_v31 = vmul.f32 1.442695, %v3304_v37  ;;  %v3313_v13 = vsub.f32 0.0, %v3309_v62 }
 0x8cd   :  { %v3312_v56 = vmul.f32 1.442695, %v3308_v28  ;;  %v3315_v41 = vsub.f32 0.0, %v3311_v33 }
 0x8ce   :  { %v3314_v32 = vsub.f32 0.0, %v3310_v31 }
 0x8cf   :  { %v3316_v59 = vsub.f32 0.0, %v3312_v56 }
 0x8d0   :  { %v3321_v24 = vcombine.low %v3313_v13, %v3314_v32 }
 0x8d1   :  { %v3322_v57 = vcombine.low %v3315_v41, %v3316_v59 }
 0x8d2   :  { %v3329_v30 = vrot.slane %v3321_v24, %v7755_v43 }
 0x8d3   :  { %v3336_v19 = vrot.slane %v3322_v57, %v7755_v43 }
 0x8d5   :  { %v3337_v34 = vcombine.low %v3329_v30, %v3336_v19 }
 0x8d7   :  { %v3344_v49 = vrot.slane %v3337_v34, %v7755_v43 }
 0x8d9   :  { %3347 = vst.msk [vmem:[#allocation5 + $0xc] sm:$0xf] %vm7760_vm9, %v3344_v49 }
 0x971   :  { %v3579_v12 = vpop.f32.mrb[88].mxu0 }
 0x972   :  { %v3580_v42 = vadd.f32 %v3579_v12, %v7504_v25  ;;  %v3662_v23 = vpop.f32.mrb[88].mxu1  ;;  %v3581_v0 = vpop.f32.mrb[89].mxu0 }
 0x973   :  { %v3663_v8 = vadd.f32 %v3662_v23, %v7504_v25  ;;  %v3582_v11 = vadd.f32 %v3581_v0, %v7504_v25  ;;  %v3664_v2 = vpop.f32.mrb[89].mxu1 }
 0x974   :  { %v3691_v61 = vmul.f32 0.01, %v3580_v42  ;;  %v3665_v27 = vadd.f32 %v3664_v2, %v7504_v25  ;;  %vm3679_vm3 = vcmp.gt.f32.partialorder %v3580_v42, 0.0 }
 0x975   :  { %vm3681_vm4 = vcmp.gt.f32.partialorder %v3663_v8, 0.0  ;;  %v3693_v60 = vmul.f32 0.01, %v3663_v8  ;;  %v3585_v1 = vpop.f32.mrb[90].mxu0  ;;  %vm3680_vm5 = vcmp.gt.f32.partialorder %v3582_v11, 0.0 }
 0x976   :  { %v3668_v45 = vpop.f32.mrb[90].mxu1  ;;  %v3692_v4 = vmul.f32 0.01, %v3582_v11  ;;  %v3586_v46 = vadd.f32 %v3585_v1, %v7510_v35  ;;  %v3587_v10 = vpop.f32.mrb[91].mxu0  ;;  %v3703_v7 = vsel %vm3679_vm3, %v3580_v42, %v3691_v61  ;;  %v3694_v18 = vmul.f32 0.01, %v3665_v27 }
 0x977   :  { %v3669_v26 = vadd.f32 %v3668_v45, %v7510_v35  ;;  %v3670_v63 = vpop.f32.mrb[91].mxu1  ;;  %v3588_v17 = vadd.f32 %v3587_v10, %v7510_v35  ;;  %v3705_v44 = vsel %vm3681_vm4, %v3663_v8, %v3693_v60  ;;  %vm3682_vm11 = vcmp.gt.f32.partialorder %v3665_v27, 0.0  ;;  %v4150_v1 = vld [vmem:[#allocation2 + $0x50] sm:$0xff]  ;;  %v4151_v45 = vld [vmem:[#allocation2 + $0x58] sm:$0xff] }
 0x978   :  { %v3671_v47 = vadd.f32 %v3670_v63, %v7510_v35  ;;  %vm3683_vm6 = vcmp.gt.f32.partialorder %v3586_v46, 0.0  ;;  %v3695_v54 = vmul.f32 0.01, %v3586_v46  ;;  %v3704_v34 = vsel %vm3680_vm5, %v3582_v11, %v3692_v4  ;;  %v4152_v11 = vld [vmem:[#allocation2 + $0xd0] sm:$0xff] }
 0x979   :  { %vm3685_vm7 = vcmp.gt.f32.partialorder %v3669_v26, 0.0  ;;  %v3697_v21 = vmul.f32 0.01, %v3669_v26  ;;  %vm3684_vm8 = vcmp.gt.f32.partialorder %v3588_v17, 0.0  ;;  %v3696_v36 = vmul.f32 0.01, %v3588_v17 }
 0x97a   :  { %vm3686_vm10 = vcmp.gt.f32.partialorder %v3671_v47, 0.0  ;;  %v3698_v58 = vmul.f32 0.01, %v3671_v47  ;;  %v3707_v37 = vsel %vm3683_vm6, %v3586_v46, %v3695_v54  ;;  %v3591_v28 = vpop.f32.mrb[92].mxu0  ;;  %v3674_v33 = vpop.f32.mrb[92].mxu1  ;;  %v3706_v49 = vsel %vm3682_vm11, %v3665_v27, %v3694_v18  ;;  %v4153_v27 = vld [vmem:[#allocation2 + $0xd8] sm:$0xff] }
 0x97b   :  { %v3709_v62 = vsel %vm3685_vm7, %v3669_v26, %v3697_v21  ;;  %v6810_v31 = vpack.c.bf16 %v3707_v37, %v3703_v7  ;;  %v3592_v56 = vadd.f32 %v3591_v28, %v7516_v51  ;;  %v3675_v41 = vadd.f32 %v3674_v33, %v7516_v51  ;;  %v3593_v32 = vpop.f32.mrb[93].mxu0  ;;  %v3676_v59 = vpop.f32.mrb[93].mxu1  ;;  %v8440_v18 = vld [vmem:[%s9155_s6] sm:$0xff] }
 0x97c   :  { %v6814_v13 = vpack.c.bf16 %v3709_v62, %v3705_v44  ;;  %v3594_v24 = vadd.f32 %v3593_v32, %v7516_v51  ;;  %v3677_v57 = vadd.f32 %v3676_v59, %v7516_v51  ;;  %v3708_v30 = vsel %vm3684_vm8, %v3588_v17, %v3696_v36  ;;  %v8451_v17 = vld [vmem:[%s9155_s6 + $0x8] sm:$0xff] }
 0x97d   :  { %v3710_v19 = vsel %vm3686_vm10, %v3671_v47, %v3698_v58  ;;  %v6808_v23 = vpack.c.bf16 %v3708_v30, %v3704_v34  ;;  %v3699_v8 = vmul.f32 0.01, %v3592_v56  ;;  %v3701_v2 = vmul.f32 0.01, %v3675_v41  ;;  %v8462_v47 = vld [vmem:[%s9155_s6 + $0x10] sm:$0xff] }
 0x97e   :  { %v3700_v12 = vmul.f32 0.01, %v3594_v24  ;;  %v3702_v42 = vmul.f32 0.01, %v3677_v57  ;;  %v6812_v0 = vpack.c.bf16 %v3710_v19, %v3706_v49  ;;  %vm3688_vm12 = vcmp.gt.f32.partialorder %v3594_v24, 0.0 }
 0x97f   :  { %vm3690_vm14 = vcmp.gt.f32.partialorder %v3677_v57, 0.0  ;;  %6809 = vmatprep.subr.bf16.mxu0 %v6808_v23  ;;  %vm3687_vm15 = vcmp.gt.f32.partialorder %v3592_v56, 0.0  ;;  %vm3689_vm1 = vcmp.gt.f32.partialorder %v3675_v41, 0.0  ;;  %v6675_v26 = vcombine.high %v4150_v1, %v4152_v11 }
 0x980   :  { %6813 = vmatprep.subr.bf16.mxu1 %v6812_v0  ;;  %v3712_v61 = vsel %vm3688_vm12, %v3594_v24, %v3700_v12  ;;  %v3714_v60 = vsel %vm3690_vm14, %v3677_v57, %v3702_v42  ;;  %6811 = vmatpush1.bf16.msra.mxu0 %v6810_v31  ;;  %v3711_v4 = vsel %vm3687_vm15, %v3592_v56, %v3699_v8 }
 0x981   :  { %6815 = vmatpush1.bf16.msra.mxu1 %v6814_v13  ;;  %3719 = vmatprep.subr.mxu0 %v3712_v61  ;;  %v3713_v46 = vsel %vm3689_vm1, %v3675_v41, %v3701_v2  ;;  %v6677_v10 = vcombine.high %v4151_v45, %v4153_v27  ;;  %v6674_v63 = vcombine.low %v4150_v1, %v4152_v11 }
 0x982   :  { %3802 = vmatprep.subr.mxu1 %v3714_v60  ;;  %v6676_v7 = vcombine.low %v4151_v45, %v4153_v27 }
 0x984   :  { %3720 = vmatpush1.msra.mxu0 %v3711_v4 }
 0x985   :  { %3803 = vmatpush1.msra.mxu1 %v3713_v46  ;;  %6667 = vmatmul.mubr.msk.f32.vlgmr.msra.gmra.mrb[94].mxu0 %vm271_vm13, %v8440_v18 }
 0x986   :  { %6670 = vmatmul.mubr.msk.f32.vlgmr.msra.gmra.mrb[94].mxu1 %vm271_vm13, %v8440_v18  ;;  %3785 = vmatprep.mubr.f32.mxu0 %v9182_v20 }
 0x987   :  { %3868 = vmatprep.mubr.f32.mxu1 %v9182_v20  ;;  %4176 = vmatprep.subr.bf16.mxu0 %v6675_v26 }
 0x988   :  { %4227 = vmatprep.subr.bf16.mxu1 %v6677_v10  ;;  %4177 = vmatpush1.bf16.msra.mxu0 %v6674_v63 }
 0x989   :  { %4228 = vmatpush1.bf16.msra.mxu1 %v6676_v7  ;;  %6668 = vmatmul.mubr.msk.f32.gmra.mrb[96].mxu0 %vm271_vm13, %v8451_v17 }
 0x98a   :  { %6671 = vmatmul.mubr.msk.f32.gmra.mrb[96].mxu1 %vm271_vm13, %v8451_v17  ;;  %3791 = vmatprep.mubr.f32.mxu0 %v9182_v20 }
 0x98b   :  { %3874 = vmatprep.mubr.f32.mxu1 %v9182_v20 }
 0x98d   :  { %6669 = vmatmul.mubr.msk.f32.gmra.mrb[98].mxu0 %vm271_vm13, %v8462_v47 }
 0x98e   :  { %6672 = vmatmul.mubr.msk.f32.gmra.mrb[98].mxu1 %vm271_vm13, %v8462_v47  ;;  %4208 = vmatprep.mubr.bf16.mxu0 %v9186_v29 }
 0x98f   :  { %4259 = vmatprep.mubr.bf16.mxu1 %v9186_v29 }
 0x991   :  { %6678 = vmatmul.mubr.msk.bf16.vlgmr.msra.gmra.mrb[100].mxu0 %vm111_vm0, %v8236_v16 }
 0x992   :  { %6680 = vmatmul.mubr.msk.bf16.vlgmr.msra.gmra.mrb[100].mxu1 %vm111_vm0, %v8236_v16  ;;  %4218 = vmatprep.mubr.bf16.mxu0 %v9186_v29 }
 0x993   :  { %4269 = vmatprep.mubr.bf16.mxu1 %v9186_v29 }
 0x999   :  { %6679 = vmatmul.mubr.msk.bf16.gmra.mrb[104].mxu0 %vm111_vm0, %v8247_v15 }
 0x99a   :  { %6681 = vmatmul.mubr.msk.bf16.gmra.mrb[104].mxu1 %vm111_vm0, %v8247_v15  ;;  %4378 = vmatprep.mubr.f32.mxu0 %v9182_v20  ;;  %v6652_v15 = vld [vmem:[%s9150_s1 + $0x10] sm:$0xf] }
 0x99b   :  { %4461 = vmatprep.mubr.f32.mxu1 %v9182_v20  ;;  %v4009_v34 = vrot.slane %v6652_v15, %v7589_v52  ;;  %v4017_v42 = vrot.slane %v6652_v15, %v7592_v53  ;;  %v4013_v23 = vrot.slane %v6652_v15, %v9188_v40  ;;  %v4021_v0 = vrot.slane %v6652_v15, %v9189_v6 }
 0xa58   :  { %v3781_v54 = vpop.f32.mrb[94].mxu0 }
 0xa59   :  { %v3864_v21 = vpop.f32.mrb[94].mxu1  ;;  %v3782_v36 = vadd.f32 %v3781_v54, %v7577_v9  ;;  %v3783_v58 = vpop.f32.mrb[95].mxu0 }
 0xa5a   :  { %v3865_v16 = vadd.f32 %v3864_v21, %v7577_v9  ;;  %v3866_v44 = vpop.f32.mrb[95].mxu1  ;;  %v3784_v37 = vadd.f32 %v3783_v58, %v7577_v9 }
 0xa5b   :  { %v3867_v62 = vadd.f32 %v3866_v44, %v7577_v9  ;;  %v3881_v28 = vand.u32 2147483647, %v3782_v36 }
 0xa5c   :  { %v3883_v33 = vand.u32 2147483647, %v3865_v16  ;;  %v3882_v31 = vand.u32 2147483647, %v3784_v37  ;;  %v3787_v56 = vpop.f32.mrb[96].mxu0 }
 0xa5d   :  { %v3884_v13 = vand.u32 2147483647, %v3867_v62  ;;  %v3870_v41 = vpop.f32.mrb[96].mxu1  ;;  %v3885_v32 = vmax.f32 %v3881_v28, 0.01  ;;  %v3789_v24 = vpop.f32.mrb[97].mxu0  ;;  %v3788_v49 = vadd.f32 %v3787_v56, %v7600_v3 }
 0xa5e   :  { %v3887_v59 = vmax.f32 %v3883_v33, 0.01  ;;  %v3872_v57 = vpop.f32.mrb[97].mxu1  ;;  %v3886_v30 = vmax.f32 %v3882_v31, 0.01  ;;  %v3871_v12 = vadd.f32 %v3870_v41, %v7600_v3  ;;  %v3790_v61 = vadd.f32 %v3789_v24, %v7600_v3 }
 0xa5f   :  { %v3888_v19 = vmax.f32 %v3884_v13, 0.01  ;;  %7067 = vrcp.f32 %v3885_v32  ;;  %v3873_v27 = vadd.f32 %v3872_v57, %v7600_v3  ;;  %v4026_v26 = vsub.f32 %v4009_v34, %v3788_v49 }
 0xa60   :  { %7069 = vrcp.f32 %v3887_v59  ;;  %v3793_v8 = vpop.f32.mrb[98].mxu0  ;;  %v4028_v10 = vsub.f32 %v4017_v42, %v3871_v12  ;;  %v4027_v57 = vsub.f32 %v4013_v23, %v3790_v61 }
 0xa61   :  { %v3876_v2 = vpop.f32.mrb[98].mxu1  ;;  %7071 = vrcp.f32 %v3886_v30  ;;  %v3794_v60 = vadd.f32 %v3793_v8, %v9190_v55  ;;  %v3795_v11 = vpop.f32.mrb[99].mxu0  ;;  %v4029_v42 = vsub.f32 %v4021_v0, %v3873_v27 }
 0xa62   :  { %v3877_v1 = vadd.f32 %v3876_v2, %v9190_v55  ;;  %v3878_v45 = vpop.f32.mrb[99].mxu1  ;;  %7073 = vrcp.f32 %v3888_v19  ;;  %v3796_v4 = vadd.f32 %v3795_v11, %v9190_v55 }
 0xa63   :  { %v8501_v46 = vadd.f32 %v3878_v45, %v9190_v55  ;;  %v3893_v63 = vrot.slane %v3794_v60, 1  ;;  %v3905_v54 = vrot.slane %v3794_v60, 2 }
 0xa64   :  { %v3895_v7 = vrot.slane %v3877_v1, 1  ;;  %v3907_v21 = vrot.slane %v3877_v1, 2  ;;  %v3894_v36 = vrot.slane %v3796_v4, 1  ;;  %v4210_v58 = vpop.f32.mrb[100].mxu0  ;;  %v3906_v28 = vrot.slane %v3796_v4, 2 }
 0xa65   :  { %v3896_v16 = vrot.slane %v8501_v46, 1  ;;  %v4261_v44 = vpop.f32.mrb[100].mxu1  ;;  %v3901_v37 = vmax.f32 %v3794_v60, %v3893_v63  ;;  %v4211_v33 = vadd.f32 %v4210_v58, %v9191_v14  ;;  %v4212_v15 = vpop.f32.mrb[101].mxu0  ;;  %v3908_v41 = vrot.slane %v8501_v46, 2 }
 0xa66   :  { %v3903_v62 = vmax.f32 %v3877_v1, %v3895_v7  ;;  %v4263_v31 = vpop.f32.mrb[101].mxu1  ;;  %v3902_v13 = vmax.f32 %v3796_v4, %v3894_v36  ;;  %v8508_v32 = vadd.f32 %v4261_v44, %v9191_v14  ;;  %v8510_v59 = vpop.f32.mrb[102].mxu0  ;;  %v8521_v7 = vadd.f32 %v4212_v15, %v9191_v14 }
 0xa67   :  { %v3904_v56 = vmax.f32 %v8501_v46, %v3896_v16  ;;  %v8512_v24 = vpop.f32.mrb[102].mxu1  ;;  %v3913_v30 = vmax.f32 %v3901_v37, %v3905_v54  ;;  %v4290_v34 = vmul.f32 0.01, %v4211_v33  ;;  %v8514_v49 = vpop.f32.mrb[103].mxu0  ;;  %vm4278_vm2 = vcmp.gt.f32.partialorder %v4211_v33, 0.0 }
 0xa68   :  { %v3915_v19 = vmax.f32 %v3903_v62, %v3907_v21  ;;  %v8516_v12 = vpop.f32.mrb[103].mxu1  ;;  %v3914_v8 = vmax.f32 %v3902_v13, %v3906_v28  ;;  %v8524_v23 = vadd.f32 %v4263_v31, %v9191_v14  ;;  %vm4280_vm3 = vcmp.gt.f32.partialorder %v8508_v32, 0.0 }
 0xa69   :  { %v3916_v2 = vmax.f32 %v3904_v56, %v3908_v41  ;;  %v7068_v11 = vpop.eup %7067  ;;  %v3920_v45 = vrot.slane %v3913_v30, %v7589_v52  ;;  %v4292_v0 = vmul.f32 0.01, %v8508_v32  ;;  %v8530_v44 = vsel %vm4278_vm2, %v4211_v33, %v4290_v34 }
 0xa6a   :  { %v3928_v63 = vrot.slane %v3915_v19, %v7589_v52  ;;  %v7070_v61 = vpop.eup %7069  ;;  %v4001_v54 = vmul.f32 0.70710677, %v7068_v11  ;;  %v3924_v21 = vrot.slane %v3914_v8, %v7589_v52  ;;  %vm4279_vm4 = vcmp.gt.f32.partialorder %v8521_v7, 0.0 }
 0xa6b   :  { %v7072_v27 = vpop.eup %7071  ;;  %v4003_v36 = vmul.f32 0.70710677, %v7070_v61  ;;  %v3933_v16 = vsub.f32 %v3794_v60, %v3920_v45  ;;  %v3932_v58 = vrot.slane %v3916_v2, %v7589_v52  ;;  %vm4281_vm7 = vcmp.gt.f32.partialorder %v8524_v23, 0.0 }
 0xa6c   :  { %v7074_v37 = vpop.eup %7073  ;;  %v4034_v62 = vmul.f32 0.0019607844, %v4001_v54  ;;  %v4002_v28 = vmul.f32 0.70710677, %v7072_v27  ;;  %v4030_v15 = vmul.f32 %v4026_v26, %v4001_v54  ;;  %v3935_v31 = vsub.f32 %v3877_v1, %v3928_v63  ;;  %v8532_v13 = vpop.f32.mrb[104].mxu0 }
 0xa6d   :  { %v8534_v56 = vpop.f32.mrb[104].mxu1  ;;  %v4036_v41 = vmul.f32 0.0019607844, %v4003_v36  ;;  %v4004_v30 = vmul.f32 0.70710677, %v7074_v37  ;;  %v4032_v19 = vmul.f32 %v4028_v10, %v4003_v36  ;;  %v3934_v8 = vsub.f32 %v3796_v4, %v3924_v21  ;;  %v4222_v2 = vpop.f32.mrb[105].mxu0 }
 0xa6e   :  { %v4035_v11 = vmul.f32 0.0019607844, %v4002_v28  ;;  %v4038_v61 = vsub.f32 %v4034_v62, %v4030_v15  ;;  %v4046_v60 = vsub.f32 0.0, %v4034_v62  ;;  %v4031_v45 = vmul.f32 %v4027_v57, %v4002_v28  ;;  %v4273_v33 = vpop.f32.mrb[105].mxu1  ;;  %v4224_v26 = vpop.f32.mrb[106].mxu0 }
 0xa6f   :  { %v4037_v34 = vmul.f32 0.0019607844, %v4004_v30  ;;  %v4040_v14 = vsub.f32 %v4036_v41, %v4032_v19  ;;  %v4048_v55 = vsub.f32 0.0, %v4036_v41  ;;  %v4033_v27 = vmul.f32 %v4029_v42, %v4004_v30  ;;  %v4275_v1 = vpop.f32.mrb[106].mxu1  ;;  %v4225_v40 = vpop.f32.mrb[107].mxu0 }
 0xa70   :  { %7075 = verf.f32 %v4038_v61  ;;  %v4050_v63 = vsub.f32 %v4046_v60, %v4030_v15  ;;  %v4039_v54 = vsub.f32 %v4035_v11, %v4031_v45  ;;  %v4047_v6 = vsub.f32 0.0, %v4035_v11  ;;  %v4276_v37 = vpop.f32.mrb[107].mxu1 }
 0xa71   :  { %7077 = verf.f32 %v4040_v14  ;;  %v4052_v4 = vsub.f32 %v4048_v55, %v4032_v19  ;;  %v4041_v10 = vsub.f32 %v4037_v34, %v4033_v27  ;;  %v4049_v21 = vsub.f32 0.0, %v4037_v34 }
 0xa72   :  { %7079 = verf.f32 %v4050_v63  ;;  %v4051_v57 = vsub.f32 %v4047_v6, %v4031_v45  ;;  %v8540_v42 = vsel %vm4280_vm3, %v8508_v32, %v4292_v0  ;;  %v4291_v36 = vmul.f32 0.01, %v8521_v7 }
 0xa73   :  { %7081 = verf.f32 %v4052_v4  ;;  %v4053_v62 = vsub.f32 %v4049_v21, %v4033_v27  ;;  %v3937_v28 = vmul.f32 1.442695, %v3933_v16  ;;  %v3936_v40 = vsub.f32 %v8501_v46, %v3932_v58 }
 0xa74   :  { %7083 = verf.f32 %v4039_v54  ;;  %v3941_v55 = vmul.f32 1.442695, %v3935_v31  ;;  %v4215_v14 = vadd.f32 %v8510_v59, %v7450_v22  ;;  %v4266_v6 = vadd.f32 %v8512_v24, %v7450_v22 }
 0xa75   :  { %7085 = verf.f32 %v4051_v57  ;;  %v3939_v15 = vmul.f32 1.442695, %v3934_v8  ;;  %v4217_v32 = vadd.f32 %v8514_v49, %v7450_v22  ;;  %v4268_v0 = vadd.f32 %v8516_v12, %v7450_v22 }
 0xa76   :  { %7087 = verf.f32 %v4041_v10  ;;  %vm4282_vm5 = vcmp.gt.f32.partialorder %v4215_v14, 0.0  ;;  %v4294_v16 = vmul.f32 0.01, %v4215_v14  ;;  %vm4284_vm6 = vcmp.gt.f32.partialorder %v4266_v6, 0.0 }
 0xa77   :  { %7089 = verf.f32 %v4053_v62  ;;  %v3943_v46 = vmul.f32 1.442695, %v3936_v40  ;;  %v4296_v59 = vmul.f32 0.01, %v4266_v6  ;;  %v4293_v24 = vmul.f32 0.01, %v8524_v23 }
 0xa78   :  { %7091 = vpow2.f32 %v3937_v28  ;;  %v4306_v58 = vsel %vm4282_vm5, %v4215_v14, %v4294_v16  ;;  %vm4283_vm8 = vcmp.gt.f32.partialorder %v4217_v32, 0.0  ;;  %v4295_v41 = vmul.f32 0.01, %v4217_v32 }
 0xa79   :  { %7093 = vpow2.f32 %v3941_v55  ;;  %v6818_v49 = vpack.c.bf16 %v4306_v58, %v8530_v44  ;;  %v4308_v31 = vsel %vm4284_vm6, %v4266_v6, %v4296_v59  ;;  %v4297_v19 = vmul.f32 0.01, %v4268_v0 }
 0xa7a   :  { %v8555_v12 = vpop.eup %7075  ;;  %7095 = vpow2.f32 %v3939_v15  ;;  %v6822_v30 = vpack.c.bf16 %v4308_v31, %v8540_v42  ;;  %v4223_v8 = vadd.f32 %v4222_v2, %v7460_v48  ;;  %vm4285_vm10 = vcmp.gt.f32.partialorder %v4268_v0, 0.0 }
 0xa7b   :  { %v8559_v11 = vpop.eup %7077  ;;  %7097 = vpow2.f32 %v3943_v46  ;;  %v4274_v61 = vadd.f32 %v4273_v33, %v7460_v48  ;;  %v4221_v44 = vadd.f32 %v8532_v13, %v7460_v48  ;;  %v4272_v45 = vadd.f32 %v8534_v56, %v7460_v48 }
 0xa7c   :  { %v8562_v60 = vpop.eup %7079  ;;  %v4299_v34 = vmul.f32 0.01, %v4223_v8  ;;  %v4303_v27 = vsel %vm4279_vm4, %v8521_v7, %v4291_v36  ;;  %v4307_v33 = vsel %vm4283_vm8, %v4217_v32, %v4295_v41  ;;  %v4305_v13 = vsel %vm4281_vm7, %v8524_v23, %v4293_v24 }
 0xa7d   :  { %v8571_v2 = vpop.eup %7081  ;;  %v4058_v26 = vsub.f32 %v8555_v12, %v8562_v60  ;;  %v4301_v1 = vmul.f32 0.01, %v4274_v61  ;;  %v6816_v54 = vpack.c.bf16 %v4307_v33, %v4303_v27  ;;  %v4309_v37 = vsel %vm4285_vm10, %v4268_v0, %v4297_v19 }
 0xa7e   :  { %v8579_v63 = vpop.eup %7083  ;;  %v4060_v56 = vsub.f32 %v8559_v11, %v8571_v2  ;;  %vm4287_vm11 = vcmp.gt.f32.partialorder %v4223_v8, 0.0  ;;  %v6820_v4 = vpack.c.bf16 %v4309_v37, %v4305_v13  ;;  %vm4289_vm12 = vcmp.gt.f32.partialorder %v4274_v61, 0.0 }
 0xa7f   :  { %v8583_v7 = vpop.eup %7085  ;;  %v4311_v10 = vsel %vm4287_vm11, %v4223_v8, %v4299_v34  ;;  %v4298_v42 = vmul.f32 0.01, %v4221_v44  ;;  %6817 = vmatprep.subr.bf16.mxu0 %v6816_v54  ;;  %v4313_v23 = vsel %vm4289_vm12, %v4274_v61, %v4301_v1  ;;  %vm4286_vm14 = vcmp.gt.f32.partialorder %v4221_v44, 0.0 }
 0xa80   :  { %v8585_v21 = vpop.eup %7087  ;;  %v4059_v57 = vsub.f32 %v8579_v63, %v8583_v7  ;;  %v4300_v62 = vmul.f32 0.01, %v4272_v45  ;;  %6821 = vmatprep.subr.bf16.mxu1 %v6820_v4  ;;  %6819 = vmatpush1.bf16.msra.mxu0 %v6818_v49  ;;  %vm4288_vm15 = vcmp.gt.f32.partialorder %v4272_v45, 0.0 }
 0xa81   :  { %v8589_v36 = vpop.eup %7089  ;;  %6823 = vmatpush1.bf16.msra.mxu1 %v6822_v30  ;;  %4318 = vmatprep.subr.mxu0 %v4311_v10  ;;  %v4310_v32 = vsel %vm4286_vm14, %v4221_v44, %v4298_v42 }
 0xa82   :  { %v7092_v28 = vpop.eup %7091  ;;  %v4061_v40 = vsub.f32 %v8585_v21, %v8589_v36  ;;  %4401 = vmatprep.subr.mxu1 %v4313_v23  ;;  %v4312_v24 = vsel %vm4288_vm15, %v4272_v45, %v4300_v62 }
 0xa83   :  { %v7094_v55 = vpop.eup %7093  ;;  %v3949_v14 = vrot.slane %v7092_v28, 1  ;;  %v3961_v46 = vrot.slane %v7092_v28, 2 }
 0xa84   :  { %v7096_v6 = vpop.eup %7095  ;;  %v3951_v15 = vrot.slane %v7094_v55, 1  ;;  %4319 = vmatpush1.msra.mxu0 %v4310_v32  ;;  %v3963_v49 = vrot.slane %v7094_v55, 2 }
 0xa85   :  { %v7098_v0 = vpop.eup %7097  ;;  %v3957_v16 = vadd.f32 %v7092_v28, %v3949_v14  ;;  %v3950_v59 = vrot.slane %v7096_v6, 1  ;;  %4402 = vmatpush1.msra.mxu1 %v4312_v24  ;;  %6682 = vmatmul.mubr.msk.f32.vlgmr.msra.gmra.mrb[108].mxu0 %vm271_vm13, %v8369_v38  ;;  %v3962_v19 = vrot.slane %v7096_v6, 2 }
 0xa86   :  { %v3959_v58 = vadd.f32 %v7094_v55, %v3951_v15  ;;  %v3952_v31 = vrot.slane %v7098_v0, 1  ;;  %6685 = vmatmul.mubr.msk.f32.vlgmr.msra.gmra.mrb[108].mxu1 %vm271_vm13, %v8369_v38  ;;  %4384 = vmatprep.mubr.f32.mxu0 %v9182_v20  ;;  %v3964_v44 = vrot.slane %v7098_v0, 2 }
 0xa87   :  { %v3969_v41 = vadd.f32 %v3961_v46, %v3957_v16  ;;  %v3958_v30 = vadd.f32 %v7096_v6, %v3950_v59  ;;  %4467 = vmatprep.mubr.f32.mxu1 %v9182_v20 }
 0xa88   :  { %v3971_v8 = vadd.f32 %v3963_v49, %v3959_v58  ;;  %v3960_v61 = vadd.f32 %v7098_v0, %v3952_v31 }
 0xa89   :  { %7099 = vrcp.f32 %v3969_v41  ;;  %v3970_v45 = vadd.f32 %v3962_v19, %v3958_v30  ;;  %6683 = vmatmul.mubr.msk.f32.gmra.mrb[110].mxu0 %vm271_vm13, %v8380_v50 }
 0xa8a   :  { %7101 = vrcp.f32 %v3971_v8  ;;  %v3972_v34 = vadd.f32 %v3964_v44, %v3960_v61  ;;  %6686 = vmatmul.mubr.msk.f32.gmra.mrb[110].mxu1 %vm271_vm13, %v8380_v50  ;;  %4390 = vmatprep.mubr.f32.mxu0 %v9182_v20 }
 0xa8b   :  { %7103 = vrcp.f32 %v3970_v45  ;;  %4473 = vmatprep.mubr.f32.mxu1 %v9182_v20 }
 0xa8c   :  { %7105 = vrcp.f32 %v3972_v34 }
 0xa8d   :  { %6684 = vmatmul.mubr.msk.f32.gmra.mrb[112].mxu0 %vm271_vm13, %v8391_v5 }
 0xa8e   :  { %6687 = vmatmul.mubr.msk.f32.gmra.mrb[112].mxu1 %vm271_vm13, %v8391_v5  ;;  %4580 = vmatprep.mubr.f32.mxu0 %v9182_v20 }
 0xa8f   :  { %4663 = vmatprep.mubr.f32.mxu1 %v9182_v20 }
 0xa93   :  { %v7100_v38 = vpop.eup %7099 }
 0xa94   :  { %v7102_v27 = vpop.eup %7101  ;;  %v3980_v1 = vrot.slane %v7100_v38, %v7589_v52 }
 0xa95   :  { %v7104_v50 = vpop.eup %7103  ;;  %v3988_v33 = vrot.slane %v7102_v27, %v7589_v52 }
 0xa96   :  { %v7106_v13 = vpop.eup %7105  ;;  %v3984_v54 = vrot.slane %v7104_v50, %v7589_v52  ;;  %v3993_v37 = vmul.f32 %v7092_v28, %v3980_v1 }
 0xa97   :  { %v3992_v4 = vrot.slane %v7106_v13, %v7589_v52  ;;  %v3995_v10 = vmul.f32 %v7094_v55, %v3988_v33 }
 0xa98   :  { %v3994_v21 = vmul.f32 %v7096_v6, %v3984_v54  ;;  %v4062_v5 = vmul.f32 %v4058_v26, %v3993_v37 }
 0xa99   :  { %v3996_v42 = vmul.f32 %v7098_v0, %v3992_v4  ;;  %v4064_v23 = vmul.f32 %v4060_v56, %v3995_v10 }
 0xa9a   :  { %v4063_v36 = vmul.f32 %v4059_v57, %v3994_v21  ;;  %v4070_v62 = vrot.slane %v4062_v5, 1  ;;  %v4082_v55 = vrot.slane %v4062_v5, 2 }
 0xa9b   :  { %v4065_v14 = vmul.f32 %v4061_v40, %v3996_v42  ;;  %v4072_v28 = vrot.slane %v4064_v23, 1  ;;  %v4084_v46 = vrot.slane %v4064_v23, 2 }
 0xa9c   :  { %v4071_v15 = vrot.slane %v4063_v36, 1  ;;  %v4078_v32 = vadd.f32 %v4070_v62, %v4062_v5  ;;  %v4083_v60 = vrot.slane %v4063_v36, 2 }
 0xa9d   :  { %v4073_v6 = vrot.slane %v4065_v14, 1  ;;  %v4080_v16 = vadd.f32 %v4072_v28, %v4064_v23  ;;  %v4085_v59 = vrot.slane %v4065_v14, 2 }
 0xa9e   :  { %v4079_v12 = vadd.f32 %v4071_v15, %v4063_v36  ;;  %v4090_v26 = vadd.f32 %v4082_v55, %v4078_v32 }
 0xa9f   :  { %v4081_v0 = vadd.f32 %v4073_v6, %v4065_v14  ;;  %v4092_v11 = vadd.f32 %v4084_v46, %v4080_v16 }
 0xaa0   :  { %v4091_v2 = vadd.f32 %v4083_v60, %v4079_v12  ;;  %v4094_v56 = vmul.f32 0.5, %v4090_v26 }
 0xaa1   :  { %v4093_v24 = vadd.f32 %v4085_v59, %v4081_v0  ;;  %v4096_v63 = vmul.f32 0.5, %v4092_v11 }
 0xaa2   :  { %v4095_v7 = vmul.f32 0.5, %v4091_v2  ;;  %v4098_v57 = vmax.f32 %v4094_v56, 1e-09 }
 0xaa3   :  { %v4097_v40 = vmul.f32 0.5, %v4093_v24  ;;  %v4100_v58 = vmax.f32 %v4096_v63, 1e-09 }
 0xaa4   :  { %v4099_v49 = vmax.f32 %v4095_v7, 1e-09  ;;  %7107 = vlog2.f32 %v4098_v57 }
 0xaa5   :  { %v4101_v31 = vmax.f32 %v4097_v40, 1e-09  ;;  %7109 = vlog2.f32 %v4100_v58 }
 0xaa6   :  { %7111 = vlog2.f32 %v4099_v49 }
 0xaa7   :  { %7113 = vlog2.f32 %v4101_v31 }
 0xaae   :  { %v7108_v41 = vpop.eup %7107 }
 0xaaf   :  { %v7110_v30 = vpop.eup %7109  ;;  %v4103_v19 = vmul.f32 0.6931472, %v7108_v41 }
 0xab0   :  { %v7112_v8 = vpop.eup %7111  ;;  %v4107_v61 = vmul.f32 0.6931472, %v7110_v30 }
 0xab1   :  { %v7114_v44 = vpop.eup %7113  ;;  %v4105_v45 = vmul.f32 0.6931472, %v7112_v8  ;;  %v4110_v34 = vmul.f32 1.442695, %v4103_v19 }
 0xab2   :  { %v4109_v38 = vmul.f32 0.6931472, %v7114_v44  ;;  %v4112_v27 = vmul.f32 1.442695, %v4107_v61 }
 0xab3   :  { %v4111_v1 = vmul.f32 1.442695, %v4105_v45  ;;  %v4114_v50 = vsub.f32 0.0, %v4110_v34 }
 0xab4   :  { %v4113_v33 = vmul.f32 1.442695, %v4109_v38  ;;  %v4116_v13 = vsub.f32 0.0, %v4112_v27 }
 0xab5   :  { %v4115_v54 = vsub.f32 0.0, %v4111_v1 }
 0xab6   :  { %v4117_v37 = vsub.f32 0.0, %v4113_v33 }
 0xab7   :  { %v4122_v4 = vcombine.low %v4114_v50, %v4115_v54 }
 0xab8   :  { %v4123_v10 = vcombine.low %v4116_v13, %v4117_v37 }
 0xab9   :  { %v4130_v21 = vrot.slane %v4122_v4, %v7755_v43 }
 0xaba   :  { %v4137_v5 = vrot.slane %v4123_v10, %v7755_v43 }
 0xabc   :  { %v4138_v42 = vcombine.low %v4130_v21, %v4137_v5 }
 0xabe   :  { %v4145_v23 = vrot.slane %v4138_v42, %v7755_v43 }
 0xac0   :  { %4148 = vst.msk [vmem:[#allocation5 + $0x10] sm:$0xf] %vm7760_vm9, %v4145_v23 }
 0xb58   :  { %v4380_v36 = vpop.f32.mrb[108].mxu0 }
 0xb59   :  { %v4381_v62 = vadd.f32 %v4380_v36, %v7504_v25  ;;  %v4463_v14 = vpop.f32.mrb[108].mxu1  ;;  %v4382_v28 = vpop.f32.mrb[109].mxu0 }
 0xb5a   :  { %v4464_v15 = vadd.f32 %v4463_v14, %v7504_v25  ;;  %v4383_v32 = vadd.f32 %v4382_v28, %v7504_v25  ;;  %v4465_v55 = vpop.f32.mrb[109].mxu1  ;;  %v4951_v14 = vld [vmem:[#allocation2 + $0x60] sm:$0xff] }
 0xb5b   :  { %v4492_v6 = vmul.f32 0.01, %v4381_v62  ;;  %v4466_v16 = vadd.f32 %v4465_v55, %v7504_v25  ;;  %vm4480_vm1 = vcmp.gt.f32.partialorder %v4381_v62, 0.0  ;;  %v4953_v28 = vld [vmem:[#allocation2 + $0xe0] sm:$0xff] }
 0xb5c   :  { %vm4482_vm2 = vcmp.gt.f32.partialorder %v4464_v15, 0.0  ;;  %v4494_v46 = vmul.f32 0.01, %v4464_v15  ;;  %v4386_v12 = vpop.f32.mrb[110].mxu0  ;;  %vm4481_vm3 = vcmp.gt.f32.partialorder %v4383_v32, 0.0 }
 0xb5d   :  { %v4469_v60 = vpop.f32.mrb[110].mxu1  ;;  %v4493_v26 = vmul.f32 0.01, %v4383_v32  ;;  %v4387_v0 = vadd.f32 %v4386_v12, %v7510_v35  ;;  %v4388_v11 = vpop.f32.mrb[111].mxu0  ;;  %v4504_v56 = vsel %vm4480_vm1, %v4381_v62, %v4492_v6  ;;  %v4495_v24 = vmul.f32 0.01, %v4466_v16 }
 0xb5e   :  { %v4470_v59 = vadd.f32 %v4469_v60, %v7510_v35  ;;  %v4471_v2 = vpop.f32.mrb[111].mxu1  ;;  %v4389_v63 = vadd.f32 %v4388_v11, %v7510_v35  ;;  %v4506_v31 = vsel %vm4482_vm2, %v4464_v15, %v4494_v46  ;;  %vm4483_vm8 = vcmp.gt.f32.partialorder %v4466_v16, 0.0  ;;  %v4952_v15 = vld [vmem:[#allocation2 + $0x68] sm:$0xff] }
 0xb5f   :  { %v4472_v7 = vadd.f32 %v4471_v2, %v7510_v35  ;;  %vm4484_vm4 = vcmp.gt.f32.partialorder %v4387_v0, 0.0  ;;  %v4496_v57 = vmul.f32 0.01, %v4387_v0  ;;  %v4505_v54 = vsel %vm4481_vm3, %v4383_v32, %v4493_v26  ;;  %v4954_v32 = vld [vmem:[#allocation2 + $0xe8] sm:$0xff] }
 0xb60   :  { %vm4486_vm5 = vcmp.gt.f32.partialorder %v4470_v59, 0.0  ;;  %v4498_v40 = vmul.f32 0.01, %v4470_v59  ;;  %vm4485_vm6 = vcmp.gt.f32.partialorder %v4389_v63, 0.0  ;;  %v4497_v58 = vmul.f32 0.01, %v4389_v63 }
 0xb61   :  { %vm4487_vm7 = vcmp.gt.f32.partialorder %v4472_v7, 0.0  ;;  %v4499_v49 = vmul.f32 0.01, %v4472_v7  ;;  %v4508_v41 = vsel %vm4484_vm4, %v4387_v0, %v4496_v57  ;;  %v4392_v19 = vpop.f32.mrb[112].mxu0  ;;  %v4475_v8 = vpop.f32.mrb[112].mxu1  ;;  %v4507_v37 = vsel %vm4483_vm8, %v4466_v16, %v4495_v24 }
 0xb62   :  { %v4510_v30 = vsel %vm4486_vm5, %v4470_v59, %v4498_v40  ;;  %v6826_v61 = vpack.c.bf16 %v4508_v41, %v4504_v56  ;;  %v4393_v45 = vadd.f32 %v4392_v19, %v7516_v51  ;;  %v4476_v34 = vadd.f32 %v4475_v8, %v7516_v51  ;;  %v4394_v38 = vpop.f32.mrb[113].mxu0  ;;  %v4477_v27 = vpop.f32.mrb[113].mxu1  ;;  %v6673_v57 = vld [vmem:[%s9150_s1 + $0x14] sm:$0xf] }
 0xb63   :  { %v6830_v44 = vpack.c.bf16 %v4510_v30, %v4506_v31  ;;  %v4395_v1 = vadd.f32 %v4394_v38, %v7516_v51  ;;  %v4478_v50 = vadd.f32 %v4477_v27, %v7516_v51  ;;  %v4509_v33 = vsel %vm4485_vm6, %v4389_v63, %v4497_v58 }
 0xb64   :  { %v4511_v13 = vsel %vm4487_vm7, %v4472_v7, %v4499_v49  ;;  %v6824_v21 = vpack.c.bf16 %v4509_v33, %v4505_v54  ;;  %v4500_v42 = vmul.f32 0.01, %v4393_v45  ;;  %v4502_v23 = vmul.f32 0.01, %v4476_v34  ;;  %v9193_v33 = vld [vmem:[#allocation11_spill] sm:$0xff] }
 0xb65   :  { %v4501_v4 = vmul.f32 0.01, %v4395_v1  ;;  %v4503_v10 = vmul.f32 0.01, %v4478_v50  ;;  %v6828_v5 = vpack.c.bf16 %v4511_v13, %v4507_v37  ;;  %vm4489_vm10 = vcmp.gt.f32.partialorder %v4395_v1, 0.0 }
 0xb66   :  { %vm4491_vm11 = vcmp.gt.f32.partialorder %v4478_v50, 0.0  ;;  %6825 = vmatprep.subr.bf16.mxu0 %v6824_v21  ;;  %vm4488_vm12 = vcmp.gt.f32.partialorder %v4393_v45, 0.0  ;;  %vm4490_vm14 = vcmp.gt.f32.partialorder %v4476_v34, 0.0  ;;  %v6696_v16 = vcombine.high %v4951_v14, %v4953_v28 }
 0xb67   :  { %6829 = vmatprep.subr.bf16.mxu1 %v6828_v5  ;;  %v4513_v36 = vsel %vm4489_vm10, %v4395_v1, %v4501_v4  ;;  %v4515_v62 = vsel %vm4491_vm11, %v4478_v50, %v4503_v10  ;;  %6827 = vmatpush1.bf16.msra.mxu0 %v6826_v61  ;;  %v4512_v55 = vsel %vm4488_vm12, %v4393_v45, %v4500_v42  ;;  %v9192_v1 = vld [vmem:[#allocation10_spill] sm:$0xff]  ;;  %v9194_v10 = vld [vmem:[#allocation9_spill] sm:$0xff] }
 0xb68   :  { %6831 = vmatpush1.bf16.msra.mxu1 %v6830_v44  ;;  %4520 = vmatprep.subr.mxu0 %v4513_v36  ;;  %v4514_v6 = vsel %vm4490_vm14, %v4476_v34, %v4502_v23  ;;  %v6698_v46 = vcombine.high %v4952_v15, %v4954_v32  ;;  %v6695_v12 = vcombine.low %v4951_v14, %v4953_v28 }
 0xb69   :  { %4603 = vmatprep.subr.mxu1 %v4515_v62  ;;  %v6697_v60 = vcombine.low %v4952_v15, %v4954_v32  ;;  %v4810_v45 = vrot.slane %v6673_v57, %v7589_v52  ;;  %v4818_v27 = vrot.slane %v6673_v57, %v7592_v53  ;;  %v4814_v50 = vrot.slane %v6673_v57, %v9192_v1 }
 0xb6a   :  { %v4822_v13 = vrot.slane %v6673_v57, %v9193_v33 }
 0xb6b   :  { %4521 = vmatpush1.msra.mxu0 %v4512_v55 }
 0xb6c   :  { %4604 = vmatpush1.msra.mxu1 %v4514_v6  ;;  %6688 = vmatmul.mubr.msk.f32.vlgmr.msra.gmra.mrb[114].mxu0 %vm271_vm13, %v8440_v18 }
 0xb6d   :  { %6691 = vmatmul.mubr.msk.f32.vlgmr.msra.gmra.mrb[114].mxu1 %vm271_vm13, %v8440_v18  ;;  %4586 = vmatprep.mubr.f32.mxu0 %v9182_v20  ;;  %v8667_v18 = vld [vmem:[%s9151_s2] sm:$0xff]  }
 0xb6e   :  { %4669 = vmatprep.mubr.f32.mxu1 %v9182_v20  ;;  %4977 = vmatprep.subr.bf16.mxu0 %v6696_v16 }
 0xb6f   :  { %5028 = vmatprep.subr.bf16.mxu1 %v6698_v46  ;;  %4978 = vmatpush1.bf16.msra.mxu0 %v6695_v12 }
 0xb70   :  { %5029 = vmatpush1.bf16.msra.mxu1 %v6697_v60  ;;  %6689 = vmatmul.mubr.msk.f32.gmra.mrb[116].mxu0 %vm271_vm13, %v8451_v17 }
 0xb71   :  { %6692 = vmatmul.mubr.msk.f32.gmra.mrb[116].mxu1 %vm271_vm13, %v8451_v17  ;;  %4592 = vmatprep.mubr.f32.mxu0 %v9182_v20  ;;  %v8678_v17 = vld [vmem:[%s9151_s2 + $0x8] ss:$0 sps:$4 sm:$0xff]  }
 0xb72   :  { %4675 = vmatprep.mubr.f32.mxu1 %v9182_v20 }
 0xb74   :  { %6690 = vmatmul.mubr.msk.f32.gmra.mrb[118].mxu0 %vm271_vm13, %v8462_v47 }
 0xb75   :  { %6693 = vmatmul.mubr.msk.f32.gmra.mrb[118].mxu1 %vm271_vm13, %v8462_v47  ;;  %5009 = vmatprep.mubr.bf16.mxu0 %v9186_v29 }
 0xb76   :  { %5060 = vmatprep.mubr.bf16.mxu1 %v9186_v29 }
 0xb78   :  { %6699 = vmatmul.mubr.msk.bf16.vlgmr.msra.gmra.mrb[120].mxu0 %vm111_vm0, %v8667_v18 }
 0xb79   :  { %6701 = vmatmul.mubr.msk.bf16.vlgmr.msra.gmra.mrb[120].mxu1 %vm111_vm0, %v8667_v18  ;;  %5019 = vmatprep.mubr.bf16.mxu0 %v9186_v29 }
 0xb7a   :  { %5070 = vmatprep.mubr.bf16.mxu1 %v9186_v29 }
 0xb80   :  { %6700 = vmatmul.mubr.msk.bf16.gmra.mrb[124].mxu0 %vm111_vm0, %v8678_v17 }
 0xb81   :  { %6702 = vmatmul.mubr.msk.bf16.gmra.mrb[124].mxu1 %vm111_vm0, %v8678_v17  ;;  %5179 = vmatprep.mubr.f32.mxu0 %v9182_v20 }
 0xb82   :  { %5262 = vmatprep.mubr.f32.mxu1 %v9182_v20 }
 0xc3f   :  { %v4582_v47 = vpop.f32.mrb[114].mxu0 }
 0xc40   :  { %v4665_v26 = vpop.f32.mrb[114].mxu1  ;;  %v4583_v0 = vadd.f32 %v4582_v47, %v7577_v9  ;;  %v4584_v11 = vpop.f32.mrb[115].mxu0 }
 0xc41   :  { %v4666_v59 = vadd.f32 %v4665_v26, %v7577_v9  ;;  %v4667_v2 = vpop.f32.mrb[115].mxu1  ;;  %v4585_v56 = vadd.f32 %v4584_v11, %v7577_v9  ;;  %v9195_v11 = vld [vmem:[#allocation8_spill] sm:$0xff] }
 0xc42   :  { %v4668_v24 = vadd.f32 %v4667_v2, %v7577_v9  ;;  %v4682_v63 = vand.u32 2147483647, %v4583_v0 }
 0xc43   :  { %v4684_v7 = vand.u32 2147483647, %v4666_v59  ;;  %v4683_v40 = vand.u32 2147483647, %v4585_v56  ;;  %v4588_v49 = vpop.f32.mrb[116].mxu0 }
 0xc44   :  { %v4685_v58 = vand.u32 2147483647, %v4668_v24  ;;  %v4671_v31 = vpop.f32.mrb[116].mxu1  ;;  %v4686_v41 = vmax.f32 %v4682_v63, 0.01  ;;  %v4590_v19 = vpop.f32.mrb[117].mxu0  ;;  %v4589_v34 = vadd.f32 %v4588_v49, %v7600_v3 }
 0xc45   :  { %v4688_v30 = vmax.f32 %v4684_v7, 0.01  ;;  %v4673_v8 = vpop.f32.mrb[117].mxu1  ;;  %v4687_v61 = vmax.f32 %v4683_v40, 0.01  ;;  %v4672_v38 = vadd.f32 %v4671_v31, %v7600_v3  ;;  %v4591_v4 = vadd.f32 %v4590_v19, %v7600_v3 }
 0xc46   :  { %v4689_v44 = vmax.f32 %v4685_v58, 0.01  ;;  %7115 = vrcp.f32 %v4686_v41  ;;  %v4674_v36 = vadd.f32 %v4673_v8, %v7600_v3  ;;  %v4827_v28 = vsub.f32 %v4810_v45, %v4589_v34 }
 0xc47   :  { %7117 = vrcp.f32 %v4688_v30  ;;  %v4594_v54 = vpop.f32.mrb[118].mxu0  ;;  %v4829_v15 = vsub.f32 %v4818_v27, %v4672_v38  ;;  %v4828_v31 = vsub.f32 %v4814_v50, %v4591_v4 }
 0xc48   :  { %v4677_v37 = vpop.f32.mrb[118].mxu1  ;;  %7119 = vrcp.f32 %v4687_v61  ;;  %v4595_v21 = vadd.f32 %v4594_v54, %v9194_v10  ;;  %v4596_v42 = vpop.f32.mrb[119].mxu0 }
 0xc49   :  { %v4678_v5 = vadd.f32 %v4677_v37, %v9194_v10  ;;  %v4679_v23 = vpop.f32.mrb[119].mxu1  ;;  %7121 = vrcp.f32 %v4689_v44  ;;  %v4597_v62 = vadd.f32 %v4596_v42, %v9194_v10  ;;  %v4830_v44 = vsub.f32 %v4822_v13, %v4674_v36 }
 0xc4a   :  { %v8705_v14 = vadd.f32 %v4679_v23, %v9194_v10  ;;  %v4694_v32 = vrot.slane %v4595_v21, 1  ;;  %v4706_v6 = vrot.slane %v4595_v21, 2 }
 0xc4b   :  { %v4696_v55 = vrot.slane %v4678_v5, 1  ;;  %v4708_v16 = vrot.slane %v4678_v5, 2  ;;  %v4695_v46 = vrot.slane %v4597_v62, 1  ;;  %v5011_v60 = vpop.f32.mrb[120].mxu0  ;;  %v4707_v59 = vrot.slane %v4597_v62, 2 }
 0xc4c   :  { %v4697_v12 = vrot.slane %v8705_v14, 1  ;;  %v5062_v47 = vpop.f32.mrb[120].mxu1  ;;  %v4702_v26 = vmax.f32 %v4595_v21, %v4694_v32  ;;  %v5012_v2 = vadd.f32 %v5011_v60, %v9195_v11  ;;  %v5013_v56 = vpop.f32.mrb[121].mxu0  ;;  %v4709_v57 = vrot.slane %v8705_v14, 2 }
 0xc4d   :  { %v4704_v0 = vmax.f32 %v4678_v5, %v4696_v55  ;;  %v5064_v24 = vpop.f32.mrb[121].mxu1  ;;  %v4703_v63 = vmax.f32 %v4597_v62, %v4695_v46  ;;  %v8712_v40 = vadd.f32 %v5062_v47, %v9195_v11  ;;  %v8714_v58 = vpop.f32.mrb[122].mxu0  ;;  %v8725_v37 = vadd.f32 %v5013_v56, %v9195_v11 }
 0xc4e   :  { %v4705_v7 = vmax.f32 %v8705_v14, %v4697_v12  ;;  %v8716_v49 = vpop.f32.mrb[122].mxu1  ;;  %v4714_v41 = vmax.f32 %v4702_v26, %v4706_v6  ;;  %v5091_v19 = vmul.f32 0.01, %v5012_v2  ;;  %v8718_v8 = vpop.f32.mrb[123].mxu0  ;;  %vm5079_vm15 = vcmp.gt.f32.partialorder %v5012_v2, 0.0 }
 0xc4f   :  { %v4716_v30 = vmax.f32 %v4704_v0, %v4708_v16  ;;  %v8720_v61 = vpop.f32.mrb[123].mxu1  ;;  %v4715_v45 = vmax.f32 %v4703_v63, %v4707_v59  ;;  %v8728_v50 = vadd.f32 %v5064_v24, %v9195_v11  ;;  %vm5081_vm1 = vcmp.gt.f32.partialorder %v8712_v40, 0.0 }
 0xc50   :  { %v4717_v34 = vmax.f32 %v4705_v7, %v4709_v57  ;;  %v7116_v38 = vpop.eup %7115  ;;  %v4721_v27 = vrot.slane %v4714_v41, %v7589_v52  ;;  %v5093_v13 = vmul.f32 0.01, %v8712_v40  ;;  %v8734_v16 = vsel %vm5079_vm15, %v5012_v2, %v5091_v19 }
 0xc51   :  { %v4729_v54 = vrot.slane %v4716_v30, %v7589_v52  ;;  %v7118_v4 = vpop.eup %7117  ;;  %v4802_v42 = vmul.f32 0.70710677, %v7116_v38  ;;  %v4725_v23 = vrot.slane %v4715_v45, %v7589_v52  ;;  %vm5080_vm2 = vcmp.gt.f32.partialorder %v8725_v37, 0.0 }
 0xc52   :  { %v7120_v36 = vpop.eup %7119  ;;  %v4804_v32 = vmul.f32 0.70710677, %v7118_v4  ;;  %v4734_v55 = vsub.f32 %v4595_v21, %v4721_v27  ;;  %v4733_v6 = vrot.slane %v4717_v34, %v7589_v52  ;;  %vm5082_vm5 = vcmp.gt.f32.partialorder %v8728_v50, 0.0 }
 0xc53   :  { %v7122_v46 = vpop.eup %7121  ;;  %v4835_v12 = vmul.f32 0.0019607844, %v4802_v42  ;;  %v4803_v60 = vmul.f32 0.70710677, %v7120_v36  ;;  %v4831_v47 = vmul.f32 %v4827_v28, %v4802_v42  ;;  %v4736_v26 = vsub.f32 %v4678_v5, %v4729_v54  ;;  %v8736_v0 = vpop.f32.mrb[124].mxu0 }
 0xc54   :  { %v8738_v59 = vpop.f32.mrb[124].mxu1  ;;  %v4837_v56 = vmul.f32 0.0019607844, %v4804_v32  ;;  %v4805_v24 = vmul.f32 0.70710677, %v7122_v46  ;;  %v4833_v63 = vmul.f32 %v4829_v15, %v4804_v32  ;;  %v4735_v7 = vsub.f32 %v4597_v62, %v4725_v23  ;;  %v5023_v45 = vpop.f32.mrb[125].mxu0 }
 0xc55   :  { %v4836_v57 = vmul.f32 0.0019607844, %v4803_v60  ;;  %v4839_v41 = vsub.f32 %v4835_v12, %v4831_v47  ;;  %v4847_v21 = vsub.f32 0.0, %v4835_v12  ;;  %v4832_v30 = vmul.f32 %v4828_v31, %v4803_v60  ;;  %v5074_v2 = vpop.f32.mrb[125].mxu1  ;;  %v5025_v28 = vpop.f32.mrb[126].mxu0 }
 0xc56   :  { %v4838_v19 = vmul.f32 0.0019607844, %v4805_v24  ;;  %v4841_v34 = vsub.f32 %v4837_v56, %v4833_v63  ;;  %v4849_v38 = vsub.f32 0.0, %v4837_v56  ;;  %v4834_v27 = vmul.f32 %v4830_v44, %v4805_v24  ;;  %v5076_v5 = vpop.f32.mrb[126].mxu1  ;;  %v5026_v36 = vpop.f32.mrb[127].mxu0 }
 0xc57   :  { %7123 = verf.f32 %v4839_v41  ;;  %v4851_v54 = vsub.f32 %v4847_v21, %v4831_v47  ;;  %v4840_v4 = vsub.f32 %v4836_v57, %v4832_v30  ;;  %v4848_v42 = vsub.f32 0.0, %v4836_v57  ;;  %v5077_v46 = vpop.f32.mrb[127].mxu1 }
 0xc58   :  { %7125 = verf.f32 %v4841_v34  ;;  %v4853_v62 = vsub.f32 %v4849_v38, %v4833_v63  ;;  %v4842_v15 = vsub.f32 %v4838_v19, %v4834_v27  ;;  %v4850_v23 = vsub.f32 0.0, %v4838_v19 }
 0xc59   :  { %7127 = verf.f32 %v4851_v54  ;;  %v4852_v31 = vsub.f32 %v4848_v42, %v4832_v30  ;;  %v8744_v44 = vsel %vm5081_vm1, %v8712_v40, %v5093_v13  ;;  %v5092_v32 = vmul.f32 0.01, %v8725_v37 }
 0xc5a   :  { %7129 = verf.f32 %v4853_v62  ;;  %v4854_v12 = vsub.f32 %v4850_v23, %v4834_v27  ;;  %v4738_v60 = vmul.f32 1.442695, %v4734_v55  ;;  %v4737_v47 = vsub.f32 %v8705_v14, %v4733_v6 }
 0xc5b   :  { %7131 = verf.f32 %v4840_v4  ;;  %v4742_v56 = vmul.f32 1.442695, %v4736_v26  ;;  %v5016_v24 = vadd.f32 %v8714_v58, %v7450_v22  ;;  %v5067_v63 = vadd.f32 %v8716_v49, %v7450_v22 }
 0xc5c   :  { %7133 = verf.f32 %v4852_v31  ;;  %v4740_v57 = vmul.f32 1.442695, %v4735_v7  ;;  %v5018_v40 = vadd.f32 %v8718_v8, %v7450_v22  ;;  %v5069_v13 = vadd.f32 %v8720_v61, %v7450_v22 }
 0xc5d   :  { %7135 = verf.f32 %v4842_v15  ;;  %vm5083_vm3 = vcmp.gt.f32.partialorder %v5016_v24, 0.0  ;;  %v5095_v55 = vmul.f32 0.01, %v5016_v24  ;;  %vm5085_vm4 = vcmp.gt.f32.partialorder %v5067_v63, 0.0 }
 0xc5e   :  { %7137 = verf.f32 %v4854_v12  ;;  %v4744_v14 = vmul.f32 1.442695, %v4737_v47  ;;  %v5097_v58 = vmul.f32 0.01, %v5067_v63  ;;  %v5094_v49 = vmul.f32 0.01, %v8728_v50 }
 0xc5f   :  { %7139 = vpow2.f32 %v4738_v60  ;;  %v5107_v6 = vsel %vm5083_vm3, %v5016_v24, %v5095_v55  ;;  %vm5084_vm6 = vcmp.gt.f32.partialorder %v5018_v40, 0.0  ;;  %v5096_v7 = vmul.f32 0.01, %v5018_v40 }
 0xc60   :  { %7141 = vpow2.f32 %v4742_v56  ;;  %v6834_v8 = vpack.c.bf16 %v5107_v6, %v8734_v16  ;;  %v5109_v26 = vsel %vm5085_vm4, %v5067_v63, %v5097_v58  ;;  %v5098_v21 = vmul.f32 0.01, %v5069_v13 }
 0xc61   :  { %v8759_v61 = vpop.eup %7123  ;;  %7143 = vpow2.f32 %v4740_v57  ;;  %v6838_v41 = vpack.c.bf16 %v5109_v26, %v8744_v44  ;;  %v5024_v30 = vadd.f32 %v5023_v45, %v7460_v48  ;;  %vm5086_vm7 = vcmp.gt.f32.partialorder %v5069_v13, 0.0 }
 0xc62   :  { %v8763_v19 = vpop.eup %7125  ;;  %7145 = vpow2.f32 %v4744_v14  ;;  %v5075_v34 = vadd.f32 %v5074_v2, %v7460_v48  ;;  %v5022_v16 = vadd.f32 %v8736_v0, %v7460_v48  ;;  %v5073_v27 = vadd.f32 %v8738_v59, %v7460_v48 }
 0xc63   :  { %v8766_v38 = vpop.eup %7127  ;;  %v5100_v28 = vmul.f32 0.01, %v5024_v30  ;;  %v5104_v5 = vsel %vm5080_vm2, %v8725_v37, %v5092_v32  ;;  %v5108_v2 = vsel %vm5084_vm6, %v5018_v40, %v5096_v7  ;;  %v5106_v0 = vsel %vm5082_vm5, %v8728_v50, %v5094_v49  ;;  %v8800_v7 = vld [vmem:[%s9153_s4] sm:$0xff] }
 0xc64   :  { %v8775_v45 = vpop.eup %7129  ;;  %v4859_v54 = vsub.f32 %v8759_v61, %v8766_v38  ;;  %v5102_v4 = vmul.f32 0.01, %v5075_v34  ;;  %v6832_v36 = vpack.c.bf16 %v5108_v2, %v5104_v5  ;;  %v5110_v46 = vsel %vm5086_vm7, %v5069_v13, %v5098_v21  ;;  %v8822_v2 = vld [vmem:[%s9153_s4 + $0x10] sm:$0xff] }
 0xc65   :  { %v8783_v42 = vpop.eup %7131  ;;  %v4861_v59 = vsub.f32 %v8763_v19, %v8775_v45  ;;  %vm5088_vm8 = vcmp.gt.f32.partialorder %v5024_v30, 0.0  ;;  %v6836_v62 = vpack.c.bf16 %v5110_v46, %v5106_v0  ;;  %vm5090_vm10 = vcmp.gt.f32.partialorder %v5075_v34, 0.0 }
 0xc66   :  { %v8787_v37 = vpop.eup %7133  ;;  %v5112_v15 = vsel %vm5088_vm8, %v5024_v30, %v5100_v28  ;;  %v5099_v44 = vmul.f32 0.01, %v5022_v16  ;;  %6833 = vmatprep.subr.bf16.mxu0 %v6832_v36  ;;  %v5114_v50 = vsel %vm5090_vm10, %v5075_v34, %v5102_v4  ;;  %vm5087_vm11 = vcmp.gt.f32.partialorder %v5022_v16, 0.0  ;;  %v8811_v4 = vld [vmem:[%s9153_s4 + $0x8] sm:$0xff] }
 0xc67   :  { %v8789_v23 = vpop.eup %7135  ;;  %v4860_v31 = vsub.f32 %v8783_v42, %v8787_v37  ;;  %v5101_v12 = vmul.f32 0.01, %v5073_v27  ;;  %6837 = vmatprep.subr.bf16.mxu1 %v6836_v62  ;;  %6835 = vmatpush1.bf16.msra.mxu0 %v6834_v8  ;;  %vm5089_vm12 = vcmp.gt.f32.partialorder %v5073_v27, 0.0 }
 0xc68   :  { %v8793_v32 = vpop.eup %7137  ;;  %6839 = vmatpush1.bf16.msra.mxu1 %v6838_v41  ;;  %5119 = vmatprep.subr.mxu0 %v5112_v15  ;;  %v5111_v40 = vsel %vm5087_vm11, %v5022_v16, %v5099_v44 }
 0xc69   :  { %v7140_v60 = vpop.eup %7139  ;;  %v4862_v47 = vsub.f32 %v8789_v23, %v8793_v32  ;;  %5202 = vmatprep.subr.mxu1 %v5114_v50  ;;  %v5113_v49 = vsel %vm5089_vm12, %v5073_v27, %v5101_v12 }
 0xc6a   :  { %v7142_v56 = vpop.eup %7141  ;;  %v4750_v24 = vrot.slane %v7140_v60, 1  ;;  %v4762_v14 = vrot.slane %v7140_v60, 2 }
 0xc6b   :  { %v7144_v63 = vpop.eup %7143  ;;  %v4752_v57 = vrot.slane %v7142_v56, 1  ;;  %5120 = vmatpush1.msra.mxu0 %v5111_v40  ;;  %v4764_v8 = vrot.slane %v7142_v56, 2 }
 0xc6c   :  { %v7146_v13 = vpop.eup %7145  ;;  %v4758_v55 = vadd.f32 %v7140_v60, %v4750_v24  ;;  %v4751_v58 = vrot.slane %v7144_v63, 1  ;;  %5203 = vmatpush1.msra.mxu1 %v5113_v49  ;;  %6703 = vmatmul.mubr.msk.f32.vlgmr.msra.gmra.mrb[128].mxu0 %vm271_vm13, %v8800_v7  ;;  %v4763_v30 = vrot.slane %v7144_v63, 2 }
 0xc6d   :  { %v4760_v6 = vadd.f32 %v7142_v56, %v4752_v57  ;;  %v4753_v26 = vrot.slane %v7146_v13, 1  ;;  %6706 = vmatmul.mubr.msk.f32.vlgmr.msra.gmra.mrb[128].mxu1 %vm271_vm13, %v8800_v7  ;;  %5185 = vmatprep.mubr.f32.mxu0 %v9182_v20  ;;  %v4765_v27 = vrot.slane %v7146_v13, 2 }
 0xc6e   :  { %v4770_v41 = vadd.f32 %v4762_v14, %v4758_v55  ;;  %v4759_v21 = vadd.f32 %v7144_v63, %v4751_v58  ;;  %5268 = vmatprep.mubr.f32.mxu1 %v9182_v20 }
 0xc6f   :  { %v4772_v34 = vadd.f32 %v4764_v8, %v4760_v6  ;;  %v4761_v16 = vadd.f32 %v7146_v13, %v4753_v26 }
 0xc70   :  { %7147 = vrcp.f32 %v4770_v41  ;;  %v4771_v28 = vadd.f32 %v4763_v30, %v4759_v21  ;;  %6704 = vmatmul.mubr.msk.f32.gmra.mrb[130].mxu0 %vm271_vm13, %v8811_v4 }
 0xc71   :  { %7149 = vrcp.f32 %v4772_v34  ;;  %v4773_v5 = vadd.f32 %v4765_v27, %v4761_v16  ;;  %6707 = vmatmul.mubr.msk.f32.gmra.mrb[130].mxu1 %vm271_vm13, %v8811_v4  ;;  %5191 = vmatprep.mubr.f32.mxu0 %v9182_v20 }
 0xc72   :  { %7151 = vrcp.f32 %v4771_v28  ;;  %5274 = vmatprep.mubr.f32.mxu1 %v9182_v20 }
 0xc73   :  { %7153 = vrcp.f32 %v4773_v5 }
 0xc74   :  { %6705 = vmatmul.mubr.msk.f32.gmra.mrb[132].mxu0 %vm271_vm13, %v8822_v2 }
 0xc75   :  { %6708 = vmatmul.mubr.msk.f32.gmra.mrb[132].mxu1 %vm271_vm13, %v8822_v2  ;;  %5381 = vmatprep.mubr.f32.mxu0 %v9182_v20 }
 0xc76   :  { %5464 = vmatprep.mubr.f32.mxu1 %v9182_v20 }
 0xc7a   :  { %v7148_v0 = vpop.eup %7147 }
 0xc7b   :  { %v7150_v36 = vpop.eup %7149  ;;  %v4781_v46 = vrot.slane %v7148_v0, %v7589_v52 }
 0xc7c   :  { %v7152_v62 = vpop.eup %7151  ;;  %v4789_v15 = vrot.slane %v7150_v36, %v7589_v52 }
 0xc7d   :  { %v7154_v44 = vpop.eup %7153  ;;  %v4785_v50 = vrot.slane %v7152_v62, %v7589_v52  ;;  %v4794_v12 = vmul.f32 %v7140_v60, %v4781_v46 }
 0xc7e   :  { %v4793_v24 = vrot.slane %v7154_v44, %v7589_v52  ;;  %v4796_v57 = vmul.f32 %v7142_v56, %v4789_v15 }
 0xc7f   :  { %v4795_v40 = vmul.f32 %v7144_v63, %v4785_v50  ;;  %v4863_v55 = vmul.f32 %v4859_v54, %v4794_v12 }
 0xc80   :  { %v4797_v14 = vmul.f32 %v7146_v13, %v4793_v24  ;;  %v4865_v58 = vmul.f32 %v4861_v59, %v4796_v57 }
 0xc81   :  { %v4864_v49 = vmul.f32 %v4860_v31, %v4795_v40  ;;  %v4871_v6 = vrot.slane %v4863_v55, 1  ;;  %v4883_v26 = vrot.slane %v4863_v55, 2 }
 0xc82   :  { %v4866_v60 = vmul.f32 %v4862_v47, %v4797_v14  ;;  %v4873_v56 = vrot.slane %v4865_v58, 1  ;;  %v4885_v54 = vrot.slane %v4865_v58, 2 }
 0xc83   :  { %v4872_v63 = vrot.slane %v4864_v49, 1  ;;  %v4879_v8 = vadd.f32 %v4871_v6, %v4863_v55  ;;  %v4884_v41 = vrot.slane %v4864_v49, 2 }
 0xc84   :  { %v4874_v61 = vrot.slane %v4866_v60, 1  ;;  %v4881_v38 = vadd.f32 %v4873_v56, %v4865_v58  ;;  %v4886_v59 = vrot.slane %v4866_v60, 2 }
 0xc85   :  { %v4880_v13 = vadd.f32 %v4872_v63, %v4864_v49  ;;  %v4891_v19 = vadd.f32 %v4883_v26, %v4879_v8 }
 0xc86   :  { %v4882_v45 = vadd.f32 %v4874_v61, %v4866_v60  ;;  %v4893_v21 = vadd.f32 %v4885_v54, %v4881_v38 }
 0xc87   :  { %v4892_v42 = vadd.f32 %v4884_v41, %v4880_v13  ;;  %v4895_v37 = vmul.f32 0.5, %v4891_v19 }
 0xc88   :  { %v4894_v31 = vadd.f32 %v4886_v59, %v4882_v45  ;;  %v4897_v30 = vmul.f32 0.5, %v4893_v21 }
 0xc89   :  { %v4896_v34 = vmul.f32 0.5, %v4892_v42  ;;  %v4899_v23 = vmax.f32 %v4895_v37, 1e-09 }
 0xc8a   :  { %v4898_v32 = vmul.f32 0.5, %v4894_v31  ;;  %v4901_v47 = vmax.f32 %v4897_v30, 1e-09 }
 0xc8b   :  { %v4900_v16 = vmax.f32 %v4896_v34, 1e-09  ;;  %7155 = vlog2.f32 %v4899_v23 }
 0xc8c   :  { %v4902_v27 = vmax.f32 %v4898_v32, 1e-09  ;;  %7157 = vlog2.f32 %v4901_v47 }
 0xc8d   :  { %7159 = vlog2.f32 %v4900_v16 }
 0xc8e   :  { %7161 = vlog2.f32 %v4902_v27 }
 0xc95   :  { %v7156_v28 = vpop.eup %7155 }
 0xc96   :  { %v7158_v5 = vpop.eup %7157  ;;  %v4904_v0 = vmul.f32 0.6931472, %v7156_v28 }
 0xc97   :  { %v7160_v36 = vpop.eup %7159  ;;  %v4908_v46 = vmul.f32 0.6931472, %v7158_v5 }
 0xc98   :  { %v7162_v62 = vpop.eup %7161  ;;  %v4906_v15 = vmul.f32 0.6931472, %v7160_v36  ;;  %v4911_v44 = vmul.f32 1.442695, %v4904_v0 }
 0xc99   :  { %v4910_v50 = vmul.f32 0.6931472, %v7162_v62  ;;  %v4913_v12 = vmul.f32 1.442695, %v4908_v46 }
 0xc9a   :  { %v4912_v24 = vmul.f32 1.442695, %v4906_v15  ;;  %v4915_v57 = vsub.f32 0.0, %v4911_v44 }
 0xc9b   :  { %v4914_v40 = vmul.f32 1.442695, %v4910_v50  ;;  %v4917_v55 = vsub.f32 0.0, %v4913_v12 }
 0xc9c   :  { %v4916_v14 = vsub.f32 0.0, %v4912_v24 }
 0xc9d   :  { %v4918_v58 = vsub.f32 0.0, %v4914_v40 }
 0xc9e   :  { %v4923_v49 = vcombine.low %v4915_v57, %v4916_v14 }
 0xc9f   :  { %v4924_v6 = vcombine.low %v4917_v55, %v4918_v58 }
 0xca0   :  { %v4931_v60 = vrot.slane %v4923_v49, %v7755_v43 }
 0xca1   :  { %v4938_v56 = vrot.slane %v4924_v6, %v7755_v43 }
 0xca3   :  { %v4939_v63 = vcombine.low %v4931_v60, %v4938_v56 }
 0xca5   :  { %v4946_v8 = vrot.slane %v4939_v63, %v7755_v43 }
 0xca7   :  { %4949 = vst.msk [vmem:[#allocation5 + $0x14] sm:$0xf] %vm7760_vm9, %v4946_v8 }
 0xd3f   :  { %v5181_v26 = vpop.f32.mrb[128].mxu0 }
 0xd40   :  { %v5182_v61 = vadd.f32 %v5181_v26, %v7504_v25  ;;  %v5264_v38 = vpop.f32.mrb[128].mxu1  ;;  %v5183_v54 = vpop.f32.mrb[129].mxu0 }
 0xd41   :  { %v5265_v13 = vadd.f32 %v5264_v38, %v7504_v25  ;;  %v5184_v41 = vadd.f32 %v5183_v54, %v7504_v25  ;;  %v5266_v19 = vpop.f32.mrb[129].mxu1 }
 0xd42   :  { %v5293_v45 = vmul.f32 0.01, %v5182_v61  ;;  %v5267_v59 = vadd.f32 %v5266_v19, %v7504_v25  ;;  %vm5281_vm14 = vcmp.gt.f32.partialorder %v5182_v61, 0.0 }
 0xd43   :  { %vm5283_vm15 = vcmp.gt.f32.partialorder %v5265_v13, 0.0  ;;  %v5295_v21 = vmul.f32 0.01, %v5265_v13  ;;  %v5187_v42 = vpop.f32.mrb[130].mxu0  ;;  %vm5282_vm1 = vcmp.gt.f32.partialorder %v5184_v41, 0.0 }
 0xd44   :  { %v5270_v37 = vpop.f32.mrb[130].mxu1  ;;  %v5294_v31 = vmul.f32 0.01, %v5184_v41  ;;  %v5188_v30 = vadd.f32 %v5187_v42, %v7510_v35  ;;  %v5189_v23 = vpop.f32.mrb[131].mxu0  ;;  %v5305_v47 = vsel %vm5281_vm14, %v5182_v61, %v5293_v45  ;;  %v5296_v16 = vmul.f32 0.01, %v5267_v59 }
 0xd45   :  { %v5271_v34 = vadd.f32 %v5270_v37, %v7510_v35  ;;  %v5272_v32 = vpop.f32.mrb[131].mxu1  ;;  %v5190_v27 = vadd.f32 %v5189_v23, %v7510_v35  ;;  %v5307_v62 = vsel %vm5283_vm15, %v5265_v13, %v5295_v21  ;;  %vm5284_vm6 = vcmp.gt.f32.partialorder %v5267_v59, 0.0  ;;  %v5752_v42 = vld [vmem:[#allocation2 + $0x70] sm:$0xff]  ;;  %v5753_v37 = vld [vmem:[#allocation2 + $0x78] sm:$0xff] }
 0xd46   :  { %v5273_v28 = vadd.f32 %v5272_v32, %v7510_v35  ;;  %vm5285_vm2 = vcmp.gt.f32.partialorder %v5188_v30, 0.0  ;;  %v5297_v5 = vmul.f32 0.01, %v5188_v30  ;;  %v5306_v63 = vsel %vm5282_vm1, %v5184_v41, %v5294_v31  ;;  %v5754_v41 = vld [vmem:[#allocation2 + $0xf0] sm:$0xff] }
 0xd47   :  { %vm5287_vm3 = vcmp.gt.f32.partialorder %v5271_v34, 0.0  ;;  %v5299_v0 = vmul.f32 0.01, %v5271_v34  ;;  %vm5286_vm4 = vcmp.gt.f32.partialorder %v5190_v27, 0.0  ;;  %v5298_v36 = vmul.f32 0.01, %v5190_v27 }
 0xd48   :  { %vm5288_vm5 = vcmp.gt.f32.partialorder %v5273_v28, 0.0  ;;  %v5300_v46 = vmul.f32 0.01, %v5273_v28  ;;  %v5309_v15 = vsel %vm5285_vm2, %v5188_v30, %v5297_v5  ;;  %v5193_v50 = vpop.f32.mrb[132].mxu0  ;;  %v5276_v12 = vpop.f32.mrb[132].mxu1  ;;  %v5308_v8 = vsel %vm5284_vm6, %v5267_v59, %v5296_v16  ;;  %v5755_v59 = vld [vmem:[#allocation2 + $0xf8] sm:$0xff] }
 0xd49   :  { %v5311_v44 = vsel %vm5287_vm3, %v5271_v34, %v5299_v0  ;;  %v6842_v24 = vpack.c.bf16 %v5309_v15, %v5305_v47  ;;  %v5194_v40 = vadd.f32 %v5193_v50, %v7516_v51  ;;  %v5277_v55 = vadd.f32 %v5276_v12, %v7516_v51  ;;  %v5195_v14 = vpop.f32.mrb[133].mxu0  ;;  %v5278_v58 = vpop.f32.mrb[133].mxu1  ;;  %v8871_v16 = vld [vmem:[%s9155_s6] sm:$0xff] }
 0xd4a   :  { %v6846_v57 = vpack.c.bf16 %v5311_v44, %v5307_v62  ;;  %v5196_v49 = vadd.f32 %v5195_v14, %v7516_v51  ;;  %v5279_v6 = vadd.f32 %v5278_v58, %v7516_v51  ;;  %v5310_v60 = vsel %vm5286_vm4, %v5190_v27, %v5298_v36  ;;  %v8882_v27 = vld [vmem:[%s9155_s6 + $0x8] sm:$0xff] }
 0xd4b   :  { %v5312_v56 = vsel %vm5288_vm5, %v5273_v28, %v5300_v46  ;;  %v6840_v38 = vpack.c.bf16 %v5310_v60, %v5306_v63  ;;  %v5301_v13 = vmul.f32 0.01, %v5194_v40  ;;  %v5303_v19 = vmul.f32 0.01, %v5277_v55  ;;  %v8893_v28 = vld [vmem:[%s9155_s6 + $0x10] sm:$0xff] }
 0xd4c   :  { %v5302_v26 = vmul.f32 0.01, %v5196_v49  ;;  %v5304_v61 = vmul.f32 0.01, %v5279_v6  ;;  %v6844_v54 = vpack.c.bf16 %v5312_v56, %v5308_v8  ;;  %vm5290_vm7 = vcmp.gt.f32.partialorder %v5196_v49, 0.0 }
 0xd4d   :  { %vm5292_vm8 = vcmp.gt.f32.partialorder %v5279_v6, 0.0  ;;  %6841 = vmatprep.subr.bf16.mxu0 %v6840_v38  ;;  %vm5289_vm10 = vcmp.gt.f32.partialorder %v5194_v40, 0.0  ;;  %vm5291_vm11 = vcmp.gt.f32.partialorder %v5277_v55, 0.0  ;;  %v6717_v34 = vcombine.high %v5752_v42, %v5754_v41 }
 0xd4e   :  { %6845 = vmatprep.subr.bf16.mxu1 %v6844_v54  ;;  %v5314_v45 = vsel %vm5290_vm7, %v5196_v49, %v5302_v26  ;;  %v5316_v21 = vsel %vm5292_vm8, %v5279_v6, %v5304_v61  ;;  %6843 = vmatpush1.bf16.msra.mxu0 %v6842_v24  ;;  %v5313_v31 = vsel %vm5289_vm10, %v5194_v40, %v5301_v13 }
 0xd4f   :  { %6847 = vmatpush1.bf16.msra.mxu1 %v6846_v57  ;;  %5321 = vmatprep.subr.mxu0 %v5314_v45  ;;  %v5315_v30 = vsel %vm5291_vm11, %v5277_v55, %v5303_v19  ;;  %v6719_v23 = vcombine.high %v5753_v37, %v5755_v59  ;;  %v6716_v32 = vcombine.low %v5752_v42, %v5754_v41 }
 0xd50   :  { %5404 = vmatprep.subr.mxu1 %v5316_v21  ;;  %v6718_v47 = vcombine.low %v5753_v37, %v5755_v59 }
 0xd52   :  { %5322 = vmatpush1.msra.mxu0 %v5313_v31 }
 0xd53   :  { %5405 = vmatpush1.msra.mxu1 %v5315_v30  ;;  %6709 = vmatmul.mubr.msk.f32.vlgmr.msra.gmra.mrb[134].mxu0 %vm271_vm13, %v8871_v16 }
 0xd54   :  { %6712 = vmatmul.mubr.msk.f32.vlgmr.msra.gmra.mrb[134].mxu1 %vm271_vm13, %v8871_v16  ;;  %5387 = vmatprep.mubr.f32.mxu0 %v9182_v20 }
 0xd55   :  { %5470 = vmatprep.mubr.f32.mxu1 %v9182_v20  ;;  %5778 = vmatprep.subr.bf16.mxu0 %v6717_v34 }
 0xd56   :  { %5829 = vmatprep.subr.bf16.mxu1 %v6719_v23  ;;  %5779 = vmatpush1.bf16.msra.mxu0 %v6716_v32 }
 0xd57   :  { %5830 = vmatpush1.bf16.msra.mxu1 %v6718_v47  ;;  %6710 = vmatmul.mubr.msk.f32.gmra.mrb[136].mxu0 %vm271_vm13, %v8882_v27 }
 0xd58   :  { %6713 = vmatmul.mubr.msk.f32.gmra.mrb[136].mxu1 %vm271_vm13, %v8882_v27  ;;  %5393 = vmatprep.mubr.f32.mxu0 %v9182_v20 }
 0xd59   :  { %5476 = vmatprep.mubr.f32.mxu1 %v9182_v20 }
 0xd5b   :  { %6711 = vmatmul.mubr.msk.f32.gmra.mrb[138].mxu0 %vm271_vm13, %v8893_v28 }
 0xd5c   :  { %6714 = vmatmul.mubr.msk.f32.gmra.mrb[138].mxu1 %vm271_vm13, %v8893_v28  ;;  %5810 = vmatprep.mubr.bf16.mxu0 %v9186_v29 }
 0xd5d   :  { %5861 = vmatprep.mubr.bf16.mxu1 %v9186_v29 }
 0xd5f   :  { %6720 = vmatmul.mubr.msk.bf16.vlgmr.msra.gmra.mrb[140].mxu0 %vm111_vm0, %v8667_v18 }
 0xd60   :  { %6722 = vmatmul.mubr.msk.bf16.vlgmr.msra.gmra.mrb[140].mxu1 %vm111_vm0, %v8667_v18  ;;  %5820 = vmatprep.mubr.bf16.mxu0 %v9186_v29 }
 0xd61   :  { %5871 = vmatprep.mubr.bf16.mxu1 %v9186_v29 }
 0xd67   :  { %6721 = vmatmul.mubr.msk.bf16.gmra.mrb[144].mxu0 %vm111_vm0, %v8678_v17 }
 0xd68   :  { %6723 = vmatmul.mubr.msk.bf16.gmra.mrb[144].mxu1 %vm111_vm0, %v8678_v17  ;;  %5980 = vmatprep.mubr.f32.mxu0 %v9182_v20  ;;  %v6694_v17 = vld [vmem:[%s9150_s1 + $0x18] sm:$0xf] }
 0xd69   :  { %6063 = vmatprep.mubr.f32.mxu1 %v9182_v20  ;;  %v5611_v56 = vrot.slane %v6694_v17, %v7589_v52  ;;  %v5619_v26 = vrot.slane %v6694_v17, %v7592_v53  ;;  %v5615_v61 = vrot.slane %v6694_v17, %v9192_v1  ;;  %v5623_v38 = vrot.slane %v6694_v17, %v9193_v33 }
 0xe26   :  { %v5383_v5 = vpop.f32.mrb[134].mxu0 }
 0xe27   :  { %v5466_v0 = vpop.f32.mrb[134].mxu1  ;;  %v5384_v36 = vadd.f32 %v5383_v5, %v7577_v9  ;;  %v5385_v46 = vpop.f32.mrb[135].mxu0 }
 0xe28   :  { %v5467_v18 = vadd.f32 %v5466_v0, %v7577_v9  ;;  %v5468_v62 = vpop.f32.mrb[135].mxu1  ;;  %v5386_v29 = vadd.f32 %v5385_v46, %v7577_v9 }
 0xe29   :  { %v5469_v15 = vadd.f32 %v5468_v62, %v7577_v9  ;;  %v5483_v44 = vand.u32 2147483647, %v5384_v36 }
 0xe2a   :  { %v5485_v50 = vand.u32 2147483647, %v5467_v18  ;;  %v5484_v12 = vand.u32 2147483647, %v5386_v29  ;;  %v5389_v57 = vpop.f32.mrb[136].mxu0 }
 0xe2b   :  { %v5486_v24 = vand.u32 2147483647, %v5469_v15  ;;  %v5472_v40 = vpop.f32.mrb[136].mxu1  ;;  %v5487_v55 = vmax.f32 %v5483_v44, 0.01  ;;  %v5391_v58 = vpop.f32.mrb[137].mxu0  ;;  %v5390_v63 = vadd.f32 %v5389_v57, %v7600_v3 }
 0xe2c   :  { %v5489_v14 = vmax.f32 %v5485_v50, 0.01  ;;  %v5474_v49 = vpop.f32.mrb[137].mxu1  ;;  %v5488_v6 = vmax.f32 %v5484_v12, 0.01  ;;  %v5473_v8 = vadd.f32 %v5472_v40, %v7600_v3  ;;  %v5392_v19 = vadd.f32 %v5391_v58, %v7600_v3 }
 0xe2d   :  { %v5490_v60 = vmax.f32 %v5486_v24, 0.01  ;;  %7163 = vrcp.f32 %v5487_v55  ;;  %v5475_v37 = vadd.f32 %v5474_v49, %v7600_v3  ;;  %v5628_v30 = vsub.f32 %v5611_v56, %v5390_v63 }
 0xe2e   :  { %7165 = vrcp.f32 %v5489_v14  ;;  %v5395_v54 = vpop.f32.mrb[138].mxu0  ;;  %v5630_v34 = vsub.f32 %v5619_v26, %v5473_v8  ;;  %v5629_v58 = vsub.f32 %v5615_v61, %v5392_v19 }
 0xe2f   :  { %v5478_v13 = vpop.f32.mrb[138].mxu1  ;;  %7167 = vrcp.f32 %v5488_v6  ;;  %v5396_v45 = vadd.f32 %v5395_v54, %v9194_v10  ;;  %v5397_v42 = vpop.f32.mrb[139].mxu0  ;;  %v5631_v8 = vsub.f32 %v5623_v38, %v5475_v37 }
 0xe30   :  { %v5479_v21 = vadd.f32 %v5478_v13, %v9194_v10  ;;  %v5480_v41 = vpop.f32.mrb[139].mxu1  ;;  %7169 = vrcp.f32 %v5490_v60  ;;  %v5398_v59 = vadd.f32 %v5397_v42, %v9194_v10 }
 0xe31   :  { %v8932_v31 = vadd.f32 %v5480_v41, %v9194_v10  ;;  %v5495_v23 = vrot.slane %v5396_v45, 1  ;;  %v5507_v47 = vrot.slane %v5396_v45, 2 }
 0xe32   :  { %v5497_v32 = vrot.slane %v5479_v21, 1  ;;  %v5509_v5 = vrot.slane %v5479_v21, 2  ;;  %v5496_v0 = vrot.slane %v5398_v59, 1  ;;  %v5812_v18 = vpop.f32.mrb[140].mxu0  ;;  %v5508_v15 = vrot.slane %v5398_v59, 2 }
 0xe33   :  { %v5498_v36 = vrot.slane %v8932_v31, 1  ;;  %v5863_v46 = vpop.f32.mrb[140].mxu1  ;;  %v5503_v62 = vmax.f32 %v5396_v45, %v5495_v23  ;;  %v5813_v44 = vadd.f32 %v5812_v18, %v9195_v11  ;;  %v5814_v50 = vpop.f32.mrb[141].mxu0  ;;  %v5510_v57 = vrot.slane %v8932_v31, 2 }
 0xe34   :  { %v5505_v29 = vmax.f32 %v5479_v21, %v5497_v32  ;;  %v5865_v17 = vpop.f32.mrb[141].mxu1  ;;  %v5504_v12 = vmax.f32 %v5398_v59, %v5496_v0  ;;  %v8939_v40 = vadd.f32 %v5863_v46, %v9195_v11  ;;  %v8941_v55 = vpop.f32.mrb[142].mxu0  ;;  %v8952_v23 = vadd.f32 %v5814_v50, %v9195_v11 }
 0xe35   :  { %v5506_v24 = vmax.f32 %v8932_v31, %v5498_v36  ;;  %v8943_v14 = vpop.f32.mrb[142].mxu1  ;;  %v5515_v49 = vmax.f32 %v5503_v62, %v5507_v47  ;;  %v5892_v60 = vmul.f32 0.01, %v5813_v44  ;;  %v8945_v56 = vpop.f32.mrb[143].mxu0  ;;  %vm5880_vm0 = vcmp.gt.f32.partialorder %v5813_v44, 0.0 }
 0xe36   :  { %v5517_v6 = vmax.f32 %v5505_v29, %v5509_v5  ;;  %v8947_v63 = vpop.f32.mrb[143].mxu1  ;;  %v5516_v26 = vmax.f32 %v5504_v12, %v5508_v15  ;;  %v8955_v61 = vadd.f32 %v5865_v17, %v9195_v11  ;;  %vm5882_vm12 = vcmp.gt.f32.partialorder %v8939_v40, 0.0 }
 0xe37   :  { %v5518_v54 = vmax.f32 %v5506_v24, %v5510_v57  ;;  %v7164_v13 = vpop.eup %7163  ;;  %v5522_v42 = vrot.slane %v5515_v49, %v7589_v52  ;;  %v5894_v38 = vmul.f32 0.01, %v8939_v40  ;;  %v8961_v18 = vsel %vm5880_vm0, %v5813_v44, %v5892_v60 }
 0xe38   :  { %v5530_v41 = vrot.slane %v5517_v6, %v7589_v52  ;;  %v7166_v19 = vpop.eup %7165  ;;  %v5603_v32 = vmul.f32 0.70710677, %v7164_v13  ;;  %v5526_v47 = vrot.slane %v5516_v26, %v7589_v52  ;;  %vm5881_vm14 = vcmp.gt.f32.partialorder %v8952_v23, 0.0 }
 0xe39   :  { %v7168_v37 = vpop.eup %7167  ;;  %v5605_v5 = vmul.f32 0.70710677, %v7166_v19  ;;  %v5535_v0 = vsub.f32 %v5396_v45, %v5522_v42  ;;  %v5534_v36 = vrot.slane %v5518_v54, %v7589_v52  ;;  %vm5883_vm2 = vcmp.gt.f32.partialorder %v8955_v61, 0.0 }
 0xe3a   :  { %v7170_v46 = vpop.eup %7169  ;;  %v5636_v62 = vmul.f32 0.0019607844, %v5603_v32  ;;  %v5604_v29 = vmul.f32 0.70710677, %v7168_v37  ;;  %v5632_v11 = vmul.f32 %v5628_v30, %v5603_v32  ;;  %v5537_v15 = vsub.f32 %v5479_v21, %v5530_v41  ;;  %v8963_v50 = vpop.f32.mrb[144].mxu0 }
 0xe3b   :  { %v8965_v17 = vpop.f32.mrb[144].mxu1  ;;  %v5638_v12 = vmul.f32 0.0019607844, %v5605_v5  ;;  %v5606_v24 = vmul.f32 0.70710677, %v7170_v46  ;;  %v5634_v57 = vmul.f32 %v5630_v34, %v5605_v5  ;;  %v5536_v49 = vsub.f32 %v5398_v59, %v5526_v47  ;;  %v5824_v54 = vpop.f32.mrb[145].mxu0 }
 0xe3c   :  { %v5637_v6 = vmul.f32 0.0019607844, %v5604_v29  ;;  %v5640_v26 = vsub.f32 %v5636_v62, %v5632_v11  ;;  %v5648_v45 = vsub.f32 0.0, %v5636_v62  ;;  %v5633_v13 = vmul.f32 %v5629_v58, %v5604_v29  ;;  %v5875_v44 = vpop.f32.mrb[145].mxu1  ;;  %v5826_v30 = vpop.f32.mrb[146].mxu0 }
 0xe3d   :  { %v5639_v60 = vmul.f32 0.0019607844, %v5606_v24  ;;  %v5642_v42 = vsub.f32 %v5638_v12, %v5634_v57  ;;  %v5650_v19 = vsub.f32 0.0, %v5638_v12  ;;  %v5635_v37 = vmul.f32 %v5631_v8, %v5606_v24  ;;  %v5877_v21 = vpop.f32.mrb[146].mxu1  ;;  %v5827_v1 = vpop.f32.mrb[147].mxu0 }
 0xe3e   :  { %7171 = verf.f32 %v5640_v26  ;;  %v5652_v41 = vsub.f32 %v5648_v45, %v5632_v11  ;;  %v5641_v32 = vsub.f32 %v5637_v6, %v5633_v13  ;;  %v5649_v33 = vsub.f32 0.0, %v5637_v6  ;;  %v5878_v46 = vpop.f32.mrb[147].mxu1 }
 0xe3f   :  { %7173 = verf.f32 %v5642_v42  ;;  %v5654_v59 = vsub.f32 %v5650_v19, %v5634_v57  ;;  %v5643_v34 = vsub.f32 %v5639_v60, %v5635_v37  ;;  %v5651_v47 = vsub.f32 0.0, %v5639_v60 }
 0xe40   :  { %7175 = verf.f32 %v5652_v41  ;;  %v5653_v58 = vsub.f32 %v5649_v33, %v5633_v13  ;;  %v8971_v8 = vsel %vm5882_vm12, %v8939_v40, %v5894_v38  ;;  %v5893_v5 = vmul.f32 0.01, %v8952_v23 }
 0xe41   :  { %7177 = verf.f32 %v5654_v59  ;;  %v5655_v62 = vsub.f32 %v5651_v47, %v5635_v37  ;;  %v5539_v29 = vmul.f32 1.442695, %v5535_v0  ;;  %v5538_v1 = vsub.f32 %v8932_v31, %v5534_v36 }
 0xe42   :  { %7179 = verf.f32 %v5641_v32  ;;  %v5543_v11 = vmul.f32 1.442695, %v5537_v15  ;;  %v5817_v12 = vadd.f32 %v8941_v55, %v7450_v22  ;;  %v5868_v33 = vadd.f32 %v8943_v14, %v7450_v22 }
 0xe43   :  { %7181 = verf.f32 %v5653_v58  ;;  %v5541_v24 = vmul.f32 1.442695, %v5536_v49  ;;  %v5819_v40 = vadd.f32 %v8945_v56, %v7450_v22  ;;  %v5870_v38 = vadd.f32 %v8947_v63, %v7450_v22 }
 0xe44   :  { %7183 = verf.f32 %v5643_v34  ;;  %vm5884_vm15 = vcmp.gt.f32.partialorder %v5817_v12, 0.0  ;;  %v5896_v0 = vmul.f32 0.01, %v5817_v12  ;;  %vm5886_vm1 = vcmp.gt.f32.partialorder %v5868_v33, 0.0 }
 0xe45   :  { %7185 = verf.f32 %v5655_v62  ;;  %v5545_v31 = vmul.f32 1.442695, %v5538_v1  ;;  %v5898_v55 = vmul.f32 0.01, %v5868_v33  ;;  %v5895_v14 = vmul.f32 0.01, %v8955_v61 }
 0xe46   :  { %7187 = vpow2.f32 %v5539_v29  ;;  %v5908_v36 = vsel %vm5884_vm15, %v5817_v12, %v5896_v0  ;;  %vm5885_vm3 = vcmp.gt.f32.partialorder %v5819_v40, 0.0  ;;  %v5897_v57 = vmul.f32 0.01, %v5819_v40 }
 0xe47   :  { %7189 = vpow2.f32 %v5543_v11  ;;  %v6850_v56 = vpack.c.bf16 %v5908_v36, %v8961_v18  ;;  %v5910_v15 = vsel %vm5886_vm1, %v5868_v33, %v5898_v55  ;;  %v5899_v49 = vmul.f32 0.01, %v5870_v38 }
 0xe48   :  { %v8986_v22 = vpop.eup %7171  ;;  %7191 = vpow2.f32 %v5541_v24  ;;  %v6854_v63 = vpack.c.bf16 %v5910_v15, %v8971_v8  ;;  %v5825_v6 = vadd.f32 %v5824_v54, %v7460_v48  ;;  %vm5887_vm4 = vcmp.gt.f32.partialorder %v5870_v38, 0.0 }
 0xe49   :  { %v8990_v26 = vpop.eup %7173  ;;  %7193 = vpow2.f32 %v5545_v31  ;;  %v5876_v45 = vadd.f32 %v5875_v44, %v7460_v48  ;;  %v5823_v18 = vadd.f32 %v8963_v50, %v7460_v48  ;;  %v5874_v60 = vadd.f32 %v8965_v17, %v7460_v48 }
 0xe4a   :  { %v8993_v13 = vpop.eup %7175  ;;  %v5901_v42 = vmul.f32 0.01, %v5825_v6  ;;  %v5905_v19 = vsel %vm5881_vm14, %v8952_v23, %v5893_v5  ;;  %v5909_v44 = vsel %vm5885_vm3, %v5819_v40, %v5897_v57  ;;  %v5907_v50 = vsel %vm5883_vm2, %v8955_v61, %v5895_v14 }
 0xe4b   :  { %v9002_v54 = vpop.eup %7177  ;;  %v5660_v37 = vsub.f32 %v8986_v22, %v8993_v13  ;;  %v5903_v30 = vmul.f32 0.01, %v5876_v45  ;;  %v6848_v17 = vpack.c.bf16 %v5909_v44, %v5905_v19  ;;  %v5911_v41 = vsel %vm5887_vm4, %v5870_v38, %v5899_v49 }
 0xe4c   :  { %v9010_v21 = vpop.eup %7179  ;;  %v5662_v48 = vsub.f32 %v8990_v26, %v9002_v54  ;;  %vm5889_vm5 = vcmp.gt.f32.partialorder %v5825_v6, 0.0  ;;  %v6852_v32 = vpack.c.bf16 %v5911_v41, %v5907_v50  ;;  %vm5891_vm6 = vcmp.gt.f32.partialorder %v5876_v45, 0.0 }
 0xe4d   :  { %v9014_v23 = vpop.eup %7181  ;;  %v5913_v46 = vsel %vm5889_vm5, %v5825_v6, %v5901_v42  ;;  %v5900_v47 = vmul.f32 0.01, %v5823_v18  ;;  %6849 = vmatprep.subr.bf16.mxu0 %v6848_v17  ;;  %v5915_v61 = vsel %vm5891_vm6, %v5876_v45, %v5903_v30  ;;  %vm5888_vm7 = vcmp.gt.f32.partialorder %v5823_v18, 0.0 }
 0xe4e   :  { %v9016_v59 = vpop.eup %7183  ;;  %v5661_v34 = vsub.f32 %v9010_v21, %v9014_v23  ;;  %v5902_v8 = vmul.f32 0.01, %v5874_v60  ;;  %6853 = vmatprep.subr.bf16.mxu1 %v6852_v32  ;;  %6851 = vmatpush1.bf16.msra.mxu0 %v6850_v56  ;;  %vm5890_vm8 = vcmp.gt.f32.partialorder %v5874_v60, 0.0 }
 0xe4f   :  { %v9020_v58 = vpop.eup %7185  ;;  %6855 = vmatpush1.bf16.msra.mxu1 %v6854_v63  ;;  %5920 = vmatprep.subr.mxu0 %v5913_v46  ;;  %v5912_v33 = vsel %vm5888_vm7, %v5823_v18, %v5900_v47 }
 0xe50   :  { %v7188_v5 = vpop.eup %7187  ;;  %v5663_v62 = vsub.f32 %v9016_v59, %v9020_v58  ;;  %6003 = vmatprep.subr.mxu1 %v5915_v61  ;;  %v5914_v31 = vsel %vm5890_vm8, %v5874_v60, %v5902_v8 }
 0xe51   :  { %v7190_v29 = vpop.eup %7189  ;;  %v5551_v1 = vrot.slane %v7188_v5, 1  ;;  %v5563_v38 = vrot.slane %v7188_v5, 2 }
 0xe52   :  { %v7192_v11 = vpop.eup %7191  ;;  %v5553_v12 = vrot.slane %v7190_v29, 1  ;;  %5921 = vmatpush1.msra.mxu0 %v5912_v33  ;;  %v5565_v14 = vrot.slane %v7190_v29, 2 }
 0xe53   :  { %v7194_v24 = vpop.eup %7193  ;;  %v5559_v40 = vadd.f32 %v7188_v5, %v5551_v1  ;;  %v5552_v0 = vrot.slane %v7192_v11, 1  ;;  %6004 = vmatpush1.msra.mxu1 %v5914_v31  ;;  %6724 = vmatmul.mubr.msk.f32.vlgmr.msra.gmra.mrb[148].mxu0 %vm271_vm13, %v8800_v7  ;;  %v5564_v57 = vrot.slane %v7192_v11, 2 }
 0xe54   :  { %v5561_v55 = vadd.f32 %v7190_v29, %v5553_v12  ;;  %v5554_v36 = vrot.slane %v7194_v24, 1  ;;  %6727 = vmatmul.mubr.msk.f32.vlgmr.msra.gmra.mrb[148].mxu1 %vm271_vm13, %v8800_v7  ;;  %5986 = vmatprep.mubr.f32.mxu0 %v9182_v20  ;;  %v5566_v6 = vrot.slane %v7194_v24, 2 }
 0xe55   :  { %v5571_v56 = vadd.f32 %v5563_v38, %v5559_v40  ;;  %v5560_v15 = vadd.f32 %v7192_v11, %v5552_v0  ;;  %6069 = vmatprep.mubr.f32.mxu1 %v9182_v20 }
 0xe56   :  { %v5573_v63 = vadd.f32 %v5565_v14, %v5561_v55  ;;  %v5562_v49 = vadd.f32 %v7194_v24, %v5554_v36 }
 0xe57   :  { %7195 = vrcp.f32 %v5571_v56  ;;  %v5572_v45 = vadd.f32 %v5564_v57, %v5560_v15  ;;  %6725 = vmatmul.mubr.msk.f32.gmra.mrb[150].mxu0 %vm271_vm13, %v8811_v4 }
 0xe58   :  { %7197 = vrcp.f32 %v5573_v63  ;;  %v5574_v18 = vadd.f32 %v5566_v6, %v5562_v49  ;;  %6728 = vmatmul.mubr.msk.f32.gmra.mrb[150].mxu1 %vm271_vm13, %v8811_v4  ;;  %5992 = vmatprep.mubr.f32.mxu0 %v9182_v20 }
 0xe59   :  { %7199 = vrcp.f32 %v5572_v45  ;;  %6075 = vmatprep.mubr.f32.mxu1 %v9182_v20 }
 0xe5a   :  { %7201 = vrcp.f32 %v5574_v18 }
 0xe5b   :  { %6726 = vmatmul.mubr.msk.f32.gmra.mrb[152].mxu0 %vm271_vm13, %v8822_v2 }
 0xe5c   :  { %6729 = vmatmul.mubr.msk.f32.gmra.mrb[152].mxu1 %vm271_vm13, %v8822_v2  ;;  %6182 = vmatprep.mubr.f32.mxu0 %v9182_v20 }
 0xe5d   :  { %6265 = vmatprep.mubr.f32.mxu1 %v9182_v20 }
 0xe61   :  { %v7196_v7 = vpop.eup %7195 }
 0xe62   :  { %v7198_v60 = vpop.eup %7197  ;;  %v5582_v42 = vrot.slane %v7196_v7, %v7589_v52 }
 0xe63   :  { %v7200_v4 = vpop.eup %7199  ;;  %v5590_v19 = vrot.slane %v7198_v60, %v7589_v52 }
 0xe64   :  { %v7202_v30 = vpop.eup %7201  ;;  %v5586_v44 = vrot.slane %v7200_v4, %v7589_v52  ;;  %v5595_v50 = vmul.f32 %v7188_v5, %v5582_v42 }
 0xe65   :  { %v5594_v17 = vrot.slane %v7202_v30, %v7589_v52  ;;  %v5597_v41 = vmul.f32 %v7190_v29, %v5590_v19 }
 0xe66   :  { %v5596_v32 = vmul.f32 %v7192_v11, %v5586_v44  ;;  %v5664_v2 = vmul.f32 %v5660_v37, %v5595_v50 }
 0xe67   :  { %v5598_v46 = vmul.f32 %v7194_v24, %v5594_v17  ;;  %v5666_v59 = vmul.f32 %v5662_v48, %v5597_v41 }
 0xe68   :  { %v5665_v47 = vmul.f32 %v5661_v34, %v5596_v32  ;;  %v5672_v61 = vrot.slane %v5664_v2, 1  ;;  %v5684_v29 = vrot.slane %v5664_v2, 2 }
 0xe69   :  { %v5667_v58 = vmul.f32 %v5663_v62, %v5598_v46  ;;  %v5674_v8 = vrot.slane %v5666_v59, 1  ;;  %v5686_v33 = vrot.slane %v5666_v59, 2 }
 0xe6a   :  { %v5673_v5 = vrot.slane %v5665_v47, 1  ;;  %v5680_v1 = vadd.f32 %v5672_v61, %v5664_v2  ;;  %v5685_v13 = vrot.slane %v5665_v47, 2 }
 0xe6b   :  { %v5675_v11 = vrot.slane %v5667_v58, 1  ;;  %v5682_v12 = vadd.f32 %v5674_v8, %v5666_v59  ;;  %v5687_v40 = vrot.slane %v5667_v58, 2 }
 0xe6c   :  { %v5681_v22 = vadd.f32 %v5673_v5, %v5665_v47  ;;  %v5692_v37 = vadd.f32 %v5684_v29, %v5680_v1 }
 0xe6d   :  { %v5683_v24 = vadd.f32 %v5675_v11, %v5667_v58  ;;  %v5694_v26 = vadd.f32 %v5686_v33, %v5682_v12 }
 0xe6e   :  { %v5693_v54 = vadd.f32 %v5685_v13, %v5681_v22  ;;  %v5696_v48 = vmul.f32 0.5, %v5692_v37 }
 0xe6f   :  { %v5695_v38 = vadd.f32 %v5687_v40, %v5683_v24  ;;  %v5698_v21 = vmul.f32 0.5, %v5694_v26 }
 0xe70   :  { %v5697_v23 = vmul.f32 0.5, %v5693_v54  ;;  %v5700_v34 = vmax.f32 %v5696_v48, 1e-09 }
 0xe71   :  { %v5699_v62 = vmul.f32 0.5, %v5695_v38  ;;  %v5702_v0 = vmax.f32 %v5698_v21, 1e-09 }
 0xe72   :  { %v5701_v31 = vmax.f32 %v5697_v23, 1e-09  ;;  %7203 = vlog2.f32 %v5700_v34 }
 0xe73   :  { %v5703_v55 = vmax.f32 %v5699_v62, 1e-09  ;;  %7205 = vlog2.f32 %v5702_v0 }
 0xe74   :  { %7207 = vlog2.f32 %v5701_v31 }
 0xe75   :  { %7209 = vlog2.f32 %v5703_v55 }
 0xe7c   :  { %v7204_v14 = vpop.eup %7203 }
 0xe7d   :  { %v7206_v36 = vpop.eup %7205  ;;  %v5705_v56 = vmul.f32 0.6931472, %v7204_v14 }
 0xe7e   :  { %v7208_v15 = vpop.eup %7207  ;;  %v5709_v57 = vmul.f32 0.6931472, %v7206_v36 }
 0xe7f   :  { %v7210_v63 = vpop.eup %7209  ;;  %v5707_v49 = vmul.f32 0.6931472, %v7208_v15  ;;  %v5712_v6 = vmul.f32 1.442695, %v5705_v56 }
 0xe80   :  { %v5711_v45 = vmul.f32 0.6931472, %v7210_v63  ;;  %v5714_v18 = vmul.f32 1.442695, %v5709_v57 }
 0xe81   :  { %v5713_v7 = vmul.f32 1.442695, %v5707_v49  ;;  %v5716_v60 = vsub.f32 0.0, %v5712_v6 }
 0xe82   :  { %v5715_v42 = vmul.f32 1.442695, %v5711_v45  ;;  %v5718_v4 = vsub.f32 0.0, %v5714_v18 }
 0xe83   :  { %v5717_v19 = vsub.f32 0.0, %v5713_v7 }
 0xe84   :  { %v5719_v30 = vsub.f32 0.0, %v5715_v42 }
 0xe85   :  { %v5724_v44 = vcombine.low %v5716_v60, %v5717_v19 }
 0xe86   :  { %v5725_v50 = vcombine.low %v5718_v4, %v5719_v30 }
 0xe87   :  { %v5732_v17 = vrot.slane %v5724_v44, %v7755_v43 }
 0xe88   :  { %v5739_v41 = vrot.slane %v5725_v50, %v7755_v43 }
 0xe8a   :  { %v5740_v32 = vcombine.low %v5732_v17, %v5739_v41 }
 0xe8c   :  { %v5747_v2 = vrot.slane %v5740_v32, %v7755_v43 }
 0xe8e   :  { %5750 = vst.msk [vmem:[#allocation5 + $0x18] sm:$0xf] %vm7760_vm9, %v5747_v2 }
 0xf26   :  { %v5982_v46 = vpop.f32.mrb[148].mxu0 }
 0xf27   :  { %v5983_v59 = vadd.f32 %v5982_v46, %v7504_v25  ;;  %v6065_v47 = vpop.f32.mrb[148].mxu1  ;;  %v5984_v61 = vpop.f32.mrb[149].mxu0 }
 0xf28   :  { %v6066_v58 = vadd.f32 %v6065_v47, %v7504_v25  ;;  %v5985_v8 = vadd.f32 %v5984_v61, %v7504_v25  ;;  %v6067_v5 = vpop.f32.mrb[149].mxu1 }
 0xf29   :  { %v6094_v1 = vmul.f32 0.01, %v5983_v59  ;;  %v6068_v29 = vadd.f32 %v6067_v5, %v7504_v25  ;;  %vm6082_vm10 = vcmp.gt.f32.partialorder %v5983_v59, 0.0 }
 0xf2a   :  { %vm6084_vm11 = vcmp.gt.f32.partialorder %v6066_v58, 0.0  ;;  %v6096_v11 = vmul.f32 0.01, %v6066_v58  ;;  %v5988_v12 = vpop.f32.mrb[150].mxu0  ;;  %vm6083_vm0 = vcmp.gt.f32.partialorder %v5985_v8, 0.0 }
 0xf2b   :  { %v6071_v33 = vpop.f32.mrb[150].mxu1  ;;  %v6095_v22 = vmul.f32 0.01, %v5985_v8  ;;  %v5989_v13 = vadd.f32 %v5988_v12, %v7510_v35  ;;  %v5990_v24 = vpop.f32.mrb[151].mxu0  ;;  %v6106_v26 = vsel %vm6082_vm10, %v5983_v59, %v6094_v1  ;;  %v6097_v54 = vmul.f32 0.01, %v6068_v29 }
 0xf2c   :  { %v6072_v37 = vadd.f32 %v6071_v33, %v7510_v35  ;;  %v6073_v40 = vpop.f32.mrb[151].mxu1  ;;  %v5991_v48 = vadd.f32 %v5990_v24, %v7510_v35  ;;  %v6108_v62 = vsel %vm6084_vm11, %v6066_v58, %v6096_v11  ;;  %vm6085_vm2 = vcmp.gt.f32.partialorder %v6068_v29, 0.0  ;;  %v6715_v24 = vld [vmem:[%s9150_s1 + $0x1c] sm:$0xf]  ;;  %s7337_s1 = smov [#allocation5]  }
 0xf2d   :  { %v6074_v38 = vadd.f32 %v6073_v40, %v7510_v35  ;;  %vm6086_vm12 = vcmp.gt.f32.partialorder %v5989_v13, 0.0  ;;  %v6098_v25 = vmul.f32 0.01, %v5989_v13  ;;  %v6107_v7 = vsel %vm6083_vm0, %v5985_v8, %v6095_v22  ;;  %s6558_s12 = sshll.u32 %s7337_s1, 4  ;;  %s6559_s12 = int_to_ptr.vmem [resolvable:$true] %s6558_s12 }
 0xf2e   :  { %vm6088_vm14 = vcmp.gt.f32.partialorder %v6072_v37, 0.0  ;;  %v6100_v21 = vmul.f32 0.01, %v6072_v37  ;;  %vm6087_vm15 = vcmp.gt.f32.partialorder %v5991_v48, 0.0  ;;  %v6099_v23 = vmul.f32 0.01, %v5991_v48  ;;  %p7310_p9 = scmp.lt.s32.totalorder %s6559_s12, %s6559_s12 }
 0xf2f   :  { %vm6089_vm1 = vcmp.gt.f32.partialorder %v6074_v38, 0.0  ;;  %v6101_v34 = vmul.f32 0.01, %v6074_v38  ;;  %v6110_v0 = vsel %vm6086_vm12, %v5989_v13, %v6098_v25  ;;  %v5994_v55 = vpop.f32.mrb[152].mxu0  ;;  %v6077_v14 = vpop.f32.mrb[152].mxu1  ;;  %v6109_v60 = vsel %vm6085_vm2, %v6068_v29, %v6097_v54  ;;  %s7305_s13 = scalar_lea.vmem %s6559_s12, 512 }
 0xf30   :  { %v6112_v31 = vsel %vm6088_vm14, %v6072_v37, %v6100_v21  ;;  %v6858_v36 = vpack.c.bf16 %v6110_v0, %v6106_v26  ;;  %v5995_v15 = vadd.f32 %v5994_v55, %v7516_v51  ;;  %v6078_v35 = vadd.f32 %v6077_v14, %v7516_v51  ;;  %v5996_v57 = vpop.f32.mrb[153].mxu0  ;;  %v6079_v63 = vpop.f32.mrb[153].mxu1  ;;  %v9196_v0 = vld [vmem:[#allocation10_spill] sm:$0xff]  ;;  %p7306_p8 = scmp.ne.s32.totalorder %s6559_s12, %s7305_s13  ;;  %p7311_p10 = scmp.lt.s32.totalorder %s7305_s13, %s7305_s13 }
 0xf31   :  { %v6862_v56 = vpack.c.bf16 %v6112_v31, %v6108_v62  ;;  %v5997_v49 = vadd.f32 %v5996_v57, %v7516_v51  ;;  %v6080_v6 = vadd.f32 %v6079_v63, %v7516_v51  ;;  %v6111_v45 = vsel %vm6087_vm15, %v5991_v48, %v6099_v23 }
 0xf32   :  { %v6113_v18 = vsel %vm6089_vm1, %v6074_v38, %v6101_v34  ;;  %v6856_v19 = vpack.c.bf16 %v6111_v45, %v6107_v7  ;;  %v6102_v44 = vmul.f32 0.01, %v5995_v15  ;;  %v6104_v50 = vmul.f32 0.01, %v6078_v35  ;;  %p7312_p11 = por %p7311_p10, %p7310_p9 }
 0xf33   :  { %v6103_v42 = vmul.f32 0.01, %v5997_v49  ;;  %v6105_v4 = vmul.f32 0.01, %v6080_v6  ;;  %v6860_v30 = vpack.c.bf16 %v6113_v18, %v6109_v60  ;;  %vm6091_vm3 = vcmp.gt.f32.partialorder %v5997_v49, 0.0  ;;  %v9197_v60 = vld [vmem:[#allocation11_spill] sm:$0xff] }
 0xf34   :  { %vm6093_vm4 = vcmp.gt.f32.partialorder %v6080_v6, 0.0  ;;  %6857 = vmatprep.subr.bf16.mxu0 %v6856_v19  ;;  %vm6090_vm5 = vcmp.gt.f32.partialorder %v5995_v15, 0.0  ;;  %vm6092_vm6 = vcmp.gt.f32.partialorder %v6078_v35, 0.0  ;;  %v6412_v26 = vrot.slane %v6715_v24, %v7589_v52  ;;  %p7313_p12 = pnand %p7312_p11, %p7306_p8 }
 0xf35   :  { %6861 = vmatprep.subr.bf16.mxu1 %v6860_v30  ;;  %v6115_v17 = vsel %vm6091_vm3, %v5997_v49, %v6103_v42  ;;  %v6117_v51 = vsel %vm6093_vm4, %v6080_v6, %v6105_v4  ;;  %6859 = vmatpush1.bf16.msra.mxu0 %v6858_v36  ;;  %v6114_v41 = vsel %vm6090_vm5, %v5995_v15, %v6102_v44 }
 0xf36   :  { %6863 = vmatpush1.bf16.msra.mxu1 %v6862_v56  ;;  %6122 = vmatprep.subr.mxu0 %v6115_v17  ;;  %v6116_v32 = vsel %vm6092_vm6, %v6078_v35, %v6104_v50  ;;  %v6420_v21 = vrot.slane %v6715_v24, %v7592_v53  ;;  %v6416_v31 = vrot.slane %v6715_v24, %v9196_v0 }
 0xf37   :  { %6205 = vmatprep.subr.mxu1 %v6117_v51  ;;  %v6424_v42 = vrot.slane %v6715_v24, %v9197_v60 }
 0xf39   :  { %6123 = vmatpush1.msra.mxu0 %v6114_v41 }
 0xf3a   :  { %6206 = vmatpush1.msra.mxu1 %v6116_v32  ;;  %6730 = vmatmul.mubr.msk.f32.vlgmr.msra.gmra.mrb[154].mxu0 %vm271_vm13, %v8871_v16 }
 0xf3b   :  { %6733 = vmatmul.mubr.msk.f32.vlgmr.msra.gmra.mrb[154].mxu1 %vm271_vm13, %v8871_v16  ;;  %6188 = vmatprep.mubr.f32.mxu0 %v9182_v20 }
 0xf3c   :  { %6271 = vmatprep.mubr.f32.mxu1 %v9182_v20 }
 0xf3e   :  { %6731 = vmatmul.mubr.msk.f32.gmra.mrb[156].mxu0 %vm271_vm13, %v8882_v27 }
 0xf3f   :  { %6734 = vmatmul.mubr.msk.f32.gmra.mrb[156].mxu1 %vm271_vm13, %v8882_v27  ;;  %6194 = vmatprep.mubr.f32.mxu0 %v9182_v20 }
 0xf40   :  { %6277 = vmatprep.mubr.f32.mxu1 %v9182_v20 }
 0xf42   :  { %6732 = vmatmul.mubr.msk.f32.gmra.mrb[158].mxu0 %vm271_vm13, %v8893_v28 }
 0xf43   :  { %6735 = vmatmul.mubr.msk.f32.gmra.mrb[158].mxu1 %vm271_vm13, %v8893_v28 }
0x100d   :  { %v6184_v16 = vpop.f32.mrb[154].mxu0 }
0x100e   :  { %v6267_v2 = vpop.f32.mrb[154].mxu1  ;;  %v6185_v46 = vadd.f32 %v6184_v16, %v7577_v9  ;;  %v6186_v47 = vpop.f32.mrb[155].mxu0 }
0x100f   :  { %v6268_v59 = vadd.f32 %v6267_v2, %v7577_v9  ;;  %v6269_v61 = vpop.f32.mrb[155].mxu1  ;;  %v6187_v27 = vadd.f32 %v6186_v47, %v7577_v9 }
0x1010   :  { %v6270_v58 = vadd.f32 %v6269_v61, %v7577_v9  ;;  %v6284_v8 = vand.u32 2147483647, %v6185_v46 }
0x1011   :  { %v6286_v20 = vand.u32 2147483647, %v6268_v59  ;;  %v6285_v5 = vand.u32 2147483647, %v6187_v27  ;;  %v6190_v29 = vpop.f32.mrb[156].mxu0 }
0x1012   :  { %v6287_v1 = vand.u32 2147483647, %v6270_v58  ;;  %v6273_v11 = vpop.f32.mrb[156].mxu1  ;;  %v6288_v12 = vmax.f32 %v6284_v8, 0.01  ;;  %v6192_v33 = vpop.f32.mrb[157].mxu0  ;;  %v6191_v62 = vadd.f32 %v6190_v29, %v7600_v3 }
0x1013   :  { %v6290_v28 = vmax.f32 %v6286_v20, 0.01  ;;  %v6275_v22 = vpop.f32.mrb[157].mxu1  ;;  %v6289_v13 = vmax.f32 %v6285_v5, 0.01  ;;  %v6274_v36 = vadd.f32 %v6273_v11, %v7600_v3  ;;  %v6193_v56 = vadd.f32 %v6192_v33, %v7600_v3 }
0x1014   :  { %v6291_v37 = vmax.f32 %v6287_v1, 0.01  ;;  %7211 = vrcp.f32 %v6288_v12  ;;  %v6276_v7 = vadd.f32 %v6275_v22, %v7600_v3  ;;  %v6429_v16 = vsub.f32 %v6412_v26, %v6191_v62 }
0x1015   :  { %7213 = vrcp.f32 %v6290_v28  ;;  %v6196_v40 = vpop.f32.mrb[158].mxu0  ;;  %v6431_v2 = vsub.f32 %v6420_v21, %v6274_v36  ;;  %v6430_v46 = vsub.f32 %v6416_v31, %v6193_v56 }
0x1016   :  { %v6279_v9 = vpop.f32.mrb[158].mxu1  ;;  %7215 = vrcp.f32 %v6289_v13  ;;  %v6197_v54 = vadd.f32 %v6196_v40, %v9194_v10  ;;  %v6198_v38 = vpop.f32.mrb[159].mxu0  ;;  %v6432_v61 = vsub.f32 %v6424_v42, %v6276_v7 }
0x1017   :  { %v6280_v48 = vadd.f32 %v6279_v9, %v9194_v10  ;;  %v6281_v25 = vpop.f32.mrb[159].mxu1  ;;  %7217 = vrcp.f32 %v6291_v37  ;;  %v9105_v23 = vadd.f32 %v6198_v38, %v9194_v10 }
0x1018   :  { %v9108_v34 = vadd.f32 %v6281_v25, %v9194_v10  ;;  %v6296_v55 = vrot.slane %v6197_v54, 1  ;;  %v6308_v57 = vrot.slane %v6197_v54, 2 }
0x1019   :  { %v6298_v14 = vrot.slane %v6280_v48, 1  ;;  %v6297_v15 = vrot.slane %v9105_v23, 1  ;;  %v6310_v49 = vrot.slane %v6280_v48, 2  ;;  %v6309_v6 = vrot.slane %v9105_v23, 2 }
0x101a   :  { %v6299_v53 = vrot.slane %v9108_v34, 1  ;;  %v6304_v35 = vmax.f32 %v6197_v54, %v6296_v55  ;;  %v6311_v18 = vrot.slane %v9108_v34, 2 }
0x101b   :  { %v6306_v63 = vmax.f32 %v6280_v48, %v6298_v14  ;;  %v6305_v10 = vmax.f32 %v9105_v23, %v6297_v15 }
0x101c   :  { %v6307_v45 = vmax.f32 %v9108_v34, %v6299_v53  ;;  %v6316_v4 = vmax.f32 %v6304_v35, %v6308_v57 }
0x101d   :  { %v6318_v19 = vmax.f32 %v6306_v63, %v6310_v49  ;;  %v6317_v30 = vmax.f32 %v6305_v10, %v6309_v6 }
0x101e   :  { %v6319_v44 = vmax.f32 %v6307_v45, %v6311_v18  ;;  %v7212_v50 = vpop.eup %7211  ;;  %v6323_v17 = vrot.slane %v6316_v4, %v7589_v52 }
0x101f   :  { %v6331_v51 = vrot.slane %v6318_v19, %v7589_v52  ;;  %v7214_v41 = vpop.eup %7213  ;;  %v6404_v32 = vmul.f32 0.70710677, %v7212_v50  ;;  %v6327_v3 = vrot.slane %v6317_v30, %v7589_v52 }
0x1020   :  { %v7216_v59 = vpop.eup %7215  ;;  %v6406_v47 = vmul.f32 0.70710677, %v7214_v41  ;;  %v6335_v27 = vrot.slane %v6319_v44, %v7589_v52  ;;  %v6336_v1 = vsub.f32 %v6197_v54, %v6323_v17 }
0x1021   :  { %v7218_v58 = vpop.eup %7217  ;;  %v6437_v8 = vmul.f32 0.0019607844, %v6404_v32  ;;  %v6405_v20 = vmul.f32 0.70710677, %v7216_v59  ;;  %v6433_v5 = vmul.f32 %v6429_v16, %v6404_v32  ;;  %v6338_v28 = vsub.f32 %v6280_v48, %v6331_v51 }
0x1022   :  { %v6439_v29 = vmul.f32 0.0019607844, %v6406_v47  ;;  %v6407_v11 = vmul.f32 0.70710677, %v7218_v58  ;;  %v6435_v12 = vmul.f32 %v6431_v2, %v6406_v47  ;;  %v6337_v48 = vsub.f32 %v9105_v23, %v6327_v3 }
0x1023   :  { %v6438_v33 = vmul.f32 0.0019607844, %v6405_v20  ;;  %v6441_v22 = vsub.f32 %v6437_v8, %v6433_v5  ;;  %v6449_v13 = vsub.f32 0.0, %v6437_v8  ;;  %v6434_v37 = vmul.f32 %v6430_v46, %v6405_v20 }
0x1024   :  { %v6440_v24 = vmul.f32 0.0019607844, %v6407_v11  ;;  %v6443_v40 = vsub.f32 %v6439_v29, %v6435_v12  ;;  %v6451_v9 = vsub.f32 0.0, %v6439_v29  ;;  %v6436_v26 = vmul.f32 %v6432_v61, %v6407_v11 }
0x1025   :  { %7219 = verf.f32 %v6441_v22  ;;  %v6453_v38 = vsub.f32 %v6449_v13, %v6433_v5  ;;  %v6442_v25 = vsub.f32 %v6438_v33, %v6434_v37  ;;  %v6450_v21 = vsub.f32 0.0, %v6438_v33 }
0x1026   :  { %7221 = verf.f32 %v6443_v40  ;;  %v6455_v62 = vsub.f32 %v6451_v9, %v6435_v12  ;;  %v6444_v0 = vsub.f32 %v6440_v24, %v6436_v26  ;;  %v6452_v54 = vsub.f32 0.0, %v6440_v24 }
0x1027   :  { %7223 = verf.f32 %v6453_v38  ;;  %v6454_v31 = vsub.f32 %v6450_v21, %v6434_v37  ;;  %v6339_v14 = vsub.f32 %v9108_v34, %v6335_v27  ;;  %v6340_v36 = vmul.f32 1.442695, %v6336_v1 }
0x1028   :  { %7225 = verf.f32 %v6455_v62  ;;  %v6456_v55 = vsub.f32 %v6452_v54, %v6436_v26  ;;  %v6344_v56 = vmul.f32 1.442695, %v6338_v28  ;;  %v6342_v15 = vmul.f32 1.442695, %v6337_v48 }
0x1029   :  { %7227 = verf.f32 %v6442_v25  ;;  %v6346_v53 = vmul.f32 1.442695, %v6339_v14 }
0x102a   :  { %7229 = verf.f32 %v6454_v31 }
0x102b   :  { %7231 = verf.f32 %v6444_v0 }
0x102c   :  { %7233 = verf.f32 %v6456_v55 }
0x102d   :  { %7235 = vpow2.f32 %v6340_v36 }
0x102e   :  { %7237 = vpow2.f32 %v6344_v56 }
0x102f   :  { %v7220_v35 = vpop.eup %7219  ;;  %7239 = vpow2.f32 %v6342_v15 }
0x1030   :  { %v7222_v57 = vpop.eup %7221  ;;  %7241 = vpow2.f32 %v6346_v53 }
0x1031   :  { %v7224_v63 = vpop.eup %7223 }
0x1032   :  { %v7226_v23 = vpop.eup %7225  ;;  %v6461_v49 = vsub.f32 %v7220_v35, %v7224_v63 }
0x1033   :  { %v7228_v10 = vpop.eup %7227  ;;  %v6463_v6 = vsub.f32 %v7222_v57, %v7226_v23 }
0x1034   :  { %v7230_v34 = vpop.eup %7229 }
0x1035   :  { %v7232_v45 = vpop.eup %7231  ;;  %v6462_v18 = vsub.f32 %v7228_v10, %v7230_v34 }
0x1036   :  { %v7234_v7 = vpop.eup %7233 }
0x1037   :  { %v7236_v60 = vpop.eup %7235  ;;  %v6464_v42 = vsub.f32 %v7232_v45, %v7234_v7 }
0x1038   :  { %v7238_v4 = vpop.eup %7237  ;;  %v6352_v19 = vrot.slane %v7236_v60, 1  ;;  %v6364_v51 = vrot.slane %v7236_v60, 2 }
0x1039   :  { %v7240_v30 = vpop.eup %7239  ;;  %v6354_v44 = vrot.slane %v7238_v4, 1  ;;  %v6366_v16 = vrot.slane %v7238_v4, 2 }
0x103a   :  { %v7242_v50 = vpop.eup %7241  ;;  %v6360_v17 = vadd.f32 %v7236_v60, %v6352_v19  ;;  %v6353_v41 = vrot.slane %v7240_v30, 1  ;;  %v6365_v47 = vrot.slane %v7240_v30, 2 }
0x103b   :  { %v6362_v32 = vadd.f32 %v7238_v4, %v6354_v44  ;;  %v6355_v2 = vrot.slane %v7242_v50, 1  ;;  %v6367_v27 = vrot.slane %v7242_v50, 2 }
0x103c   :  { %v6372_v46 = vadd.f32 %v6364_v51, %v6360_v17  ;;  %v6361_v59 = vadd.f32 %v7240_v30, %v6353_v41 }
0x103d   :  { %v6374_v61 = vadd.f32 %v6366_v16, %v6362_v32  ;;  %v6363_v3 = vadd.f32 %v7242_v50, %v6355_v2 }
0x103e   :  { %7243 = vrcp.f32 %v6372_v46  ;;  %v6373_v58 = vadd.f32 %v6365_v47, %v6361_v59 }
0x103f   :  { %7245 = vrcp.f32 %v6374_v61  ;;  %v6375_v8 = vadd.f32 %v6367_v27, %v6363_v3 }
0x1040   :  { %7247 = vrcp.f32 %v6373_v58 }
0x1041   :  { %7249 = vrcp.f32 %v6375_v8 }
0x1048   :  { %v7244_v20 = vpop.eup %7243 }
0x1049   :  { %v7246_v5 = vpop.eup %7245  ;;  %v6383_v1 = vrot.slane %v7244_v20, %v7589_v52 }
0x104a   :  { %v7248_v29 = vpop.eup %7247  ;;  %v6391_v11 = vrot.slane %v7246_v5, %v7589_v52 }
0x104b   :  { %v7250_v12 = vpop.eup %7249  ;;  %v6387_v28 = vrot.slane %v7248_v29, %v7589_v52  ;;  %v6396_v33 = vmul.f32 %v7236_v60, %v6383_v1 }
0x104c   :  { %v6395_v22 = vrot.slane %v7250_v12, %v7589_v52  ;;  %v6398_v13 = vmul.f32 %v7238_v4, %v6391_v11 }
0x104d   :  { %v6397_v37 = vmul.f32 %v7240_v30, %v6387_v28  ;;  %v6465_v24 = vmul.f32 %v6461_v49, %v6396_v33 }
0x104e   :  { %v6399_v40 = vmul.f32 %v7242_v50, %v6395_v22  ;;  %v6467_v9 = vmul.f32 %v6463_v6, %v6398_v13 }
0x104f   :  { %v6466_v26 = vmul.f32 %v6462_v18, %v6397_v37  ;;  %v6473_v38 = vrot.slane %v6465_v24, 1  ;;  %v6485_v54 = vrot.slane %v6465_v24, 2 }
0x1050   :  { %v6468_v25 = vmul.f32 %v6464_v42, %v6399_v40  ;;  %v6475_v21 = vrot.slane %v6467_v9, 1  ;;  %v6487_v55 = vrot.slane %v6467_v9, 2 }
0x1051   :  { %v6474_v62 = vrot.slane %v6466_v26, 1  ;;  %v6481_v0 = vadd.f32 %v6473_v38, %v6465_v24  ;;  %v6486_v36 = vrot.slane %v6466_v26, 2 }
0x1052   :  { %v6476_v31 = vrot.slane %v6468_v25, 1  ;;  %v6483_v48 = vadd.f32 %v6475_v21, %v6467_v9  ;;  %v6488_v52 = vrot.slane %v6468_v25, 2 }
0x1053   :  { %v6482_v14 = vadd.f32 %v6474_v62, %v6466_v26  ;;  %v6493_v56 = vadd.f32 %v6485_v54, %v6481_v0 }
0x1054   :  { %v6484_v15 = vadd.f32 %v6476_v31, %v6468_v25  ;;  %v6495_v53 = vadd.f32 %v6487_v55, %v6483_v48 }
0x1055   :  { %v6494_v35 = vadd.f32 %v6486_v36, %v6482_v14  ;;  %v6497_v57 = vmul.f32 0.5, %v6493_v56 }
0x1056   :  { %v6496_v63 = vadd.f32 %v6488_v52, %v6484_v15  ;;  %v6499_v23 = vmul.f32 0.5, %v6495_v53 }
0x1057   :  { %v6498_v49 = vmul.f32 0.5, %v6494_v35  ;;  %v6501_v10 = vmax.f32 %v6497_v57, 1e-09 }
0x1058   :  { %v6500_v6 = vmul.f32 0.5, %v6496_v63  ;;  %v6503_v34 = vmax.f32 %v6499_v23, 1e-09 }
0x1059   :  { %v6502_v45 = vmax.f32 %v6498_v49, 1e-09  ;;  %7251 = vlog2.f32 %v6501_v10 }
0x105a   :  { %v6504_v18 = vmax.f32 %v6500_v6, 1e-09  ;;  %7253 = vlog2.f32 %v6503_v34 }
0x105b   :  { %7255 = vlog2.f32 %v6502_v45 }
0x105c   :  { %7257 = vlog2.f32 %v6504_v18 }
0x1063   :  { %v7252_v7 = vpop.eup %7251 }
0x1064   :  { %v7254_v60 = vpop.eup %7253  ;;  %v6506_v42 = vmul.f32 0.6931472, %v7252_v7 }
0x1065   :  { %v7256_v4 = vpop.eup %7255  ;;  %v6510_v19 = vmul.f32 0.6931472, %v7254_v60 }
0x1066   :  { %v7258_v30 = vpop.eup %7257  ;;  %v6508_v44 = vmul.f32 0.6931472, %v7256_v4  ;;  %v6513_v50 = vmul.f32 1.442695, %v6506_v42 }
0x1067   :  { %v6512_v17 = vmul.f32 0.6931472, %v7258_v30  ;;  %v6515_v51 = vmul.f32 1.442695, %v6510_v19 }
0x1068   :  { %v6514_v41 = vmul.f32 1.442695, %v6508_v44  ;;  %v6517_v32 = vsub.f32 0.0, %v6513_v50 }
0x1069   :  { %v6516_v16 = vmul.f32 1.442695, %v6512_v17  ;;  %v6519_v2 = vsub.f32 0.0, %v6515_v51 }
0x106a   :  { %v6518_v46 = vsub.f32 0.0, %v6514_v41 }
0x106b   :  { %v6520_v59 = vsub.f32 0.0, %v6516_v16 }
0x106c   :  { %v6525_v47 = vcombine.low %v6517_v32, %v6518_v46 }
0x106d   :  { %v6526_v61 = vcombine.low %v6519_v2, %v6520_v59 }
0x106e   :  { %v6533_v3 = vrot.slane %v6525_v47, %v7755_v43 }
0x106f   :  { %v6540_v27 = vrot.slane %v6526_v61, %v7755_v43 }
0x1071   :  { %v6541_v58 = vcombine.low %v6533_v3, %v6540_v27 }
0x1073   :  { %v6548_v8 = vrot.slane %v6541_v58, %v7755_v43 }
0x1075   :  { %6551 = vst.msk [vmem:[#allocation5 + $0x1c] sm:$0xf] %vm7760_vm9, %v6548_v8 }
0x1076   :  { %7316 = shalt.err (!%p7313_p12)
}
0x1077   :  { %s7317_s16 = scalar_lea.hbm %s9157_s8, 512 }
0x1078   :  { %p7318_p13 = scmp.ne.s32.totalorder %s9157_s8, %s7317_s16  ;;  %p7321_p0 = scmp.lt.u32.totalorder %s7317_s16, %s9157_s8 }
0x107a   :  { %p7323_p1 = pnand %p7321_p0, %p7318_p13 }
0x107c   :  { %7326 = shalt.err (!%p7323_p1)
}
0x107d   :  { %6561 = dma.vmem_to_hbm [thread:$0]  %s6559_s12, 512, %s9157_s8, [#allocation4]  }
0x107e   :  { %7329 = dma.done.wait [#allocation4], 512  }
0x107f   :  { %7330 = vsyncadd [#allocation4], 4294966784 }
0x1080   :  { %6565 = vsyncpa [#allocation3], 1 }
0x1081   :  { %6566 = vsyncpa [#allocation4], 1 }

</bundles_post_ra>
